<compile_context>
chip_gen: v5e
topology: v5e:2x2
jax: 0.10.0
libtpu: 0.0.40
codegen_flags: <defaults>
</compile_context>

<pallas_src>
import jax
import jax.numpy as jnp
from jax import lax
from jax.experimental import pallas as pl
from jax.experimental.pallas import tpu as pltpu


def afm_kernel(emb_ref, fcv_ref, wcat_ref, battn_ref, wproj_ref, scalars_ref, out_ref):
    FE, BT = emb_ref.shape            # (F*E, block_b) — batch on the lane axis
    F = fcv_ref.shape[0]
    E = FE // F
    A = battn_ref.shape[0]            # attn_size

    b_proj = scalars_ref[0]
    b_fc = scalars_ref[1]
    lin_bias = scalars_ref[2]

    emb = emb_ref[...]                                                  # (F*E, BT)

    # strict upper-triangle field pairs (static)
    pairs = [(i, j) for i in range(F - 1) for j in range(i + 1, F)]
    P = len(pairs)

    # ---- pairwise element-wise products, pairs tiled along lanes: (E, P*BT) ----
    # each slice starts at a sublane offset that is a multiple of E (tile aligned)
    inner = jnp.concatenate(
        [emb[i * E:(i + 1) * E, :] * emb[j * E:(j + 1) * E, :] for (i, j) in pairs],
        axis=1)                                                          # (E, P*BT)

    # ---- fused attention + w_fc matmul: (A+1, E) @ (E, P*BT) -> (A+1, P*BT) ----
    # HIGHEST keeps f32 fidelity on the MXU (cheap: M=A+1, K=E are tiny).
    hidden = jnp.dot(wcat_ref[...], inner,
                     preferred_element_type=jnp.float32,
                     precision=lax.Precision.HIGHEST)                    # (A+1, P*BT)

    relu_h = jnp.maximum(hidden[:A, :] + battn_ref[...], 0.0)           # (A, P*BT)
    # projection to one logit per (pair, example): VPU multiply + sublane reduce
    logits = jnp.sum(relu_h * wproj_ref[...], axis=0, keepdims=True) + b_proj   # (1, P*BT)
    fc_pair = hidden[A:A + 1, :]                                         # (1, P*BT) = inner_p . w_fc

    # ---- softmax over the P pairs; each pair is one aligned BT-lane block ----
    lblk = [logits[:, p * BT:(p + 1) * BT] for p in range(P)]            # each (1, BT)
    fblk = [fc_pair[:, p * BT:(p + 1) * BT] for p in range(P)]
    m = lblk[0]
    for p in range(1, P):
        m = jnp.maximum(m, lblk[p])
    num = jnp.zeros_like(m)
    den = jnp.zeros_like(m)
    for p in range(P):
        e = jnp.exp(lblk[p] - m)
        den = den + e
        num = num + e * fblk[p]
    afm = num * pl.reciprocal(den, approx=False) + b_fc                  # (1, BT)

    # FeaturesLinear: sum of the gathered 1-d weights over fields
    linear = jnp.sum(fcv_ref[...], axis=0, keepdims=True) + lin_bias     # (1, BT)

    out_ref[...] = jax.nn.sigmoid(linear + afm)                          # lane-dense (1, BT)


def afm_forward(x_idx, params, *, block_b=512):
    offs = params['offsets']
    gathered = (x_idx + offs[None, :]).astype(jnp.int32)                 # (B, F) global ids
    B, F = gathered.shape
    E = params['embedding'].shape[1]
    A = params['w_attn'].shape[1]

    # pad batch to a multiple of block_b (padded rows use index 0, dropped afterwards)
    B_pad = ((B + block_b - 1) // block_b) * block_b
    if B_pad != B:
        gathered = jnp.concatenate(
            [gathered, jnp.zeros((B_pad - B, F), jnp.int32)], axis=0)

    # wrapper-side gathers (XLA): ship lane-dense activation blocks, batch on lanes
    emb = params['embedding'][gathered]                                  # (B_pad, F, E)
    emb_in = jnp.transpose(emb, (1, 2, 0)).reshape(F * E, B_pad)         # (F*E, B_pad)
    fc_in = jnp.transpose(params['fc'][gathered][..., 0], (1, 0))        # (F, B_pad)

    # fuse w_fc as an extra output row of the attention matmul
    wcat_t = jnp.concatenate([params['w_attn'], params['w_fc']], axis=1).T   # (A+1, E)
    battn_col = params['b_attn'].reshape(A, 1)
    wproj_col = params['w_proj'].reshape(A, 1)
    scalars = jnp.array([params['b_proj'][0, 0], params['b_fc'][0, 0],
                         params['lin_bias'][0, 0]], jnp.float32)

    num_blocks = B_pad // block_b
    out = pl.pallas_call(
        afm_kernel,
        out_shape=jax.ShapeDtypeStruct((1, B_pad), jnp.float32),
        grid_spec=pltpu.PrefetchScalarGridSpec(
            num_scalar_prefetch=0,
            grid=(num_blocks,),
            in_specs=[
                pl.BlockSpec((F * E, block_b), lambda i: (0, i)),        # embeddings (batch in lanes)
                pl.BlockSpec((F, block_b), lambda i: (0, i)),            # linear-term values
                pl.BlockSpec((A + 1, E), lambda i: (0, 0)),              # [W_attn | w_fc]^T
                pl.BlockSpec((A, 1), lambda i: (0, 0)),                  # b_attn (column)
                pl.BlockSpec((A, 1), lambda i: (0, 0)),                  # w_proj (column)
                pl.BlockSpec(memory_space=pltpu.MemorySpace.SMEM),       # b_proj, b_fc, lin_bias
            ],
            out_specs=pl.BlockSpec((1, block_b), lambda i: (0, i)),
        ),
        compiler_params=pltpu.CompilerParams(
            dimension_semantics=("parallel",),
            vmem_limit_bytes=32 * 1024 * 1024),
    )(emb_in, fc_in, wcat_t, battn_col, wproj_col, scalars)
    return out[0, :B]


def afm_reference(x_idx, params):
    """Pure-JAX reference mirroring the PyTorch forward exactly (f32-exact matmuls)."""
    offs = params['offsets']
    gathered = x_idx + offs[None, :]
    emb = params['embedding'][gathered]                                  # (B, F, E)
    lin = jnp.sum(params['fc'][gathered][..., 0], axis=1, keepdims=True) \
        + params['lin_bias'][0]
    F = x_idx.shape[1]
    row = [i for i in range(F - 1) for _ in range(i + 1, F)]
    col = [j for i in range(F - 1) for j in range(i + 1, F)]
    p = emb[:, jnp.array(row)]
    q = emb[:, jnp.array(col)]
    inner = p * q                                                        # (B, P, E)
    hidden = jax.nn.relu(
        jnp.einsum('bpe,ea->bpa', inner, params['w_attn'],
                   precision=lax.Precision.HIGHEST) + params['b_attn'][0])
    logits = jnp.einsum('bpa,ao->bpo', hidden, params['w_proj'],
                        precision=lax.Precision.HIGHEST) + params['b_proj'][0]
    scores = jax.nn.softmax(logits, axis=1)
    attn_out = jnp.sum(scores * inner, axis=1)                           # (B, E)
    afm = jnp.einsum('be,eo->bo', attn_out, params['w_fc'],
                     precision=lax.Precision.HIGHEST) + params['b_fc'][0]
    return jax.nn.sigmoid((lin + afm)[:, 0])


def init_params(key, field_dims, embed_dim, attn_size):
    total = int(sum(field_dims))
    offsets = jnp.array([0] + list(jnp.cumsum(jnp.array(field_dims))[:-1]),
                        dtype=jnp.int32)
    k = jax.random.split(key, 8)
    xav = (6.0 / (total + embed_dim)) ** 0.5
    params = {
        'offsets': offsets,
        # FeaturesEmbedding: xavier_uniform
        'embedding': jax.random.uniform(k[0], (total, embed_dim),
                                        jnp.float32, -xav, xav),
        # FeaturesLinear: nn.Embedding default N(0,1) weight, zero bias
        'fc': jax.random.normal(k[1], (total, 1), jnp.float32),
        'lin_bias': jnp.zeros((1, 1), jnp.float32),
        # attention Linear(embed_dim, attn_size)
        'w_attn': jax.random.uniform(k[2], (embed_dim, attn_size), jnp.float32,
                                     -(1.0 / embed_dim) ** 0.5,
                                     (1.0 / embed_dim) ** 0.5),
        'b_attn': jax.random.uniform(k[3], (1, attn_size), jnp.float32,
                                     -(1.0 / embed_dim) ** 0.5,
                                     (1.0 / embed_dim) ** 0.5),
        # projection Linear(attn_size, 1)
        'w_proj': jax.random.uniform(k[4], (attn_size, 1), jnp.float32,
                                     -(1.0 / attn_size) ** 0.5,
                                     (1.0 / attn_size) ** 0.5),
        'b_proj': jax.random.uniform(k[5], (1, 1), jnp.float32,
                                     -(1.0 / attn_size) ** 0.5,
                                     (1.0 / attn_size) ** 0.5),
        # fc Linear(embed_dim, 1)
        'w_fc': jax.random.uniform(k[6], (embed_dim, 1), jnp.float32,
                                   -(1.0 / embed_dim) ** 0.5,
                                   (1.0 / embed_dim) ** 0.5),
        'b_fc': jax.random.uniform(k[7], (1, 1), jnp.float32,
                                   -(1.0 / embed_dim) ** 0.5,
                                   (1.0 / embed_dim) ** 0.5),
    }
    return params


if __name__ == "__main__":
    key = jax.random.PRNGKey(0)
    field_dims = (3, 5, 7, 11, 13, 4, 6, 9)   # 8 fields, total vocab 58
    embed_dim = 16
    attn_size = 8
    batch = 200                               # not a multiple of block_b -> exercises padding

    pkey, xkey = jax.random.split(key)
    params = init_params(pkey, field_dims, embed_dim, attn_size)

    # deterministic synthetic indices, each within its field's vocab
    cols = []
    xkeys = jax.random.split(xkey, len(field_dims))
    for fk, fd in zip(xkeys, field_dims):
        cols.append(jax.random.randint(fk, (batch,), 0, fd, dtype=jnp.int32))
    x_idx = jnp.stack(cols, axis=1)           # (B, F) int32

    # block_b=128 -> padded batch 256, grid of 2 steps (keeps both v7x TensorCores busy)
    out = afm_forward(x_idx, params, block_b=128)
    out = jax.block_until_ready(out)

    ref = afm_reference(x_idx, params)
    assert out.shape == (batch,)
    assert jnp.allclose(out, ref, atol=1e-5, rtol=1e-5), (out, ref)
    print("KERNEL_OK")
</pallas_src>

<mosaic_0001>
module attributes {stable_mosaic.version = 11 : i64} {
  func.func @afm_kernel(%arg0: i32, %arg1: memref<128x128xf32, #tpu.memory_space<vmem>>, %arg2: memref<8x128xf32, #tpu.memory_space<vmem>>, %arg3: memref<9x16xf32, #tpu.memory_space<vmem>>, %arg4: memref<8x1xf32, #tpu.memory_space<vmem>>, %arg5: memref<8x1xf32, #tpu.memory_space<vmem>>, %arg6: memref<3xf32, #tpu.memory_space<smem>>, %arg7: memref<1x128xf32, #tpu.memory_space<vmem>>) attributes {dimension_semantics = [#tpu.dimension_semantics<parallel>], iteration_bounds = array<i64: 2>, scalar_prefetch = 0 : i64, scratch_operands = 0 : i64, tpu.core_type = #tpu.core_type<tc>, window_params = [{transform_indices = @transform_0, window_bounds = array<i64: 128, 128>}, {transform_indices = @transform_1, window_bounds = array<i64: 8, 128>}, {pipeline_mode = #tpu.pipeline_mode<synchronous>, transform_indices = @transform_2, window_bounds = array<i64: 9, 16>}, {pipeline_mode = #tpu.pipeline_mode<synchronous>, transform_indices = @transform_3, window_bounds = array<i64: 8, 1>}, {pipeline_mode = #tpu.pipeline_mode<synchronous>, transform_indices = @transform_4, window_bounds = array<i64: 8, 1>}, {transform_indices = @transform_5, window_bounds = array<i64: 3>}, {transform_indices = @transform_6, window_bounds = array<i64: 1, 128>}]} {
    %c0 = arith.constant 0 : index
    %0 = memref.load %arg6[%c0] : memref<3xf32, #tpu.memory_space<smem>>
    %c1 = arith.constant 1 : index
    %1 = memref.load %arg6[%c1] : memref<3xf32, #tpu.memory_space<smem>>
    %c2 = arith.constant 2 : index
    %2 = memref.load %arg6[%c2] : memref<3xf32, #tpu.memory_space<smem>>
    %c0_0 = arith.constant 0 : index
    %c0_1 = arith.constant 0 : index
    %3 = vector.load %arg1[%c0_0, %c0_1] : memref<128x128xf32, #tpu.memory_space<vmem>>, vector<128x128xf32>
    %4 = vector.extract_strided_slice %3 {offsets = [0, 0], sizes = [16, 128], strides = [1, 1]} : vector<128x128xf32> to vector<16x128xf32>
    %5 = vector.extract_strided_slice %3 {offsets = [16, 0], sizes = [16, 128], strides = [1, 1]} : vector<128x128xf32> to vector<16x128xf32>
    %6 = arith.mulf %4, %5 : vector<16x128xf32>
    %7 = vector.extract_strided_slice %3 {offsets = [0, 0], sizes = [16, 128], strides = [1, 1]} : vector<128x128xf32> to vector<16x128xf32>
    %8 = vector.extract_strided_slice %3 {offsets = [32, 0], sizes = [16, 128], strides = [1, 1]} : vector<128x128xf32> to vector<16x128xf32>
    %9 = arith.mulf %7, %8 : vector<16x128xf32>
    %10 = vector.extract_strided_slice %3 {offsets = [0, 0], sizes = [16, 128], strides = [1, 1]} : vector<128x128xf32> to vector<16x128xf32>
    %11 = vector.extract_strided_slice %3 {offsets = [48, 0], sizes = [16, 128], strides = [1, 1]} : vector<128x128xf32> to vector<16x128xf32>
    %12 = arith.mulf %10, %11 : vector<16x128xf32>
    %13 = vector.extract_strided_slice %3 {offsets = [0, 0], sizes = [16, 128], strides = [1, 1]} : vector<128x128xf32> to vector<16x128xf32>
    %14 = vector.extract_strided_slice %3 {offsets = [64, 0], sizes = [16, 128], strides = [1, 1]} : vector<128x128xf32> to vector<16x128xf32>
    %15 = arith.mulf %13, %14 : vector<16x128xf32>
    %16 = vector.extract_strided_slice %3 {offsets = [0, 0], sizes = [16, 128], strides = [1, 1]} : vector<128x128xf32> to vector<16x128xf32>
    %17 = vector.extract_strided_slice %3 {offsets = [80, 0], sizes = [16, 128], strides = [1, 1]} : vector<128x128xf32> to vector<16x128xf32>
    %18 = arith.mulf %16, %17 : vector<16x128xf32>
    %19 = vector.extract_strided_slice %3 {offsets = [0, 0], sizes = [16, 128], strides = [1, 1]} : vector<128x128xf32> to vector<16x128xf32>
    %20 = vector.extract_strided_slice %3 {offsets = [96, 0], sizes = [16, 128], strides = [1, 1]} : vector<128x128xf32> to vector<16x128xf32>
    %21 = arith.mulf %19, %20 : vector<16x128xf32>
    %22 = vector.extract_strided_slice %3 {offsets = [0, 0], sizes = [16, 128], strides = [1, 1]} : vector<128x128xf32> to vector<16x128xf32>
    %23 = vector.extract_strided_slice %3 {offsets = [112, 0], sizes = [16, 128], strides = [1, 1]} : vector<128x128xf32> to vector<16x128xf32>
    %24 = arith.mulf %22, %23 : vector<16x128xf32>
    %25 = vector.extract_strided_slice %3 {offsets = [16, 0], sizes = [16, 128], strides = [1, 1]} : vector<128x128xf32> to vector<16x128xf32>
    %26 = vector.extract_strided_slice %3 {offsets = [32, 0], sizes = [16, 128], strides = [1, 1]} : vector<128x128xf32> to vector<16x128xf32>
    %27 = arith.mulf %25, %26 : vector<16x128xf32>
    %28 = vector.extract_strided_slice %3 {offsets = [16, 0], sizes = [16, 128], strides = [1, 1]} : vector<128x128xf32> to vector<16x128xf32>
    %29 = vector.extract_strided_slice %3 {offsets = [48, 0], sizes = [16, 128], strides = [1, 1]} : vector<128x128xf32> to vector<16x128xf32>
    %30 = arith.mulf %28, %29 : vector<16x128xf32>
    %31 = vector.extract_strided_slice %3 {offsets = [16, 0], sizes = [16, 128], strides = [1, 1]} : vector<128x128xf32> to vector<16x128xf32>
    %32 = vector.extract_strided_slice %3 {offsets = [64, 0], sizes = [16, 128], strides = [1, 1]} : vector<128x128xf32> to vector<16x128xf32>
    %33 = arith.mulf %31, %32 : vector<16x128xf32>
    %34 = vector.extract_strided_slice %3 {offsets = [16, 0], sizes = [16, 128], strides = [1, 1]} : vector<128x128xf32> to vector<16x128xf32>
    %35 = vector.extract_strided_slice %3 {offsets = [80, 0], sizes = [16, 128], strides = [1, 1]} : vector<128x128xf32> to vector<16x128xf32>
    %36 = arith.mulf %34, %35 : vector<16x128xf32>
    %37 = vector.extract_strided_slice %3 {offsets = [16, 0], sizes = [16, 128], strides = [1, 1]} : vector<128x128xf32> to vector<16x128xf32>
    %38 = vector.extract_strided_slice %3 {offsets = [96, 0], sizes = [16, 128], strides = [1, 1]} : vector<128x128xf32> to vector<16x128xf32>
    %39 = arith.mulf %37, %38 : vector<16x128xf32>
    %40 = vector.extract_strided_slice %3 {offsets = [16, 0], sizes = [16, 128], strides = [1, 1]} : vector<128x128xf32> to vector<16x128xf32>
    %41 = vector.extract_strided_slice %3 {offsets = [112, 0], sizes = [16, 128], strides = [1, 1]} : vector<128x128xf32> to vector<16x128xf32>
    %42 = arith.mulf %40, %41 : vector<16x128xf32>
    %43 = vector.extract_strided_slice %3 {offsets = [32, 0], sizes = [16, 128], strides = [1, 1]} : vector<128x128xf32> to vector<16x128xf32>
    %44 = vector.extract_strided_slice %3 {offsets = [48, 0], sizes = [16, 128], strides = [1, 1]} : vector<128x128xf32> to vector<16x128xf32>
    %45 = arith.mulf %43, %44 : vector<16x128xf32>
    %46 = vector.extract_strided_slice %3 {offsets = [32, 0], sizes = [16, 128], strides = [1, 1]} : vector<128x128xf32> to vector<16x128xf32>
    %47 = vector.extract_strided_slice %3 {offsets = [64, 0], sizes = [16, 128], strides = [1, 1]} : vector<128x128xf32> to vector<16x128xf32>
    %48 = arith.mulf %46, %47 : vector<16x128xf32>
    %49 = vector.extract_strided_slice %3 {offsets = [32, 0], sizes = [16, 128], strides = [1, 1]} : vector<128x128xf32> to vector<16x128xf32>
    %50 = vector.extract_strided_slice %3 {offsets = [80, 0], sizes = [16, 128], strides = [1, 1]} : vector<128x128xf32> to vector<16x128xf32>
    %51 = arith.mulf %49, %50 : vector<16x128xf32>
    %52 = vector.extract_strided_slice %3 {offsets = [32, 0], sizes = [16, 128], strides = [1, 1]} : vector<128x128xf32> to vector<16x128xf32>
    %53 = vector.extract_strided_slice %3 {offsets = [96, 0], sizes = [16, 128], strides = [1, 1]} : vector<128x128xf32> to vector<16x128xf32>
    %54 = arith.mulf %52, %53 : vector<16x128xf32>
    %55 = vector.extract_strided_slice %3 {offsets = [32, 0], sizes = [16, 128], strides = [1, 1]} : vector<128x128xf32> to vector<16x128xf32>
    %56 = vector.extract_strided_slice %3 {offsets = [112, 0], sizes = [16, 128], strides = [1, 1]} : vector<128x128xf32> to vector<16x128xf32>
    %57 = arith.mulf %55, %56 : vector<16x128xf32>
    %58 = vector.extract_strided_slice %3 {offsets = [48, 0], sizes = [16, 128], strides = [1, 1]} : vector<128x128xf32> to vector<16x128xf32>
    %59 = vector.extract_strided_slice %3 {offsets = [64, 0], sizes = [16, 128], strides = [1, 1]} : vector<128x128xf32> to vector<16x128xf32>
    %60 = arith.mulf %58, %59 : vector<16x128xf32>
    %61 = vector.extract_strided_slice %3 {offsets = [48, 0], sizes = [16, 128], strides = [1, 1]} : vector<128x128xf32> to vector<16x128xf32>
    %62 = vector.extract_strided_slice %3 {offsets = [80, 0], sizes = [16, 128], strides = [1, 1]} : vector<128x128xf32> to vector<16x128xf32>
    %63 = arith.mulf %61, %62 : vector<16x128xf32>
    %64 = vector.extract_strided_slice %3 {offsets = [48, 0], sizes = [16, 128], strides = [1, 1]} : vector<128x128xf32> to vector<16x128xf32>
    %65 = vector.extract_strided_slice %3 {offsets = [96, 0], sizes = [16, 128], strides = [1, 1]} : vector<128x128xf32> to vector<16x128xf32>
    %66 = arith.mulf %64, %65 : vector<16x128xf32>
    %67 = vector.extract_strided_slice %3 {offsets = [48, 0], sizes = [16, 128], strides = [1, 1]} : vector<128x128xf32> to vector<16x128xf32>
    %68 = vector.extract_strided_slice %3 {offsets = [112, 0], sizes = [16, 128], strides = [1, 1]} : vector<128x128xf32> to vector<16x128xf32>
    %69 = arith.mulf %67, %68 : vector<16x128xf32>
    %70 = vector.extract_strided_slice %3 {offsets = [64, 0], sizes = [16, 128], strides = [1, 1]} : vector<128x128xf32> to vector<16x128xf32>
    %71 = vector.extract_strided_slice %3 {offsets = [80, 0], sizes = [16, 128], strides = [1, 1]} : vector<128x128xf32> to vector<16x128xf32>
    %72 = arith.mulf %70, %71 : vector<16x128xf32>
    %73 = vector.extract_strided_slice %3 {offsets = [64, 0], sizes = [16, 128], strides = [1, 1]} : vector<128x128xf32> to vector<16x128xf32>
    %74 = vector.extract_strided_slice %3 {offsets = [96, 0], sizes = [16, 128], strides = [1, 1]} : vector<128x128xf32> to vector<16x128xf32>
    %75 = arith.mulf %73, %74 : vector<16x128xf32>
    %76 = vector.extract_strided_slice %3 {offsets = [64, 0], sizes = [16, 128], strides = [1, 1]} : vector<128x128xf32> to vector<16x128xf32>
    %77 = vector.extract_strided_slice %3 {offsets = [112, 0], sizes = [16, 128], strides = [1, 1]} : vector<128x128xf32> to vector<16x128xf32>
    %78 = arith.mulf %76, %77 : vector<16x128xf32>
    %79 = vector.extract_strided_slice %3 {offsets = [80, 0], sizes = [16, 128], strides = [1, 1]} : vector<128x128xf32> to vector<16x128xf32>
    %80 = vector.extract_strided_slice %3 {offsets = [96, 0], sizes = [16, 128], strides = [1, 1]} : vector<128x128xf32> to vector<16x128xf32>
    %81 = arith.mulf %79, %80 : vector<16x128xf32>
    %82 = vector.extract_strided_slice %3 {offsets = [80, 0], sizes = [16, 128], strides = [1, 1]} : vector<128x128xf32> to vector<16x128xf32>
    %83 = vector.extract_strided_slice %3 {offsets = [112, 0], sizes = [16, 128], strides = [1, 1]} : vector<128x128xf32> to vector<16x128xf32>
    %84 = arith.mulf %82, %83 : vector<16x128xf32>
    %85 = vector.extract_strided_slice %3 {offsets = [96, 0], sizes = [16, 128], strides = [1, 1]} : vector<128x128xf32> to vector<16x128xf32>
    %86 = vector.extract_strided_slice %3 {offsets = [112, 0], sizes = [16, 128], strides = [1, 1]} : vector<128x128xf32> to vector<16x128xf32>
    %87 = arith.mulf %85, %86 : vector<16x128xf32>
    %88 = tpu.concatenate %6, %9, %12, %15, %18, %21, %24, %27, %30, %33, %36, %39, %42, %45, %48, %51 in 1 : vector<16x128xf32>, vector<16x128xf32>, vector<16x128xf32>, vector<16x128xf32>, vector<16x128xf32>, vector<16x128xf32>, vector<16x128xf32>, vector<16x128xf32>, vector<16x128xf32>, vector<16x128xf32>, vector<16x128xf32>, vector<16x128xf32>, vector<16x128xf32>, vector<16x128xf32>, vector<16x128xf32>, vector<16x128xf32> -> vector<16x2048xf32>
    %89 = tpu.concatenate %54, %57, %60, %63, %66, %69, %72, %75, %78, %81, %84, %87 in 1 : vector<16x128xf32>, vector<16x128xf32>, vector<16x128xf32>, vector<16x128xf32>, vector<16x128xf32>, vector<16x128xf32>, vector<16x128xf32>, vector<16x128xf32>, vector<16x128xf32>, vector<16x128xf32>, vector<16x128xf32>, vector<16x128xf32> -> vector<16x1536xf32>
    %90 = tpu.concatenate %88, %89 in 1 : vector<16x2048xf32>, vector<16x1536xf32> -> vector<16x3584xf32>
    %c0_2 = arith.constant 0 : index
    %c0_3 = arith.constant 0 : index
    %91 = vector.load %arg3[%c0_2, %c0_3] : memref<9x16xf32, #tpu.memory_space<vmem>>, vector<9x16xf32>
    %cst = arith.constant dense<0.000000e+00> : vector<9x3584xf32>
    %92 = tpu.matmul %91, %90, %cst {dimension_numbers = #tpu.dot_dimension_numbers<[1], [0], [0], [1], [0, 0, 1, 1], [], []>, precision = #tpu.contract_precision<fp32>} : vector<9x16xf32>, vector<16x3584xf32>, vector<9x3584xf32> -> vector<9x3584xf32>
    %93 = vector.extract_strided_slice %92 {offsets = [0, 0], sizes = [8, 3584], strides = [1, 1]} : vector<9x3584xf32> to vector<8x3584xf32>
    %c0_4 = arith.constant 0 : index
    %c0_5 = arith.constant 0 : index
    %94 = vector.load %arg4[%c0_4, %c0_5] : memref<8x1xf32, #tpu.memory_space<vmem>>, vector<8x1xf32>
    %95 = vector.broadcast %94 : vector<8x1xf32> to vector<8x3584xf32>
    %96 = arith.addf %93, %95 : vector<8x3584xf32>
    %cst_6 = arith.constant 0.000000e+00 : f32
    %97 = vector.broadcast %cst_6 : f32 to vector<8x3584xf32>
    %98 = arith.maximumf %96, %97 : vector<8x3584xf32>
    %c0_7 = arith.constant 0 : index
    %c0_8 = arith.constant 0 : index
    %99 = vector.load %arg5[%c0_7, %c0_8] : memref<8x1xf32, #tpu.memory_space<vmem>>, vector<8x1xf32>
    %100 = vector.broadcast %99 : vector<8x1xf32> to vector<8x3584xf32>
    %101 = arith.mulf %98, %100 : vector<8x3584xf32>
    %cst_9 = arith.constant dense<0.000000e+00> : vector<3584xf32>
    %102 = vector.multi_reduction <add>, %101, %cst_9 [0] : vector<8x3584xf32> to vector<3584xf32>
    %103 = vector.shape_cast %102 : vector<3584xf32> to vector<1x3584xf32>
    %104 = vector.broadcast %0 : f32 to vector<1x3584xf32>
    %105 = arith.addf %103, %104 : vector<1x3584xf32>
    %106 = vector.extract_strided_slice %92 {offsets = [8, 0], sizes = [1, 3584], strides = [1, 1]} : vector<9x3584xf32> to vector<1x3584xf32>
    %107 = vector.extract_strided_slice %105 {offsets = [0, 0], sizes = [1, 128], strides = [1, 1]} : vector<1x3584xf32> to vector<1x128xf32>
    %108 = vector.extract_strided_slice %105 {offsets = [0, 128], sizes = [1, 128], strides = [1, 1]} : vector<1x3584xf32> to vector<1x128xf32>
    %109 = vector.extract_strided_slice %105 {offsets = [0, 256], sizes = [1, 128], strides = [1, 1]} : vector<1x3584xf32> to vector<1x128xf32>
    %110 = vector.extract_strided_slice %105 {offsets = [0, 384], sizes = [1, 128], strides = [1, 1]} : vector<1x3584xf32> to vector<1x128xf32>
    %111 = vector.extract_strided_slice %105 {offsets = [0, 512], sizes = [1, 128], strides = [1, 1]} : vector<1x3584xf32> to vector<1x128xf32>
    %112 = vector.extract_strided_slice %105 {offsets = [0, 640], sizes = [1, 128], strides = [1, 1]} : vector<1x3584xf32> to vector<1x128xf32>
    %113 = vector.extract_strided_slice %105 {offsets = [0, 768], sizes = [1, 128], strides = [1, 1]} : vector<1x3584xf32> to vector<1x128xf32>
    %114 = vector.extract_strided_slice %105 {offsets = [0, 896], sizes = [1, 128], strides = [1, 1]} : vector<1x3584xf32> to vector<1x128xf32>
    %115 = vector.extract_strided_slice %105 {offsets = [0, 1024], sizes = [1, 128], strides = [1, 1]} : vector<1x3584xf32> to vector<1x128xf32>
    %116 = vector.extract_strided_slice %105 {offsets = [0, 1152], sizes = [1, 128], strides = [1, 1]} : vector<1x3584xf32> to vector<1x128xf32>
    %117 = vector.extract_strided_slice %105 {offsets = [0, 1280], sizes = [1, 128], strides = [1, 1]} : vector<1x3584xf32> to vector<1x128xf32>
    %118 = vector.extract_strided_slice %105 {offsets = [0, 1408], sizes = [1, 128], strides = [1, 1]} : vector<1x3584xf32> to vector<1x128xf32>
    %119 = vector.extract_strided_slice %105 {offsets = [0, 1536], sizes = [1, 128], strides = [1, 1]} : vector<1x3584xf32> to vector<1x128xf32>
    %120 = vector.extract_strided_slice %105 {offsets = [0, 1664], sizes = [1, 128], strides = [1, 1]} : vector<1x3584xf32> to vector<1x128xf32>
    %121 = vector.extract_strided_slice %105 {offsets = [0, 1792], sizes = [1, 128], strides = [1, 1]} : vector<1x3584xf32> to vector<1x128xf32>
    %122 = vector.extract_strided_slice %105 {offsets = [0, 1920], sizes = [1, 128], strides = [1, 1]} : vector<1x3584xf32> to vector<1x128xf32>
    %123 = vector.extract_strided_slice %105 {offsets = [0, 2048], sizes = [1, 128], strides = [1, 1]} : vector<1x3584xf32> to vector<1x128xf32>
    %124 = vector.extract_strided_slice %105 {offsets = [0, 2176], sizes = [1, 128], strides = [1, 1]} : vector<1x3584xf32> to vector<1x128xf32>
    %125 = vector.extract_strided_slice %105 {offsets = [0, 2304], sizes = [1, 128], strides = [1, 1]} : vector<1x3584xf32> to vector<1x128xf32>
    %126 = vector.extract_strided_slice %105 {offsets = [0, 2432], sizes = [1, 128], strides = [1, 1]} : vector<1x3584xf32> to vector<1x128xf32>
    %127 = vector.extract_strided_slice %105 {offsets = [0, 2560], sizes = [1, 128], strides = [1, 1]} : vector<1x3584xf32> to vector<1x128xf32>
    %128 = vector.extract_strided_slice %105 {offsets = [0, 2688], sizes = [1, 128], strides = [1, 1]} : vector<1x3584xf32> to vector<1x128xf32>
    %129 = vector.extract_strided_slice %105 {offsets = [0, 2816], sizes = [1, 128], strides = [1, 1]} : vector<1x3584xf32> to vector<1x128xf32>
    %130 = vector.extract_strided_slice %105 {offsets = [0, 2944], sizes = [1, 128], strides = [1, 1]} : vector<1x3584xf32> to vector<1x128xf32>
    %131 = vector.extract_strided_slice %105 {offsets = [0, 3072], sizes = [1, 128], strides = [1, 1]} : vector<1x3584xf32> to vector<1x128xf32>
    %132 = vector.extract_strided_slice %105 {offsets = [0, 3200], sizes = [1, 128], strides = [1, 1]} : vector<1x3584xf32> to vector<1x128xf32>
    %133 = vector.extract_strided_slice %105 {offsets = [0, 3328], sizes = [1, 128], strides = [1, 1]} : vector<1x3584xf32> to vector<1x128xf32>
    %134 = vector.extract_strided_slice %105 {offsets = [0, 3456], sizes = [1, 128], strides = [1, 1]} : vector<1x3584xf32> to vector<1x128xf32>
    %135 = vector.extract_strided_slice %106 {offsets = [0, 0], sizes = [1, 128], strides = [1, 1]} : vector<1x3584xf32> to vector<1x128xf32>
    %136 = vector.extract_strided_slice %106 {offsets = [0, 128], sizes = [1, 128], strides = [1, 1]} : vector<1x3584xf32> to vector<1x128xf32>
    %137 = vector.extract_strided_slice %106 {offsets = [0, 256], sizes = [1, 128], strides = [1, 1]} : vector<1x3584xf32> to vector<1x128xf32>
    %138 = vector.extract_strided_slice %106 {offsets = [0, 384], sizes = [1, 128], strides = [1, 1]} : vector<1x3584xf32> to vector<1x128xf32>
    %139 = vector.extract_strided_slice %106 {offsets = [0, 512], sizes = [1, 128], strides = [1, 1]} : vector<1x3584xf32> to vector<1x128xf32>
    %140 = vector.extract_strided_slice %106 {offsets = [0, 640], sizes = [1, 128], strides = [1, 1]} : vector<1x3584xf32> to vector<1x128xf32>
    %141 = vector.extract_strided_slice %106 {offsets = [0, 768], sizes = [1, 128], strides = [1, 1]} : vector<1x3584xf32> to vector<1x128xf32>
    %142 = vector.extract_strided_slice %106 {offsets = [0, 896], sizes = [1, 128], strides = [1, 1]} : vector<1x3584xf32> to vector<1x128xf32>
    %143 = vector.extract_strided_slice %106 {offsets = [0, 1024], sizes = [1, 128], strides = [1, 1]} : vector<1x3584xf32> to vector<1x128xf32>
    %144 = vector.extract_strided_slice %106 {offsets = [0, 1152], sizes = [1, 128], strides = [1, 1]} : vector<1x3584xf32> to vector<1x128xf32>
    %145 = vector.extract_strided_slice %106 {offsets = [0, 1280], sizes = [1, 128], strides = [1, 1]} : vector<1x3584xf32> to vector<1x128xf32>
    %146 = vector.extract_strided_slice %106 {offsets = [0, 1408], sizes = [1, 128], strides = [1, 1]} : vector<1x3584xf32> to vector<1x128xf32>
    %147 = vector.extract_strided_slice %106 {offsets = [0, 1536], sizes = [1, 128], strides = [1, 1]} : vector<1x3584xf32> to vector<1x128xf32>
    %148 = vector.extract_strided_slice %106 {offsets = [0, 1664], sizes = [1, 128], strides = [1, 1]} : vector<1x3584xf32> to vector<1x128xf32>
    %149 = vector.extract_strided_slice %106 {offsets = [0, 1792], sizes = [1, 128], strides = [1, 1]} : vector<1x3584xf32> to vector<1x128xf32>
    %150 = vector.extract_strided_slice %106 {offsets = [0, 1920], sizes = [1, 128], strides = [1, 1]} : vector<1x3584xf32> to vector<1x128xf32>
    %151 = vector.extract_strided_slice %106 {offsets = [0, 2048], sizes = [1, 128], strides = [1, 1]} : vector<1x3584xf32> to vector<1x128xf32>
    %152 = vector.extract_strided_slice %106 {offsets = [0, 2176], sizes = [1, 128], strides = [1, 1]} : vector<1x3584xf32> to vector<1x128xf32>
    %153 = vector.extract_strided_slice %106 {offsets = [0, 2304], sizes = [1, 128], strides = [1, 1]} : vector<1x3584xf32> to vector<1x128xf32>
    %154 = vector.extract_strided_slice %106 {offsets = [0, 2432], sizes = [1, 128], strides = [1, 1]} : vector<1x3584xf32> to vector<1x128xf32>
    %155 = vector.extract_strided_slice %106 {offsets = [0, 2560], sizes = [1, 128], strides = [1, 1]} : vector<1x3584xf32> to vector<1x128xf32>
    %156 = vector.extract_strided_slice %106 {offsets = [0, 2688], sizes = [1, 128], strides = [1, 1]} : vector<1x3584xf32> to vector<1x128xf32>
    %157 = vector.extract_strided_slice %106 {offsets = [0, 2816], sizes = [1, 128], strides = [1, 1]} : vector<1x3584xf32> to vector<1x128xf32>
    %158 = vector.extract_strided_slice %106 {offsets = [0, 2944], sizes = [1, 128], strides = [1, 1]} : vector<1x3584xf32> to vector<1x128xf32>
    %159 = vector.extract_strided_slice %106 {offsets = [0, 3072], sizes = [1, 128], strides = [1, 1]} : vector<1x3584xf32> to vector<1x128xf32>
    %160 = vector.extract_strided_slice %106 {offsets = [0, 3200], sizes = [1, 128], strides = [1, 1]} : vector<1x3584xf32> to vector<1x128xf32>
    %161 = vector.extract_strided_slice %106 {offsets = [0, 3328], sizes = [1, 128], strides = [1, 1]} : vector<1x3584xf32> to vector<1x128xf32>
    %162 = vector.extract_strided_slice %106 {offsets = [0, 3456], sizes = [1, 128], strides = [1, 1]} : vector<1x3584xf32> to vector<1x128xf32>
    %163 = arith.maximumf %107, %108 : vector<1x128xf32>
    %164 = arith.maximumf %163, %109 : vector<1x128xf32>
    %165 = arith.maximumf %164, %110 : vector<1x128xf32>
    %166 = arith.maximumf %165, %111 : vector<1x128xf32>
    %167 = arith.maximumf %166, %112 : vector<1x128xf32>
    %168 = arith.maximumf %167, %113 : vector<1x128xf32>
    %169 = arith.maximumf %168, %114 : vector<1x128xf32>
    %170 = arith.maximumf %169, %115 : vector<1x128xf32>
    %171 = arith.maximumf %170, %116 : vector<1x128xf32>
    %172 = arith.maximumf %171, %117 : vector<1x128xf32>
    %173 = arith.maximumf %172, %118 : vector<1x128xf32>
    %174 = arith.maximumf %173, %119 : vector<1x128xf32>
    %175 = arith.maximumf %174, %120 : vector<1x128xf32>
    %176 = arith.maximumf %175, %121 : vector<1x128xf32>
    %177 = arith.maximumf %176, %122 : vector<1x128xf32>
    %178 = arith.maximumf %177, %123 : vector<1x128xf32>
    %179 = arith.maximumf %178, %124 : vector<1x128xf32>
    %180 = arith.maximumf %179, %125 : vector<1x128xf32>
    %181 = arith.maximumf %180, %126 : vector<1x128xf32>
    %182 = arith.maximumf %181, %127 : vector<1x128xf32>
    %183 = arith.maximumf %182, %128 : vector<1x128xf32>
    %184 = arith.maximumf %183, %129 : vector<1x128xf32>
    %185 = arith.maximumf %184, %130 : vector<1x128xf32>
    %186 = arith.maximumf %185, %131 : vector<1x128xf32>
    %187 = arith.maximumf %186, %132 : vector<1x128xf32>
    %188 = arith.maximumf %187, %133 : vector<1x128xf32>
    %189 = arith.maximumf %188, %134 : vector<1x128xf32>
    %cst_10 = arith.constant 0.000000e+00 : f32
    %190 = vector.broadcast %cst_10 : f32 to vector<1x128xf32>
    %cst_11 = arith.constant 0.000000e+00 : f32
    %191 = vector.broadcast %cst_11 : f32 to vector<1x128xf32>
    %192 = arith.subf %107, %189 : vector<1x128xf32>
    %193 = math.exp %192 : vector<1x128xf32>
    %194 = arith.addf %191, %193 : vector<1x128xf32>
    %195 = arith.mulf %193, %135 : vector<1x128xf32>
    %196 = arith.addf %190, %195 : vector<1x128xf32>
    %197 = arith.subf %108, %189 : vector<1x128xf32>
    %198 = math.exp %197 : vector<1x128xf32>
    %199 = arith.addf %194, %198 : vector<1x128xf32>
    %200 = arith.mulf %198, %136 : vector<1x128xf32>
    %201 = arith.addf %196, %200 : vector<1x128xf32>
    %202 = arith.subf %109, %189 : vector<1x128xf32>
    %203 = math.exp %202 : vector<1x128xf32>
    %204 = arith.addf %199, %203 : vector<1x128xf32>
    %205 = arith.mulf %203, %137 : vector<1x128xf32>
    %206 = arith.addf %201, %205 : vector<1x128xf32>
    %207 = arith.subf %110, %189 : vector<1x128xf32>
    %208 = math.exp %207 : vector<1x128xf32>
    %209 = arith.addf %204, %208 : vector<1x128xf32>
    %210 = arith.mulf %208, %138 : vector<1x128xf32>
    %211 = arith.addf %206, %210 : vector<1x128xf32>
    %212 = arith.subf %111, %189 : vector<1x128xf32>
    %213 = math.exp %212 : vector<1x128xf32>
    %214 = arith.addf %209, %213 : vector<1x128xf32>
    %215 = arith.mulf %213, %139 : vector<1x128xf32>
    %216 = arith.addf %211, %215 : vector<1x128xf32>
    %217 = arith.subf %112, %189 : vector<1x128xf32>
    %218 = math.exp %217 : vector<1x128xf32>
    %219 = arith.addf %214, %218 : vector<1x128xf32>
    %220 = arith.mulf %218, %140 : vector<1x128xf32>
    %221 = arith.addf %216, %220 : vector<1x128xf32>
    %222 = arith.subf %113, %189 : vector<1x128xf32>
    %223 = math.exp %222 : vector<1x128xf32>
    %224 = arith.addf %219, %223 : vector<1x128xf32>
    %225 = arith.mulf %223, %141 : vector<1x128xf32>
    %226 = arith.addf %221, %225 : vector<1x128xf32>
    %227 = arith.subf %114, %189 : vector<1x128xf32>
    %228 = math.exp %227 : vector<1x128xf32>
    %229 = arith.addf %224, %228 : vector<1x128xf32>
    %230 = arith.mulf %228, %142 : vector<1x128xf32>
    %231 = arith.addf %226, %230 : vector<1x128xf32>
    %232 = arith.subf %115, %189 : vector<1x128xf32>
    %233 = math.exp %232 : vector<1x128xf32>
    %234 = arith.addf %229, %233 : vector<1x128xf32>
    %235 = arith.mulf %233, %143 : vector<1x128xf32>
    %236 = arith.addf %231, %235 : vector<1x128xf32>
    %237 = arith.subf %116, %189 : vector<1x128xf32>
    %238 = math.exp %237 : vector<1x128xf32>
    %239 = arith.addf %234, %238 : vector<1x128xf32>
    %240 = arith.mulf %238, %144 : vector<1x128xf32>
    %241 = arith.addf %236, %240 : vector<1x128xf32>
    %242 = arith.subf %117, %189 : vector<1x128xf32>
    %243 = math.exp %242 : vector<1x128xf32>
    %244 = arith.addf %239, %243 : vector<1x128xf32>
    %245 = arith.mulf %243, %145 : vector<1x128xf32>
    %246 = arith.addf %241, %245 : vector<1x128xf32>
    %247 = arith.subf %118, %189 : vector<1x128xf32>
    %248 = math.exp %247 : vector<1x128xf32>
    %249 = arith.addf %244, %248 : vector<1x128xf32>
    %250 = arith.mulf %248, %146 : vector<1x128xf32>
    %251 = arith.addf %246, %250 : vector<1x128xf32>
    %252 = arith.subf %119, %189 : vector<1x128xf32>
    %253 = math.exp %252 : vector<1x128xf32>
    %254 = arith.addf %249, %253 : vector<1x128xf32>
    %255 = arith.mulf %253, %147 : vector<1x128xf32>
    %256 = arith.addf %251, %255 : vector<1x128xf32>
    %257 = arith.subf %120, %189 : vector<1x128xf32>
    %258 = math.exp %257 : vector<1x128xf32>
    %259 = arith.addf %254, %258 : vector<1x128xf32>
    %260 = arith.mulf %258, %148 : vector<1x128xf32>
    %261 = arith.addf %256, %260 : vector<1x128xf32>
    %262 = arith.subf %121, %189 : vector<1x128xf32>
    %263 = math.exp %262 : vector<1x128xf32>
    %264 = arith.addf %259, %263 : vector<1x128xf32>
    %265 = arith.mulf %263, %149 : vector<1x128xf32>
    %266 = arith.addf %261, %265 : vector<1x128xf32>
    %267 = arith.subf %122, %189 : vector<1x128xf32>
    %268 = math.exp %267 : vector<1x128xf32>
    %269 = arith.addf %264, %268 : vector<1x128xf32>
    %270 = arith.mulf %268, %150 : vector<1x128xf32>
    %271 = arith.addf %266, %270 : vector<1x128xf32>
    %272 = arith.subf %123, %189 : vector<1x128xf32>
    %273 = math.exp %272 : vector<1x128xf32>
    %274 = arith.addf %269, %273 : vector<1x128xf32>
    %275 = arith.mulf %273, %151 : vector<1x128xf32>
    %276 = arith.addf %271, %275 : vector<1x128xf32>
    %277 = arith.subf %124, %189 : vector<1x128xf32>
    %278 = math.exp %277 : vector<1x128xf32>
    %279 = arith.addf %274, %278 : vector<1x128xf32>
    %280 = arith.mulf %278, %152 : vector<1x128xf32>
    %281 = arith.addf %276, %280 : vector<1x128xf32>
    %282 = arith.subf %125, %189 : vector<1x128xf32>
    %283 = math.exp %282 : vector<1x128xf32>
    %284 = arith.addf %279, %283 : vector<1x128xf32>
    %285 = arith.mulf %283, %153 : vector<1x128xf32>
    %286 = arith.addf %281, %285 : vector<1x128xf32>
    %287 = arith.subf %126, %189 : vector<1x128xf32>
    %288 = math.exp %287 : vector<1x128xf32>
    %289 = arith.addf %284, %288 : vector<1x128xf32>
    %290 = arith.mulf %288, %154 : vector<1x128xf32>
    %291 = arith.addf %286, %290 : vector<1x128xf32>
    %292 = arith.subf %127, %189 : vector<1x128xf32>
    %293 = math.exp %292 : vector<1x128xf32>
    %294 = arith.addf %289, %293 : vector<1x128xf32>
    %295 = arith.mulf %293, %155 : vector<1x128xf32>
    %296 = arith.addf %291, %295 : vector<1x128xf32>
    %297 = arith.subf %128, %189 : vector<1x128xf32>
    %298 = math.exp %297 : vector<1x128xf32>
    %299 = arith.addf %294, %298 : vector<1x128xf32>
    %300 = arith.mulf %298, %156 : vector<1x128xf32>
    %301 = arith.addf %296, %300 : vector<1x128xf32>
    %302 = arith.subf %129, %189 : vector<1x128xf32>
    %303 = math.exp %302 : vector<1x128xf32>
    %304 = arith.addf %299, %303 : vector<1x128xf32>
    %305 = arith.mulf %303, %157 : vector<1x128xf32>
    %306 = arith.addf %301, %305 : vector<1x128xf32>
    %307 = arith.subf %130, %189 : vector<1x128xf32>
    %308 = math.exp %307 : vector<1x128xf32>
    %309 = arith.addf %304, %308 : vector<1x128xf32>
    %310 = arith.mulf %308, %158 : vector<1x128xf32>
    %311 = arith.addf %306, %310 : vector<1x128xf32>
    %312 = arith.subf %131, %189 : vector<1x128xf32>
    %313 = math.exp %312 : vector<1x128xf32>
    %314 = arith.addf %309, %313 : vector<1x128xf32>
    %315 = arith.mulf %313, %159 : vector<1x128xf32>
    %316 = arith.addf %311, %315 : vector<1x128xf32>
    %317 = arith.subf %132, %189 : vector<1x128xf32>
    %318 = math.exp %317 : vector<1x128xf32>
    %319 = arith.addf %314, %318 : vector<1x128xf32>
    %320 = arith.mulf %318, %160 : vector<1x128xf32>
    %321 = arith.addf %316, %320 : vector<1x128xf32>
    %322 = arith.subf %133, %189 : vector<1x128xf32>
    %323 = math.exp %322 : vector<1x128xf32>
    %324 = arith.addf %319, %323 : vector<1x128xf32>
    %325 = arith.mulf %323, %161 : vector<1x128xf32>
    %326 = arith.addf %321, %325 : vector<1x128xf32>
    %327 = arith.subf %134, %189 : vector<1x128xf32>
    %328 = math.exp %327 : vector<1x128xf32>
    %329 = arith.addf %324, %328 : vector<1x128xf32>
    %330 = arith.mulf %328, %162 : vector<1x128xf32>
    %331 = arith.addf %326, %330 : vector<1x128xf32>
    %332 = tpu.reciprocal %329 : vector<1x128xf32> -> vector<1x128xf32>
    %333 = arith.mulf %331, %332 : vector<1x128xf32>
    %334 = vector.broadcast %1 : f32 to vector<1x128xf32>
    %335 = arith.addf %333, %334 : vector<1x128xf32>
    %c0_12 = arith.constant 0 : index
    %c0_13 = arith.constant 0 : index
    %336 = vector.load %arg2[%c0_12, %c0_13] : memref<8x128xf32, #tpu.memory_space<vmem>>, vector<8x128xf32>
    %cst_14 = arith.constant dense<0.000000e+00> : vector<128xf32>
    %337 = vector.multi_reduction <add>, %336, %cst_14 [0] : vector<8x128xf32> to vector<128xf32>
    %338 = vector.shape_cast %337 : vector<128xf32> to vector<1x128xf32>
    %339 = vector.broadcast %2 : f32 to vector<1x128xf32>
    %340 = arith.addf %338, %339 : vector<1x128xf32>
    %341 = arith.addf %340, %335 : vector<1x128xf32>
    %342 = arith.negf %341 : vector<1x128xf32>
    %343 = math.exp %342 : vector<1x128xf32>
    %cst_15 = arith.constant 1.000000e+00 : f32
    %344 = vector.broadcast %cst_15 : f32 to vector<1x128xf32>
    %345 = arith.addf %344, %343 : vector<1x128xf32>
    %346 = arith.divf %344, %345 : vector<1x128xf32>
    %c0_16 = arith.constant 0 : index
    %c0_17 = arith.constant 0 : index
    %347 = vector.load %arg7[%c0_16, %c0_17] : memref<1x128xf32, #tpu.memory_space<vmem>>, vector<1x128xf32>
    tpu.vector_store %arg7[%c0_16, %c0_17], %346 {strides = array<i32>} : memref<1x128xf32, #tpu.memory_space<vmem>>, vector<1x128xf32>,
    return
  }
  func.func @transform_0(%arg0: i32) -> (i32, i32) {
    %c0_i32 = arith.constant 0 : i32
    %c0_i32_0 = arith.constant 0 : i32
    return %c0_i32, %arg0 : i32, i32
  }
  func.func @transform_1(%arg0: i32) -> (i32, i32) {
    %c0_i32 = arith.constant 0 : i32
    %c0_i32_0 = arith.constant 0 : i32
    return %c0_i32, %arg0 : i32, i32
  }
  func.func @transform_2(%arg0: i32) -> (i32, i32) {
    %c0_i32 = arith.constant 0 : i32
    %c0_i32_0 = arith.constant 0 : i32
    %c0_i32_1 = arith.constant 0 : i32
    return %c0_i32, %c0_i32_0 : i32, i32
  }
  func.func @transform_3(%arg0: i32) -> (i32, i32) {
    %c0_i32 = arith.constant 0 : i32
    %c0_i32_0 = arith.constant 0 : i32
    %c0_i32_1 = arith.constant 0 : i32
    return %c0_i32, %c0_i32_0 : i32, i32
  }
  func.func @transform_4(%arg0: i32) -> (i32, i32) {
    %c0_i32 = arith.constant 0 : i32
    %c0_i32_0 = arith.constant 0 : i32
    %c0_i32_1 = arith.constant 0 : i32
    return %c0_i32, %c0_i32_0 : i32, i32
  }
  func.func @transform_5(%arg0: i32) -> i32 {
    %c0_i32 = arith.constant 0 : i32
    %c0_i32_0 = arith.constant 0 : i32
    return %c0_i32 : i32
  }
  func.func @transform_6(%arg0: i32) -> (i32, i32) {
    %c0_i32 = arith.constant 0 : i32
    %c0_i32_0 = arith.constant 0 : i32
    return %c0_i32, %arg0 : i32, i32
  }
}

</mosaic_0001>

<bundles_post_ra>
// kernel: tpu_custom_call.1
= control target key start
LH: loop header
LB: loop body
LE: loop exit
PB: predicated region body
PF: predicated region fallthrough
CT: control target
= control target key end

     0   :  { %s8481_s0 = inlined_call_operand.hbm [shape: f32[128,256], index: 0, kind: input, shape index: {}]   ;;  %s8482_s1 = inlined_call_operand.vmem [shape: f32[8,256], index: 1, kind: input, shape index: {}]   ;;  %s8483_s2 = inlined_call_operand.hbm [shape: f32[9,16], index: 2, kind: input, shape index: {}]   ;;  %s8484_s3 = inlined_call_operand.vmem [shape: f32[8,1], index: 3, kind: input, shape index: {}]   ;;  %s8485_s4 = inlined_call_operand.vmem [shape: f32[8,1], index: 4, kind: input, shape index: {}]   ;;  %s8486_s5 = inlined_call_operand.vmem [shape: f32[3], index: 5, kind: input, shape index: {}]   ;;  %s8487_s6 = inlined_call_operand.hbm [shape: f32[1,256], index: 6, kind: output, shape index: {}]  }
   0x1   :  { %8524 = sst [smem:[#allocation53_spill]] %s8483_s2 }
   0x2   :  { %11 = vsyncpa [#allocation3], 0 }
   0x3   :  { %13 = vsyncpa [#allocation3 + $0x1], 0 }
   0x4   :  { %14 = vsyncpa [#allocation7], 0 }
   0x5   :  { %15 = vsyncpa [#allocation5], 0 }
   0x6   :  { %16 = vsyncpa [#allocation4], 0 }
   0x7   :  { %18 = vsyncpa [#allocation4 + $0x1], 0  ;;  %s6737_s21 = smov 0   ;;  %s6739_s22 = smov 0  }
   0x8   :  { %s6741_s23 = smov 0   ;;  %s6743_s24 = smov 0  }
   0x9 LB: > { %s6758_s25 = sadd.s32 4294967295, %s6694_s24   ;;  %s6370_s26 = sadd.s32 4294967294, %s6694_s24   ;;  %s6694_s24 = sphi %s6743_s24, %s8633_s24   ;;  %s6690_s23 = sphi %s6741_s23, %s8632_s23   ;;  %s6686_s22 = sphi %s6739_s22, %s8631_s22   ;;  %s6682_s21 = sphi %s6737_s21, %s8630_s21  }
   0xa   : > { %p44_p0 = scmp.ne.s32.totalorder %s6686_s22, %s6682_s21  ;;  %p45_p1 = scmp.eq.s32.totalorder %s6758_s25, 0 }
   0xb   : > { %p178_p2 = scmp.eq.s32.totalorder %s6758_s25, 1  ;;  %p184_p3 = scmp.eq.s32.totalorder %s6370_s26, 1 }
   0xc   : > { %p6767_p4 = por %p45_p1, %p44_p0  ;;  %p6371_p5 = scmp.ge.s32.totalorder %s6694_s24, 1 }
   0xd   : > { %p6772_p6 = por %p184_p3, %p44_p0  ;;  %p191_p7 = scmp.lt.s32.totalorder %s6694_s24, 3 }
   0xe   : > { %s8527_s2 = sld [smem:[#allocation53_spill]]  ;;  %s6696_s9 = smov [#allocation6]  }
   0xf   : > { %p6780_p8 = pnand %p6371_p5, %p191_p7  ;;  %s204_s10 = sshll.u32 %s6696_s9, 4  ;;  %s205_s10 = int_to_ptr.vmem [resolvable:$true] %s204_s10 }
  0x10   : > { %s223_s13 = sshll.u32 %s8486_s5, 4  ;;  %s8488_s14 = smov 128   ;;  %s224_s13 = int_to_ptr.vmem [resolvable:$true] %s223_s13 }
  0x11   : > { %p6399_p9 = pneg %p6780_p8  ;;  %s8489_s15 = smov 8  }
  0x12   : > { %s6699_s16 = smov [#allocation8]   ;;  %s6796_s17 = sadd.s32 1, %s6694_s24  }
  0x13   : > { %p6400_p10 = pnand %p6399_p9, %p45_p1  ;;  %s28_s18 = ssub.s32 %s6694_s24, %s6796_s17 }
  0x14   : > { %s202_s7 = sshll.u32 %s8527_s2, 4  ;;  %p29_p12 = scmp.eq.s32.totalorder %s28_s18, 0  ;;  %s203_s7 = int_to_ptr.hbm [resolvable:$true] %s202_s7 }
  0x15   : > { %6402 = dma.hbm_to_vmem [thread:$0]  (!%p6400_p10), %s203_s7, 256, %s205_s10, [#allocation7], %s8488_s14, %s8488_s14, %s8489_s15  }
  0x16   : > { %6405 = dma.vmem_to_smem (!%p6400_p10), %s224_s13, 16, %s6699_s16, [#allocation5]  }
  0x17   : > { %s31_s19 = sadd.s32 1, %s6690_s23  ;;  %p38_p13 = scmp.ne.s32.totalorder %s6690_s23, %s6686_s22 }
  0x18   : > { %p39_p0 = scmp.eq.s32.totalorder %s6694_s24, 0  ;;  %p6416_p7 = scmp.lt.s32.totalorder %s6694_s24, 2 }
  0x19   : > { %s6805_s20 = scalar_select %p29_p12, %s6690_s23, %s31_s19  }
  0x1a   : > { %p40_p3 = por %p39_p0, %p38_p13  ;;  %p6809_p5 = por %p178_p2, %p38_p13 }
  0x1b   : > { %s234_s29 = sand.u32 1, %s6690_s23   ;;  %s6376_s7 = sshll.u32 %s6694_s24, 3 }
  0x1c   : > { %s6375_s30 = sshll.u32 %s234_s29, 7  ;;  %s242_s11 = scalar_lea.hbm %s8481_s0, %s6376_s7 }
  0x1d   : > { %s238_s12 = scalar_lea.vmem [#allocation2], %s6375_s30  ;;  %s243_s16 = sshll.u32 %s242_s11, 4  ;;  %s244_s16 = int_to_ptr.hbm [resolvable:$true] %s243_s16 }
  0x1e   : > { %s245_s13 = sshll.u32 %s238_s12, 4  ;;  %p6819_p9 = pnand %p6416_p7, %p40_p3  ;;  %s246_s13 = int_to_ptr.vmem [resolvable:$true] %s245_s13 }
  0x1f   : > { %s235_s19 = scalar_lea.sflag [#allocation3], %s234_s29  ;;  %s6590_s14 = sshra.s32 %s244_s16, 4  ;;  %s6591_s14 = int_to_ptr.hbm [resolvable:$true] %s6590_s14 }
  0x20   : > { %s6592_s15 = scalar_lea.hbm %s6591_s14, 128  ;;  %p6594_p10 = pneg %p6819_p9 }
  0x21   : > { %p6593_p2 = scmp.ne.s32.totalorder %s6591_s14, %s6592_s15  ;;  %s6597_s9 = scalar_lea.hbm %s8481_s0, 256 }
  0x22   : > { %p6598_p0 = scmp.lt.s32.totalorder %s6591_s14, %s8481_s0  ;;  %p6599_p3 = scmp.lt.s32.totalorder %s6597_s9, %s6592_s15 }
  0x23   : > { %p6595_p12 = pnand %p6594_p10, %p6593_p2 }
  0x24   : > { %p6600_p7 = por %p6599_p3, %p6598_p0 }
  0x25   : > { %p6596_p13 = pneg %p6595_p12 }
  0x27   : > { %p6601_p11 = pnand %p6600_p7, %p6596_p13 }
  0x29   : > { %6604 = shalt.err (!%p6601_p11)
}
  0x2a   : > { %s6700_s29 = smov 256   ;;  %s8531_s12 = smov 8  }
  0x2b   : > { %s8532_s2 = smov 128   ;;  %264 = sbr.rel (%p6780_p8) target bundleno = 1004 (0x3ec), region = 44 }
  0x2c   : > { %6409 = dma.hbm_to_vmem [thread:$0]  (!%p6819_p9), %s244_s16, 2048, %s246_s13, %s235_s19, %s6700_s29, %s8532_s2, %s8531_s12  }
  0x30   : > { %s6838_s7 = sand.u32 1, %s6686_s22  }
  0x31   : > { %s6378_s14 = sshll.u32 %s6838_s7, 7  ;;  %s267_s15 = scalar_lea.sflag [#allocation3], %s6838_s7 }
  0x32   : > { %s6842_s30 = scalar_lea.vmem [#allocation2], %s6378_s14 }
  0x33   : > { %6665 = dma.done.wait (%p6767_p4), %s267_s15, 2048  }
  0x34   : > { %6667 = vsyncadd (%p6767_p4), %s267_s15, 4294965248 }
  0x35   : > { %6669 = dma.done.wait (%p45_p1), [#allocation7], 256  }
  0x36   : > { %6671 = vsyncadd (%p45_p1), [#allocation7], 4294967040 }
  0x37   : > { %6673 = dma.done.wait (%p45_p1), [#allocation5], 16  }
  0x38   : > { %6675 = vsyncadd (%p45_p1), [#allocation5], 4294967280 }
  0x39   : > { %286 = sfence }
  0x3a   : > { %v6857_v0 = vld [vmem:[%s6842_s30 + $0x8] sm:$0xff]  ;;  %v6860_v1 = vld [vmem:[%s6842_s30 + $0x18] sm:$0xff]  ;;  %v6863_v2 = vld [vmem:[%s6842_s30] sm:$0xff]  ;;  %vm395_vm0 = vcmask 130048   ;;  %v6701_v25 = vmov 0   ;;  %s318_s16 = sld [smem:[#allocation8]] }
  0x3b   : > { %v338_v3 = vmul.f32 %v6860_v1, %v6857_v0  ;;  %v6868_v4 = vld [vmem:[%s6842_s30 + $0x10] sm:$0xff]  ;;  %v393_v5 = vld [vmem:[#allocation6] sm:$0xff]  ;;  %v6871_v6 = vld [vmem:[%s6842_s30 + $0x28] sm:$0xff]  ;;  %6458 = vset.pattern.permute.xlu0 %v6701_v25  ;;  %p314_p1 = scmp.lt.s32.totalorder %s6758_s25, 1  ;;  %s6383_s29 = sld [smem:[#allocation8 + $0x2]] }
  0x3c   : > { %v337_v7 = vmul.f32 %v6868_v4, %v6863_v2  ;;  %v397_v8 = vsel %vm395_vm0, %v393_v5, 0  ;;  %v340_v9 = vmul.f32 %v6871_v6, %v6857_v0  ;;  %v394_v10 = vld [vmem:[#allocation6 + $0x8] sm:$0x1]  ;;  %v6878_v11 = vld [vmem:[%s6842_s30 + $0x20] sm:$0xff]  ;;  %v6911_v45 = vld [vmem:[%s6842_s30 + $0x38] sm:$0xff]  ;;  %s6382_s12 = sld [smem:[#allocation8 + $0x1]] }
  0x3d   : > { %v416_v12 = vand.u32 4294901760, %v338_v3  ;;  %v6880_v13 = vand.u32 4294901760, %v397_v8  ;;  %v400_v14 = vsel %vm395_vm0, %v394_v10, 0  ;;  %v339_v15 = vmul.f32 %v6878_v11, %v6863_v2  ;;  %v5722_v31 = vld [vmem:[%s8484_s3] sm:$0xff]  ;;  %v6924_v50 = vld [vmem:[%s6842_s30 + $0x30] sm:$0xff]  ;;  %v6938_v60 = vld [vmem:[%s6842_s30 + $0x48] sm:$0xff] }
  0x3e   : > { %v418_v16 = vand.u32 4294901760, %v337_v7  ;;  %v606_v17 = vand.u32 4294901760, %v340_v9  ;;  %v6884_v18 = vand.u32 4294901760, %v400_v14  ;;  %5725 = vperm.xlu0 %6458, %v5722_v31   ;;  %v342_v46 = vmul.f32 %v6911_v45, %v6857_v0  ;;  %v5784_v51 = vld [vmem:[%s8485_s4] sm:$0xff]  ;;  %v6974_v25 = vld [vmem:[%s6842_s30 + $0x50] sm:$0xff]  ;;  %s315_s18 = scalar_select %p314_p1, %s6758_s25, 1 }
  0x3f   : > { %417 = vmatpush.msra.mxu0 %v416_v12  ;;  %v452_v19 = vsub.f32 %v338_v3, %v416_v12  ;;  %518 = vmatpush.msra.mxu3 %v416_v12  ;;  %v6887_v20 = vsub.f32 %v397_v8, %v6880_v13  ;;  %v608_v21 = vand.u32 4294901760, %v339_v15  ;;  %v341_v52 = vmul.f32 %v6924_v50, %v6863_v2  ;;  %v6944_v63 = vld [vmem:[%s6842_s30 + $0x40] sm:$0xff]  ;;  %s313_s2 = scalar_lea.vmem [#allocation9], %s6838_s7  ;;  %s6640_s9 = scalar_lea.hbm %s8487_s6, 2 }
  0x40   : > { %v458_v22 = vsub.f32 %v337_v7, %v418_v16  ;;  %v642_v23 = vsub.f32 %v340_v9, %v606_v17  ;;  %v6890_v24 = vsub.f32 %v400_v14, %v6884_v18  ;;  %v6916_v47 = vand.u32 4294901760, %v342_v46  ;;  %s6381_s19 = sshll.u32 %s315_s18, 3  ;;  %s6268_s27 = sshll.u32 %s313_s2, 4  ;;  %s6269_s27 = int_to_ptr.vmem [resolvable:$true] %s6268_s27 }
  0x41   : > { %488 = vmatpush.msra.mxu2 %v452_v19  ;;  %419 = vmatpush.msra.mxu0 %v418_v16  ;;  %v6893_v26 = vand.u32 4294901760, %v6887_v20  ;;  %v453_v27 = vand.u32 4294901760, %v452_v19  ;;  %v648_v28 = vsub.f32 %v339_v15, %v608_v21  ;;  %v798_v54 = vand.u32 4294901760, %v341_v52  ;;  %s317_s11 = scalar_lea.vmem %s8482_s1, %s6381_s19 }
  0x42   : > { %520 = vmatpush.msra.mxu3 %v418_v16  ;;  %v643_v29 = vand.u32 4294901760, %v642_v23  ;;  %v459_v30 = vand.u32 4294901760, %v458_v22  ;;  %v6902_v34 = vand.u32 4294901760, %v6890_v24  ;;  %v832_v49 = vsub.f32 %v342_v46, %v6916_v47 }
  0x43   : > { %491 = vmatpush.msra.mxu2 %v458_v22  ;;  %v423_v32 = vsub.f32 %v6887_v20, %v6893_v26  ;;  %524 = vmatmul.f32.vlgmr.msra.gmra.mxu3 %v6893_v26  ;;  %v454_v33 = vsub.f32 %v452_v19, %v453_v27  ;;  %v649_v35 = vand.u32 4294901760, %v648_v28  ;;  %v838_v55 = vsub.f32 %v341_v52, %v798_v54  ;;  %v6966_v19 = vld [vmem:[%s6842_s30 + $0x58] sm:$0xff] }
  0x44   : > { %494 = vmatmul.f32.vlgmr.msra.gmra.mxu2 %v6887_v20  ;;  %551 = vmatpush.msrb.mxu0 %v453_v27  ;;  %v644_v36 = vsub.f32 %v642_v23, %v643_v29  ;;  %v460_v37 = vsub.f32 %v458_v22, %v459_v30  ;;  %v431_v43 = vsub.f32 %v6890_v24, %v6902_v34  ;;  %v833_v53 = vand.u32 4294901760, %v832_v49 }
  0x45   : > { %v6905_v38 = vand.u32 4294901760, %v423_v32  ;;  %607 = vmatpush.msrb.mxu2 %v606_v17  ;;  %v455_v39 = vand.u32 4294901760, %v454_v33  ;;  %v650_v40 = vsub.f32 %v648_v28, %v649_v35  ;;  %v839_v57 = vand.u32 4294901760, %v838_v55 }
  0x46   : > { %v645_v41 = vand.u32 4294901760, %v644_v36  ;;  %v461_v42 = vand.u32 4294901760, %v460_v37  ;;  %555 = vmatpush.msrb.mxu0 %v459_v30  ;;  %v6918_v48 = vand.u32 4294901760, %v431_v43  ;;  %5787 = vperm.xlu0 %6458, %v5784_v51   ;;  %v834_v56 = vsub.f32 %v832_v49, %v833_v53  ;;  %v6984_v36 = vld [vmem:[%s6842_s30 + $0x68] sm:$0xff] }
  0x47   : > { %425 = vmatmul.f32.vlgmr.msra.gmra.mxu0 %v6905_v38  ;;  %456 = vmatpush.msra.mxu1 %v455_v39  ;;  %v651_v44 = vand.u32 4294901760, %v650_v40  ;;  %v840_v58 = vsub.f32 %v838_v55, %v839_v57  ;;  %v344_v61 = vmul.f32 %v6938_v60, %v6857_v0  ;;  %v343_v5 = vmul.f32 %v6944_v63, %v6863_v2  ;;  %v6989_v40 = vld [vmem:[%s6842_s30 + $0x60] sm:$0xff] }
  0x48   : > { %646 = vmatpush.msrb.mxu3 %v645_v41  ;;  %609 = vmatpush.msrb.mxu2 %v608_v21  ;;  %v835_v59 = vand.u32 4294901760, %v834_v56  ;;  %v345_v27 = vmul.f32 %v6974_v25, %v6863_v2  ;;  %v348_v37 = vmul.f32 %v6984_v36, %v6857_v0 }
  0x49   : > { %462 = vmatpush.msra.mxu1 %v461_v42  ;;  %678 = vmatpush.msra.mxu0 %v642_v23  ;;  %v841_v62 = vand.u32 4294901760, %v840_v58  ;;  %v986_v3 = vand.u32 4294901760, %v344_v61  ;;  %v988_v8 = vand.u32 4294901760, %v343_v5  ;;  %v347_v42 = vmul.f32 %v6989_v40, %v6863_v2 }
  0x4a   : > { %741 = vmatpush.msra.mxu2 %v643_v29  ;;  %464 = vmatmul.f32.vlgmr.msra.gmra.mxu1 %v6880_v13  ;;  %v1178_v29 = vand.u32 4294901760, %v345_v27  ;;  %v1366_v41 = vand.u32 4294901760, %v348_v37 }
  0x4b   : > { %652 = vmatpush.msrb.mxu3 %v651_v44  ;;  %580 = vmatpush.msrb.mxu1 %v416_v12  ;;  %v1022_v7 = vsub.f32 %v344_v61, %v986_v3  ;;  %v1028_v10 = vsub.f32 %v343_v5, %v988_v8  ;;  %v1368_v44 = vand.u32 4294901760, %v347_v42 }
  0x4c   : > { %530 = vmatmul.f32.gmra.mxu3 %v6902_v34  ;;  %499 = vmatmul.f32.gmra.mxu2 %v6890_v24  ;;  %v1218_v30 = vsub.f32 %v345_v27, %v1178_v29  ;;  %v1402_v43 = vsub.f32 %v348_v37, %v1366_v41 }
  0x4d   : > { %582 = vmatpush.msrb.mxu1 %v418_v16  ;;  %770 = vmatpush.msra.mxu3 %v606_v17  ;;  %v1023_v9 = vand.u32 4294901760, %v1022_v7  ;;  %v1029_v14 = vand.u32 4294901760, %v1028_v10 }
  0x4e   : > { %745 = vmatpush.msra.mxu2 %v649_v35  ;;  %681 = vmatpush.msra.mxu0 %v648_v28  ;;  %v1219_v32 = vand.u32 4294901760, %v1218_v30  ;;  %v1403_v46 = vand.u32 4294901760, %v1402_v43 }
  0x4f   : > { %708 = vmatpush.msra.mxu1 %v606_v17  ;;  %433 = vmatmul.f32.gmra.mxu0 %v6918_v48  ;;  %v1024_v12 = vsub.f32 %v1022_v7, %v1023_v9  ;;  %v1030_v16 = vsub.f32 %v1028_v10, %v1029_v14 }
  0x50   : > { %772 = vmatpush.msra.mxu3 %v608_v21  ;;  %v1220_v33 = vsub.f32 %v1218_v30, %v1219_v32 }
  0x51   : > { %710 = vmatpush.msra.mxu1 %v608_v21  ;;  %v1025_v15 = vand.u32 4294901760, %v1024_v12  ;;  %v1031_v17 = vand.u32 4294901760, %v1030_v16  ;;  %v346_v21 = vmul.f32 %v6966_v19, %v6857_v0 }
  0x52   : > { %468 = vmatmul.f32.gmra.mxu1 %v6884_v18  ;;  %v1221_v39 = vand.u32 4294901760, %v1220_v33 }
  0x53   : > { %v1176_v22 = vand.u32 4294901760, %v346_v21 }
  0x54   : > { %654 = vmatmul.f32.vlgmr.msrb.gmra.mxu3 %v6880_v13  ;;  %615 = vmatmul.f32.vlgmr.msrb.gmra.mxu2 %v6905_v38 }
  0x55   : > { %898 = vmatpush.msrb.mxu3 %v6916_v47  ;;  %868 = vmatpush.msrb.mxu2 %v832_v49  ;;  %v1212_v23 = vsub.f32 %v346_v21, %v1176_v22  ;;  %v1404_v49 = vsub.f32 %v1402_v43, %v1403_v46 }
  0x57   : > { %900 = vmatpush.msrb.mxu3 %v798_v54  ;;  %557 = vmatmul.f32.vlgmr.msrb.gmra.mxu0 %v6880_v13  ;;  %v1213_v28 = vand.u32 4294901760, %v1212_v23  ;;  %v1405_v52 = vand.u32 4294901760, %v1404_v49 }
  0x58   : > { %871 = vmatpush.msrb.mxu2 %v838_v55  ;;  %797 = vmatpush.msrb.mxu0 %v6916_v47  ;;  %v7010_v55 = vld [vmem:[%s6842_s30 + $0x78] sm:$0xff] }
  0x59   : > { %v1214_v31 = vsub.f32 %v1212_v23, %v1213_v28  ;;  %v350_v56 = vmul.f32 %v7010_v55, %v6857_v0 }
  0x5a   : > { %584 = vmatmul.f32.vlgmr.msrb.gmra.mxu1 %v6880_v13  ;;  %799 = vmatpush.msrb.mxu0 %v798_v54 }
  0x5b   : > { %836 = vmatpush.msrb.mxu1 %v835_v59  ;;  %v1215_v35 = vand.u32 4294901760, %v1214_v31  ;;  %v7018_v59 = vld [vmem:[%s6842_s30 + $0x70] sm:$0xff] }
  0x5c   : > { %658 = vmatmul.f32.gmra.mxu3 %v6884_v18  ;;  %623 = vmatmul.f32.gmra.mxu2 %v6918_v48  ;;  %v349_v61 = vmul.f32 %v7018_v59, %v6863_v2 }
  0x5d   : > { %842 = vmatpush.msrb.mxu1 %v841_v62 }
  0x5e   : > { %v1558_v0 = vand.u32 4294901760, %v349_v61 }
  0x5f   : > { %561 = vmatmul.f32.gmra.mxu0 %v6884_v18 }
  0x62   : > { %588 = vmatmul.f32.gmra.mxu1 %v6884_v18 }
  0x64   : > { %774 = vmatmul.f32.vlgmr.msra.gmra.mxu3 %v6880_v13  ;;  %747 = vmatmul.f32.vlgmr.msra.gmra.mxu2 %v6880_v13 }
  0x65   : > { %1026 = vmatpush.msra.mxu3 %v1025_v15  ;;  %987 = vmatpush.msra.mxu2 %v986_v3 }
  0x67   : > { %1032 = vmatpush.msra.mxu3 %v1031_v17  ;;  %684 = vmatmul.f32.vlgmr.msra.gmra.mxu0 %v6887_v20 }
  0x68   : > { %989 = vmatpush.msra.mxu2 %v988_v8  ;;  %931 = vmatpush.msra.mxu0 %v833_v53 }
  0x6a   : > { %714 = vmatmul.f32.vlgmr.msra.gmra.mxu1 %v6893_v26  ;;  %935 = vmatpush.msra.mxu0 %v839_v57  ;;  %v1556_v57 = vand.u32 4294901760, %v350_v56 }
  0x6b   : > { %960 = vmatpush.msra.mxu1 %v6916_v47  ;;  %v1408_v47 = vsub.f32 %v347_v42, %v1368_v44 }
  0x6c   : > { %778 = vmatmul.f32.gmra.mxu3 %v6884_v18  ;;  %751 = vmatmul.f32.gmra.mxu2 %v6884_v18  ;;  %v1592_v58 = vsub.f32 %v350_v56, %v1556_v57 }
  0x6d   : > { %962 = vmatpush.msra.mxu1 %v798_v54  ;;  %v1409_v51 = vand.u32 4294901760, %v1408_v47 }
  0x6e   : > { %v1593_v62 = vand.u32 4294901760, %v1592_v58 }
  0x6f   : > { %689 = vmatmul.f32.gmra.mxu0 %v6890_v24  ;;  %v1410_v53 = vsub.f32 %v1408_v47, %v1409_v51 }
  0x70   : > { %v1594_v5 = vsub.f32 %v1592_v58, %v1593_v62 }
  0x71   : > { %v1411_v54 = vand.u32 4294901760, %v1410_v53 }
  0x72   : > { %720 = vmatmul.f32.gmra.mxu1 %v6902_v34  ;;  %v1595_v2 = vand.u32 4294901760, %v1594_v5  ;;  %v353_v5 = vmul.f32 %v6924_v50, %v6868_v4 }
  0x74   : > { %904 = vmatmul.f32.vlgmr.msrb.gmra.mxu3 %v6893_v26  ;;  %874 = vmatmul.f32.vlgmr.msrb.gmra.mxu2 %v6887_v20 }
  0x75   : > { %1150 = vmatpush.msrb.mxu3 %v986_v3  ;;  %1121 = vmatpush.msrb.mxu2 %v1023_v9  ;;  %v352_v9 = vmul.f32 %v6871_v6, %v6860_v1 }
  0x77   : > { %1152 = vmatpush.msrb.mxu3 %v988_v8  ;;  %805 = vmatmul.f32.vlgmr.msrb.gmra.mxu0 %v6905_v38  ;;  %v7029_v12 = vand.u32 4294901760, %v352_v9 }
  0x78   : > { %1125 = vmatpush.msrb.mxu2 %v1029_v14  ;;  %1058 = vmatpush.msrb.mxu0 %v1022_v7  ;;  %v351_v14 = vmul.f32 %v6878_v11, %v6868_v4 }
  0x79   : > { %v1782_v15 = vsub.f32 %v352_v9, %v7029_v12 }
  0x7a   : > { %844 = vmatmul.f32.vlgmr.msrb.gmra.mxu1 %v6880_v13  ;;  %1061 = vmatpush.msrb.mxu0 %v1028_v10  ;;  %v7037_v16 = vand.u32 4294901760, %v351_v14 }
  0x7b   : > { %1088 = vmatpush.msrb.mxu1 %v986_v3  ;;  %v1598_v3 = vsub.f32 %v349_v61, %v1558_v0  ;;  %v1783_v6 = vand.u32 4294901760, %v1782_v15 }
  0x7c   : > { %910 = vmatmul.f32.gmra.mxu3 %v6902_v34  ;;  %879 = vmatmul.f32.gmra.mxu2 %v6890_v24  ;;  %v1788_v17 = vsub.f32 %v351_v14, %v7037_v16 }
  0x7d   : > { %1090 = vmatpush.msrb.mxu1 %v988_v8  ;;  %v1599_v7 = vand.u32 4294901760, %v1598_v3  ;;  %v1784_v21 = vsub.f32 %v1782_v15, %v1783_v6 }
  0x7f   : > { %813 = vmatmul.f32.gmra.mxu0 %v6918_v48  ;;  %v1600_v8 = vsub.f32 %v1598_v3, %v1599_v7 }
  0x81   : > { %v1601_v10 = vand.u32 4294901760, %v1600_v8 }
  0x82   : > { %848 = vmatmul.f32.gmra.mxu1 %v6884_v18 }
  0x84   : > { %1034 = vmatmul.f32.vlgmr.msra.gmra.mxu3 %v6880_v13  ;;  %995 = vmatmul.f32.vlgmr.msra.gmra.mxu2 %v6905_v38 }
  0x85   : > { %1278 = vmatpush.msra.mxu3 %v1176_v22  ;;  %1248 = vmatpush.msra.mxu2 %v1212_v23  ;;  %v1785_v23 = vand.u32 4294901760, %v1784_v21 }
  0x87   : > { %1280 = vmatpush.msra.mxu3 %v1178_v29  ;;  %937 = vmatmul.f32.vlgmr.msra.gmra.mxu0 %v6880_v13 }
  0x88   : > { %1251 = vmatpush.msra.mxu2 %v1218_v30  ;;  %1177 = vmatpush.msra.mxu0 %v1176_v22 }
  0x8a   : > { %964 = vmatmul.f32.vlgmr.msra.gmra.mxu1 %v6880_v13  ;;  %1179 = vmatpush.msra.mxu0 %v1178_v29 }
  0x8b   : > { %1216 = vmatpush.msra.mxu1 %v1215_v35 }
  0x8c   : > { %1038 = vmatmul.f32.gmra.mxu3 %v6884_v18  ;;  %1003 = vmatmul.f32.gmra.mxu2 %v6918_v48 }
  0x8d   : > { %1222 = vmatpush.msra.mxu1 %v1221_v39 }
  0x8f   : > { %941 = vmatmul.f32.gmra.mxu0 %v6884_v18 }
  0x92   : > { %968 = vmatmul.f32.gmra.mxu1 %v6884_v18 }
  0x94   : > { %1154 = vmatmul.f32.vlgmr.msrb.gmra.mxu3 %v6880_v13  ;;  %1127 = vmatmul.f32.vlgmr.msrb.gmra.mxu2 %v6880_v13 }
  0x95   : > { %1406 = vmatpush.msrb.mxu3 %v1405_v52  ;;  %1367 = vmatpush.msrb.mxu2 %v1366_v41 }
  0x97   : > { %1412 = vmatpush.msrb.mxu3 %v1411_v54  ;;  %1064 = vmatmul.f32.vlgmr.msrb.gmra.mxu0 %v6887_v20 }
  0x98   : > { %1369 = vmatpush.msrb.mxu2 %v1368_v44  ;;  %1311 = vmatpush.msrb.mxu0 %v1213_v28 }
  0x9a   : > { %1094 = vmatmul.f32.vlgmr.msrb.gmra.mxu1 %v6893_v26  ;;  %1315 = vmatpush.msrb.mxu0 %v1219_v32 }
  0x9b   : > { %1340 = vmatpush.msrb.mxu1 %v1176_v22  ;;  %v1789_v22 = vand.u32 4294901760, %v1788_v17 }
  0x9c   : > { %1158 = vmatmul.f32.gmra.mxu3 %v6884_v18  ;;  %1131 = vmatmul.f32.gmra.mxu2 %v6884_v18 }
  0x9d   : > { %1342 = vmatpush.msrb.mxu1 %v1178_v29  ;;  %v1790_v11 = vsub.f32 %v1788_v17, %v1789_v22 }
  0x9f   : > { %1069 = vmatmul.f32.gmra.mxu0 %v6890_v24  ;;  %v1791_v28 = vand.u32 4294901760, %v1790_v11 }
  0xa2   : > { %1100 = vmatmul.f32.gmra.mxu1 %v6902_v34 }
  0xa4   : > { %1284 = vmatmul.f32.vlgmr.msra.gmra.mxu3 %v6893_v26  ;;  %1254 = vmatmul.f32.vlgmr.msra.gmra.mxu2 %v6887_v20 }
  0xa5   : > { %1530 = vmatpush.msra.mxu3 %v1366_v41  ;;  %1501 = vmatpush.msra.mxu2 %v1403_v46 }
  0xa7   : > { %1532 = vmatpush.msra.mxu3 %v1368_v44  ;;  %1185 = vmatmul.f32.vlgmr.msra.gmra.mxu0 %v6905_v38 }
  0xa8   : > { %1505 = vmatpush.msra.mxu2 %v1409_v51  ;;  %1438 = vmatpush.msra.mxu0 %v1402_v43 }
  0xaa   : > { %1224 = vmatmul.f32.vlgmr.msra.gmra.mxu1 %v6880_v13  ;;  %1441 = vmatpush.msra.mxu0 %v1408_v47 }
  0xab   : > { %1468 = vmatpush.msra.mxu1 %v1366_v41 }
  0xac   : > { %1290 = vmatmul.f32.gmra.mxu3 %v6902_v34  ;;  %1259 = vmatmul.f32.gmra.mxu2 %v6890_v24 }
  0xad   : > { %1470 = vmatpush.msra.mxu1 %v1368_v44 }
  0xaf   : > { %1193 = vmatmul.f32.gmra.mxu0 %v6918_v48 }
  0xb0   : > { %v7057_v51 = vpop.permute.xlu0 %5725 }
  0xb2   : > { %1228 = vmatmul.f32.gmra.mxu1 %v6884_v18 }
  0xb4   : > { %1414 = vmatmul.f32.vlgmr.msrb.gmra.mxu3 %v6880_v13  ;;  %1375 = vmatmul.f32.vlgmr.msrb.gmra.mxu2 %v6905_v38 }
  0xb5   : > { %1658 = vmatpush.msrb.mxu3 %v1556_v57  ;;  %1628 = vmatpush.msrb.mxu2 %v1592_v58 }
  0xb7   : > { %1660 = vmatpush.msrb.mxu3 %v1558_v0  ;;  %1317 = vmatmul.f32.vlgmr.msrb.gmra.mxu0 %v6880_v13 }
  0xb8   : > { %1631 = vmatpush.msrb.mxu2 %v1598_v3  ;;  %1557 = vmatpush.msrb.mxu0 %v1556_v57  ;;  %v7078_v9 = vpop.permute.xlu0 %5787 }
  0xba   : > { %1344 = vmatmul.f32.vlgmr.msrb.gmra.mxu1 %v6880_v13  ;;  %1559 = vmatpush.msrb.mxu0 %v1558_v0 }
  0xbb   : > { %1596 = vmatpush.msrb.mxu1 %v1595_v2 }
  0xbc   : > { %1418 = vmatmul.f32.gmra.mxu3 %v6884_v18  ;;  %1383 = vmatmul.f32.gmra.mxu2 %v6918_v48 }
  0xbd   : > { %1602 = vmatpush.msrb.mxu1 %v1601_v10 }
  0xbf   : > { %1321 = vmatmul.f32.gmra.mxu0 %v6884_v18 }
  0xc2   : > { %1348 = vmatmul.f32.gmra.mxu1 %v6884_v18 }
  0xc4   : > { %1534 = vmatmul.f32.vlgmr.msra.gmra.mxu3 %v6880_v13  ;;  %v426_v27 = vpop.f32.mrf.mxu0  ;;  %1507 = vmatmul.f32.vlgmr.msra.gmra.mxu2 %v6880_v13 }
  0xc5   : > { %1786 = vmatpush.msra.mxu3 %v1785_v23  ;;  %1747 = vmatpush.msra.mxu2 %v7029_v12 }
  0xc6   : > { %v525_v29 = vpop.f32.mrf.mxu3 }
  0xc7   : > { %1792 = vmatpush.msra.mxu3 %v1791_v28  ;;  %1444 = vmatmul.f32.vlgmr.msra.gmra.mxu0 %v6887_v20  ;;  %v465_v30 = vpop.f32.mrf.mxu1  ;;  %v495_v31 = vpop.f32.mrf.mxu2 }
  0xc8   : > { %1749 = vmatpush.msra.mxu2 %v7037_v16  ;;  %v466_v32 = vadd.f32 %v465_v30, %v426_v27  ;;  %1691 = vmatpush.msra.mxu0 %v1593_v62  ;;  %v354_v62 = vmul.f32 %v6911_v45, %v6860_v1  ;;  %v7083_v45 = vand.u32 4294901760, %v353_v5  ;;  %v356_v30 = vmul.f32 %v6938_v60, %v6860_v1 }
  0xca   : > { %v496_v33 = vadd.f32 %v495_v31, %v466_v32  ;;  %1474 = vmatmul.f32.vlgmr.msra.gmra.mxu1 %v6893_v26  ;;  %1695 = vmatpush.msra.mxu0 %v1599_v7  ;;  %v7071_v3 = vand.u32 4294901760, %v354_v62 }
  0xcb   : > { %1720 = vmatpush.msra.mxu1 %v1556_v57 }
  0xcc   : > { %1538 = vmatmul.f32.gmra.mxu3 %v6884_v18  ;;  %v526_v35 = vadd.f32 %v525_v29, %v496_v33  ;;  %v434_v37 = vpop.f32.mrf.mxu0  ;;  %1511 = vmatmul.f32.gmra.mxu2 %v6884_v18  ;;  %v7108_v33 = vand.u32 4294901760, %v356_v30 }
  0xcd   : > { %1722 = vmatpush.msra.mxu1 %v1558_v0 }
  0xce   : > { %v7116_v60 = vsub.f32 %v356_v30, %v7108_v33 }
  0xcf   : > { %v531_v39 = vpop.f32.mrf.mxu3  ;;  %1449 = vmatmul.f32.gmra.mxu0 %v6890_v24  ;;  %v469_v41 = vpop.f32.mrf.mxu1 }
  0xd0   : > { %v500_v42 = vpop.f32.mrf.mxu2  ;;  %v470_v43 = vadd.f32 %v469_v41, %v434_v37  ;;  %v355_v37 = vmul.f32 %v6944_v63, %v6868_v4  ;;  %v2163_v63 = vand.u32 4294901760, %v7116_v60 }
  0xd2   : > { %v501_v44 = vadd.f32 %v500_v42, %v470_v43  ;;  %1480 = vmatmul.f32.gmra.mxu1 %v6902_v34  ;;  %v7119_v43 = vand.u32 4294901760, %v355_v37 }
  0xd4   : > { %1664 = vmatmul.f32.vlgmr.msrb.gmra.mxu3 %v6893_v26  ;;  %v7053_v46 = vadd.f32 %v531_v39, %v501_v44  ;;  %v558_v47 = vpop.f32.mrf.mxu0  ;;  %1634 = vmatmul.f32.vlgmr.msrb.gmra.mxu2 %v6887_v20 }
  0xd5   : > { %1910 = vmatpush.msrb.mxu3 %v7029_v12  ;;  %1881 = vmatpush.msrb.mxu2 %v1783_v6  ;;  %v559_v49 = vadd.f32 %v558_v47, %v526_v35 }
  0xd7   : > { %v655_v52 = vpop.f32.mrf.mxu3  ;;  %1912 = vmatpush.msrb.mxu3 %v7037_v16  ;;  %1565 = vmatmul.f32.vlgmr.msrb.gmra.mxu0 %v6905_v38  ;;  %v585_v53 = vpop.f32.mrf.mxu1 }
  0xd8   : > { %v616_v54 = vpop.f32.mrf.mxu2  ;;  %1885 = vmatpush.msrb.mxu2 %v1789_v22  ;;  %v586_v56 = vadd.f32 %v585_v53, %v559_v49  ;;  %1818 = vmatpush.msrb.mxu0 %v1782_v15  ;;  %v7090_v15 = vsub.f32 %v353_v5, %v7083_v45 }
  0xd9   : > { %v656_v57 = vadd.f32 %v655_v52, %v616_v54  ;;  %v7124_v52 = vsub.f32 %v355_v37, %v7119_v43 }
  0xda   : > { %1604 = vmatmul.f32.vlgmr.msrb.gmra.mxu1 %v6880_v13  ;;  %1821 = vmatpush.msrb.mxu0 %v1788_v17  ;;  %v5728_v58 = vadd.f32 %v7057_v51, %v586_v56  ;;  %v1979_v17 = vand.u32 4294901760, %v7090_v15 }
  0xdb   : > { %1848 = vmatpush.msrb.mxu1 %v7029_v12  ;;  %v7081_v12 = vsub.f32 %v354_v62, %v7071_v3  ;;  %v2164_v62 = vsub.f32 %v7116_v60, %v2163_v63 }
  0xdc   : > { %1670 = vmatmul.f32.gmra.mxu3 %v6902_v34  ;;  %v7065_v61 = vpop.f32.mrf.mxu0  ;;  %1639 = vmatmul.f32.gmra.mxu2 %v6890_v24  ;;  %v5756_v7 = vmax.f32 %v5728_v58, 0.0  ;;  %v1980_v29 = vsub.f32 %v7090_v15, %v1979_v17 }
  0xdd   : > { %1850 = vmatpush.msrb.mxu1 %v7037_v16  ;;  %v1973_v14 = vand.u32 4294901760, %v7081_v12 }
  0xde   : > { %v5790_v50 = vmul.f32 %v7078_v9, %v5756_v7  ;;  %v1981_v32 = vand.u32 4294901760, %v1980_v29 }
  0xdf   : > { %v659_v0 = vpop.f32.mrf.mxu3  ;;  %1573 = vmatmul.f32.gmra.mxu0 %v6918_v48  ;;  %v7076_v8 = vpop.f32.mrf.mxu1  ;;  %v1974_v6 = vsub.f32 %v7081_v12, %v1973_v14 }
  0xe0   : > { %v624_v2 = vpop.f32.mrf.mxu2  ;;  %v5818_v27 = vrot.slane %v5790_v50, 4 }
  0xe1   : > { %v660_v10 = vadd.f32 %v659_v0, %v624_v2  ;;  %v1975_v28 = vand.u32 4294901760, %v1974_v6  ;;  %v2169_v0 = vand.u32 4294901760, %v7124_v52  ;;  %v2165_v2 = vand.u32 4294901760, %v2164_v62 }
  0xe2   : > { %1608 = vmatmul.f32.gmra.mxu1 %v6884_v18  ;;  %v5819_v39 = vadd.f32 %v5818_v27, %v5790_v50 }
  0xe4   : > { %1794 = vmatmul.f32.vlgmr.msra.gmra.mxu3 %v6880_v13  ;;  %v685_v16 = vpop.f32.mrf.mxu0  ;;  %1755 = vmatmul.f32.vlgmr.msra.gmra.mxu2 %v6905_v38  ;;  %v5820_v53 = vrot.slane %v5819_v39, 2 }
  0xe5   : > { %2038 = vmatpush.msra.mxu3 %v7071_v3  ;;  %2008 = vmatpush.msra.mxu2 %v7081_v12  ;;  %v686_v21 = vadd.f32 %v685_v16, %v656_v57 }
  0xe6   : > { %v5821_v50 = vadd.f32 %v5820_v53, %v5819_v39 }
  0xe7   : > { %v775_v22 = vpop.f32.mrf.mxu3  ;;  %2040 = vmatpush.msra.mxu3 %v7083_v45  ;;  %1697 = vmatmul.f32.vlgmr.msra.gmra.mxu0 %v6880_v13  ;;  %v715_v23 = vpop.f32.mrf.mxu1 }
  0xe8   : > { %v748_v11 = vpop.f32.mrf.mxu2  ;;  %2011 = vmatpush.msra.mxu2 %v7090_v15  ;;  %v716_v31 = vadd.f32 %v715_v23, %v686_v21  ;;  %1937 = vmatpush.msra.mxu0 %v7071_v3  ;;  %v5822_v29 = vrot.slane %v5821_v50, 1 }
  0xea   : > { %v749_v35 = vadd.f32 %v748_v11, %v716_v31  ;;  %1724 = vmatmul.f32.vlgmr.msra.gmra.mxu1 %v6880_v13  ;;  %1939 = vmatpush.msra.mxu0 %v7083_v45  ;;  %v5823_v37 = vadd.f32 %v5822_v29, %v5821_v50 }
  0xeb   : > { %1976 = vmatpush.msra.mxu1 %v1975_v28 }
  0xec   : > { %1798 = vmatmul.f32.gmra.mxu3 %v6884_v18  ;;  %v776_v41 = vadd.f32 %v775_v22, %v749_v35  ;;  %v690_v42 = vpop.f32.mrf.mxu0  ;;  %1763 = vmatmul.f32.gmra.mxu2 %v6918_v48 }
  0xed   : > { %1982 = vmatpush.msra.mxu1 %v1981_v32  ;;  %v691_v47 = vadd.f32 %v690_v42, %v660_v10  ;;  %v2170_v10 = vsub.f32 %v7124_v52, %v2169_v0 }
  0xee   : > { %v5729_v44 = vadd.f32 %v7057_v51, %v776_v41 }
  0xef   : > { %v779_v49 = vpop.f32.mrf.mxu3  ;;  %1701 = vmatmul.f32.gmra.mxu0 %v6884_v18  ;;  %v721_v54 = vpop.f32.mrf.mxu1  ;;  %v2171_v22 = vand.u32 4294901760, %v2170_v10 }
  0xf0   : > { %v752_v56 = vpop.f32.mrf.mxu2  ;;  %v5757_v57 = vmax.f32 %v5729_v44, 0.0  ;;  %v722_v58 = vadd.f32 %v721_v54, %v691_v47  ;;  %v7149_v44 = vstv %s318_s16 }
  0xf1   : > { %v7154_v47 = vadd.f32 %v7149_v44, %v5823_v37 }
  0xf2   : > { %v5791_v5 = vmul.f32 %v7078_v9, %v5757_v57  ;;  %v753_v7 = vadd.f32 %v752_v56, %v722_v58  ;;  %1728 = vmatmul.f32.gmra.mxu1 %v6884_v18 }
  0xf3   : > { %8534 = vst [vmem:[#allocation15_spill] sm:$0xff] %v7154_v47 }
  0xf4   : > { %1914 = vmatmul.f32.vlgmr.msrb.gmra.mxu3 %v6880_v13  ;;  %v5824_v16 = vrot.slane %v5791_v5, 4  ;;  %v7135_v6 = vadd.f32 %v779_v49, %v753_v7  ;;  %v806_v21 = vpop.f32.mrf.mxu0  ;;  %1887 = vmatmul.f32.vlgmr.msrb.gmra.mxu2 %v6880_v13 }
  0xf5   : > { %2166 = vmatpush.msrb.mxu3 %v2165_v2  ;;  %2127 = vmatpush.msrb.mxu2 %v7108_v33 }
  0xf6   : > { %8533 = vst [vmem:[#allocation14_spill] sm:$0xff] %v7135_v6  ;;  %v5825_v23 = vadd.f32 %v5824_v16, %v5791_v5 }
  0xf7   : > { %v905_v11 = vpop.f32.mrf.mxu3  ;;  %2172 = vmatpush.msrb.mxu3 %v2171_v22  ;;  %1824 = vmatmul.f32.vlgmr.msrb.gmra.mxu0 %v6887_v20  ;;  %v845_v27 = vpop.f32.mrf.mxu1 }
  0xf8   : > { %v875_v28 = vpop.f32.mrf.mxu2  ;;  %2129 = vmatpush.msrb.mxu2 %v7119_v43  ;;  %v5826_v30 = vrot.slane %v5825_v23, 2  ;;  %v846_v31 = vadd.f32 %v845_v27, %v806_v21  ;;  %2071 = vmatpush.msrb.mxu0 %v1973_v14 }
  0xfa   : > { %v5827_v32 = vadd.f32 %v5826_v30, %v5825_v23  ;;  %v876_v35 = vadd.f32 %v875_v28, %v846_v31  ;;  %1854 = vmatmul.f32.vlgmr.msrb.gmra.mxu1 %v6893_v26  ;;  %2075 = vmatpush.msrb.mxu0 %v1979_v17 }
  0xfb   : > { %2100 = vmatpush.msrb.mxu1 %v7071_v3 }
  0xfc   : > { %1918 = vmatmul.f32.gmra.mxu3 %v6884_v18  ;;  %v5828_v39 = vrot.slane %v5827_v32, 1  ;;  %v906_v41 = vadd.f32 %v905_v11, %v876_v35  ;;  %v814_v42 = vpop.f32.mrf.mxu0  ;;  %1891 = vmatmul.f32.gmra.mxu2 %v6884_v18 }
  0xfd   : > { %2102 = vmatpush.msrb.mxu1 %v7083_v45 }
  0xfe   : > { %v5829_v12 = vadd.f32 %v5828_v39, %v5827_v32 }
  0xff   : > { %v911_v14 = vpop.f32.mrf.mxu3  ;;  %1829 = vmatmul.f32.gmra.mxu0 %v6890_v24  ;;  %v849_v15 = vpop.f32.mrf.mxu1 }
 0x100   : > { %v880_v17 = vpop.f32.mrf.mxu2  ;;  %v7157_v3 = vadd.f32 %v7149_v44, %v5829_v12  ;;  %v850_v49 = vadd.f32 %v849_v15, %v814_v42  ;;  %v360_v15 = vmul.f32 %v6984_v36, %v6860_v1 }
 0x102   : > { %8535 = vst [vmem:[#allocation16_spill] sm:$0xff] %v7157_v3  ;;  %v6015_v53 = vmax.f32 %v7154_v47, %v7157_v3  ;;  %v881_v54 = vadd.f32 %v880_v17, %v850_v49  ;;  %1860 = vmatmul.f32.gmra.mxu1 %v6902_v34 }
 0x104   : > { %2044 = vmatmul.f32.vlgmr.msra.gmra.mxu3 %v6893_v26  ;;  %v7163_v45 = vadd.f32 %v911_v14, %v881_v54  ;;  %v938_v56 = vpop.f32.mrf.mxu0  ;;  %2014 = vmatmul.f32.vlgmr.msra.gmra.mxu2 %v6887_v20 }
 0x105   : > { %2290 = vmatpush.msra.mxu3 %v7108_v33  ;;  %2261 = vmatpush.msra.mxu2 %v2163_v63  ;;  %v939_v57 = vadd.f32 %v938_v56, %v906_v41  ;;  %v7218_v56 = vand.u32 4294901760, %v360_v15 }
 0x107   : > { %v1035_v58 = vpop.f32.mrf.mxu3  ;;  %2292 = vmatpush.msra.mxu3 %v7119_v43  ;;  %1945 = vmatmul.f32.vlgmr.msra.gmra.mxu0 %v6905_v38  ;;  %v965_v62 = vpop.f32.mrf.mxu1 }
 0x108   : > { %v996_v5 = vpop.f32.mrf.mxu2  ;;  %2265 = vmatpush.msra.mxu2 %v2169_v0  ;;  %v966_v7 = vadd.f32 %v965_v62, %v939_v57  ;;  %2198 = vmatpush.msra.mxu0 %v7116_v60  ;;  %v358_v0 = vmul.f32 %v6966_v19, %v6860_v1  ;;  %v359_v62 = vmul.f32 %v6989_v40, %v6868_v4 }
 0x109   : > { %v1036_v2 = vadd.f32 %v1035_v58, %v996_v5  ;;  %v7226_v1 = vsub.f32 %v360_v15, %v7218_v56 }
 0x10a   : > { %v5730_v10 = vadd.f32 %v7057_v51, %v966_v7  ;;  %1984 = vmatmul.f32.vlgmr.msra.gmra.mxu1 %v6880_v13  ;;  %2201 = vmatpush.msra.mxu0 %v7124_v52  ;;  %v7184_v21 = vand.u32 4294901760, %v358_v0  ;;  %v357_v52 = vmul.f32 %v6974_v25, %v6868_v4 }
 0x10b   : > { %2228 = vmatpush.msra.mxu1 %v7108_v33 }
 0x10c   : > { %2050 = vmatmul.f32.gmra.mxu3 %v6902_v34  ;;  %v5758_v63 = vmax.f32 %v5730_v10, 0.0  ;;  %v7177_v50 = vpop.f32.mrf.mxu0  ;;  %2019 = vmatmul.f32.gmra.mxu2 %v6890_v24  ;;  %v7192_v27 = vsub.f32 %v358_v0, %v7184_v21  ;;  %v7194_v19 = vand.u32 4294901760, %v357_v52  ;;  %v2543_v0 = vand.u32 4294901760, %v7226_v1 }
 0x10d   : > { %2230 = vmatpush.msra.mxu1 %v7119_v43 }
 0x10e   : > { %v5792_v60 = vmul.f32 %v7078_v9, %v5758_v63  ;;  %v2353_v28 = vand.u32 4294901760, %v7192_v27  ;;  %v7200_v25 = vsub.f32 %v357_v52, %v7194_v19 }
 0x10f   : > { %v1039_v16 = vpop.f32.mrf.mxu3  ;;  %1953 = vmatmul.f32.gmra.mxu0 %v6918_v48  ;;  %v7189_v33 = vpop.f32.mrf.mxu1 }
 0x110   : > { %v1004_v22 = vpop.f32.mrf.mxu2  ;;  %v5830_v23 = vrot.slane %v5792_v60, 4  ;;  %v2354_v31 = vsub.f32 %v7192_v27, %v2353_v28  ;;  %v2359_v32 = vand.u32 4294901760, %v7200_v25 }
 0x111   : > { %v1040_v11 = vadd.f32 %v1039_v16, %v1004_v22 }
 0x112   : > { %v5831_v43 = vadd.f32 %v5830_v23, %v5792_v60  ;;  %1988 = vmatmul.f32.gmra.mxu1 %v6884_v18  ;;  %v2355_v12 = vand.u32 4294901760, %v2354_v31  ;;  %v2360_v14 = vsub.f32 %v7200_v25, %v2359_v32 }
 0x114   : > { %2174 = vmatmul.f32.vlgmr.msrb.gmra.mxu3 %v6880_v13  ;;  %v5832_v29 = vrot.slane %v5831_v43, 2  ;;  %v1065_v30 = vpop.f32.mrf.mxu0  ;;  %2135 = vmatmul.f32.vlgmr.msrb.gmra.mxu2 %v6905_v38  ;;  %v2361_v54 = vand.u32 4294901760, %v2360_v14 }
 0x115   : > { %2418 = vmatpush.msrb.mxu3 %v7184_v21  ;;  %2388 = vmatpush.msrb.mxu2 %v7192_v27  ;;  %v1066_v37 = vadd.f32 %v1065_v30, %v1036_v2  ;;  %v7232_v2 = vand.u32 4294901760, %v359_v62 }
 0x116   : > { %v5833_v35 = vadd.f32 %v5832_v29, %v5831_v43 }
 0x117   : > { %v1155_v39 = vpop.f32.mrf.mxu3  ;;  %2420 = vmatpush.msrb.mxu3 %v7194_v19  ;;  %2077 = vmatmul.f32.vlgmr.msrb.gmra.mxu0 %v6880_v13  ;;  %v1095_v41 = vpop.f32.mrf.mxu1  ;;  %v7243_v60 = vsub.f32 %v359_v62, %v7232_v2 }
 0x118   : > { %v1128_v42 = vpop.f32.mrf.mxu2  ;;  %2391 = vmatpush.msrb.mxu2 %v7200_v25  ;;  %v5834_v17 = vrot.slane %v5833_v35, 1  ;;  %v1096_v49 = vadd.f32 %v1095_v41, %v1066_v37  ;;  %2317 = vmatpush.msrb.mxu0 %v7184_v21 }
 0x119   : > { %v2549_v43 = vand.u32 4294901760, %v7243_v60 }
 0x11a   : > { %v5835_v57 = vadd.f32 %v5834_v17, %v5833_v35  ;;  %v1129_v58 = vadd.f32 %v1128_v42, %v1096_v49  ;;  %2104 = vmatmul.f32.vlgmr.msrb.gmra.mxu1 %v6880_v13  ;;  %2319 = vmatpush.msrb.mxu0 %v7194_v19 }
 0x11b   : > { %2356 = vmatpush.msrb.mxu1 %v2355_v12  ;;  %v2550_v31 = vsub.f32 %v7243_v60, %v2549_v43 }
 0x11c   : > { %2178 = vmatmul.f32.gmra.mxu3 %v6884_v18  ;;  %v7229_v36 = vadd.f32 %v7149_v44, %v5835_v57  ;;  %v1156_v5 = vadd.f32 %v1155_v39, %v1129_v58  ;;  %v1070_v7 = vpop.f32.mrf.mxu0  ;;  %2143 = vmatmul.f32.gmra.mxu2 %v6918_v48 }
 0x11d   : > { %v1071_v10 = vadd.f32 %v1070_v7, %v1040_v11  ;;  %2362 = vmatpush.msrb.mxu1 %v2361_v54  ;;  %v2544_v11 = vsub.f32 %v7226_v1, %v2543_v0  ;;  %v2551_v41 = vand.u32 4294901760, %v2550_v31 }
 0x11e   : > { %8536 = vst [vmem:[#allocation17_spill] sm:$0xff] %v7229_v36  ;;  %v7238_v4 = vmax.f32 %v6015_v53, %v7229_v36  ;;  %v5731_v40 = vadd.f32 %v7057_v51, %v1156_v5 }
 0x11f   : > { %v1159_v63 = vpop.f32.mrf.mxu3  ;;  %2081 = vmatmul.f32.gmra.mxu0 %v6884_v18  ;;  %v1101_v16 = vpop.f32.mrf.mxu1  ;;  %v2545_v30 = vand.u32 4294901760, %v2544_v11 }
 0x120   : > { %v1132_v52 = vpop.f32.mrf.mxu2  ;;  %v5759_v22 = vmax.f32 %v5731_v40, 0.0  ;;  %v1102_v23 = vadd.f32 %v1101_v16, %v1071_v10 }
 0x122   : > { %v5793_v53 = vmul.f32 %v7078_v9, %v5759_v22  ;;  %v1133_v29 = vadd.f32 %v1132_v52, %v1102_v23  ;;  %2108 = vmatmul.f32.gmra.mxu1 %v6884_v18 }
 0x124   : > { %2294 = vmatmul.f32.vlgmr.msra.gmra.mxu3 %v6880_v13  ;;  %v5836_v35 = vrot.slane %v5793_v53, 4  ;;  %v7252_v37 = vadd.f32 %v1159_v63, %v1133_v29  ;;  %v1186_v39 = vpop.f32.mrf.mxu0  ;;  %2267 = vmatmul.f32.vlgmr.msra.gmra.mxu2 %v6880_v13 }
 0x125   : > { %2546 = vmatpush.msra.mxu3 %v2545_v30  ;;  %2507 = vmatpush.msra.mxu2 %v7218_v56 }
 0x126   : > { %8537 = vst [vmem:[#allocation18_spill] sm:$0xff] %v7252_v37  ;;  %v5837_v42 = vadd.f32 %v5836_v35, %v5793_v53 }
 0x127   : > { %v1285_v12 = vpop.f32.mrf.mxu3  ;;  %2552 = vmatpush.msra.mxu3 %v2551_v41  ;;  %2204 = vmatmul.f32.vlgmr.msra.gmra.mxu0 %v6887_v20  ;;  %v1225_v14 = vpop.f32.mrf.mxu1 }
 0x128   : > { %v1255_v15 = vpop.f32.mrf.mxu2  ;;  %2509 = vmatpush.msra.mxu2 %v7232_v2  ;;  %v5838_v17 = vrot.slane %v5837_v42, 2  ;;  %v1226_v49 = vadd.f32 %v1225_v14, %v1186_v39  ;;  %2451 = vmatpush.msra.mxu0 %v2353_v28 }
 0x12a   : > { %v5839_v54 = vadd.f32 %v5838_v17, %v5837_v42  ;;  %v1256_v57 = vadd.f32 %v1255_v15, %v1226_v49  ;;  %2234 = vmatmul.f32.vlgmr.msra.gmra.mxu1 %v6893_v26  ;;  %2455 = vmatpush.msra.mxu0 %v2359_v32 }
 0x12b   : > { %2480 = vmatpush.msra.mxu1 %v7184_v21 }
 0x12c   : > { %2298 = vmatmul.f32.gmra.mxu3 %v6884_v18  ;;  %v5840_v58 = vrot.slane %v5839_v54, 1  ;;  %v1286_v62 = vadd.f32 %v1285_v12, %v1256_v57  ;;  %v1194_v5 = vpop.f32.mrf.mxu0  ;;  %2271 = vmatmul.f32.gmra.mxu2 %v6884_v18 }
 0x12d   : > { %2482 = vmatpush.msra.mxu1 %v7194_v19 }
 0x12e   : > { %v5841_v27 = vadd.f32 %v5840_v58, %v5839_v54 }
 0x12f   : > { %v1291_v28 = vpop.f32.mrf.mxu3  ;;  %2209 = vmatmul.f32.gmra.mxu0 %v6890_v24  ;;  %v1229_v7 = vpop.f32.mrf.mxu1 }
 0x130   : > { %v1260_v10 = vpop.f32.mrf.mxu2  ;;  %v7269_v25 = vadd.f32 %v7149_v44, %v5841_v27  ;;  %v1230_v32 = vadd.f32 %v1229_v7, %v1194_v5 }
 0x132   : > { %8538 = vst [vmem:[#allocation19_spill] sm:$0xff] %v7269_v25  ;;  %v6017_v21 = vmax.f32 %v7238_v4, %v7269_v25  ;;  %v1261_v40 = vadd.f32 %v1260_v10, %v1230_v32  ;;  %2240 = vmatmul.f32.gmra.mxu1 %v6902_v34 }
 0x134   : > { %2424 = vmatmul.f32.vlgmr.msrb.gmra.mxu3 %v6893_v26  ;;  %v7275_v63 = vadd.f32 %v1291_v28, %v1261_v40  ;;  %v1318_v19 = vpop.f32.mrf.mxu0  ;;  %2394 = vmatmul.f32.vlgmr.msrb.gmra.mxu2 %v6887_v20  ;;  %v7326_v40 = vld [vmem:[%s6842_s30 + $0x28] sm:$0xff] }
 0x135   : > { %2670 = vmatpush.msrb.mxu3 %v7218_v56  ;;  %2641 = vmatpush.msrb.mxu2 %v2543_v0  ;;  %v1319_v16 = vadd.f32 %v1318_v19, %v1286_v62  ;;  %v7329_v19 = vld [vmem:[%s6842_s30 + $0x38] sm:$0xff] }
 0x137   : > { %v1415_v52 = vpop.f32.mrf.mxu3  ;;  %2672 = vmatpush.msrb.mxu3 %v7232_v2  ;;  %2325 = vmatmul.f32.vlgmr.msrb.gmra.mxu0 %v6905_v38  ;;  %v1345_v22 = vpop.f32.mrf.mxu1 }
 0x138   : > { %v1376_v23 = vpop.f32.mrf.mxu2  ;;  %2645 = vmatpush.msrb.mxu2 %v2549_v43  ;;  %v1346_v11 = vadd.f32 %v1345_v22, %v1319_v16  ;;  %2578 = vmatpush.msrb.mxu0 %v7226_v1  ;;  %v6521_v43 = vld [vmem:[%s6842_s30 + $0x18] sm:$0xff]  ;;  %v364_v16 = vmul.f32 %v7329_v19, %v7326_v40 }
 0x139   : > { %v1416_v53 = vadd.f32 %v1415_v52, %v1376_v23  ;;  %v362_v31 = vmul.f32 %v6521_v43, %v7010_v55  ;;  %v7342_v43 = vld [vmem:[%s6842_s30 + $0x30] sm:$0xff] }
 0x13a   : > { %v5732_v29 = vadd.f32 %v7057_v51, %v1346_v11  ;;  %2364 = vmatmul.f32.vlgmr.msrb.gmra.mxu1 %v6880_v13  ;;  %2581 = vmatpush.msrb.mxu0 %v7243_v60  ;;  %v6522_v60 = vld [vmem:[%s6842_s30 + $0x10] sm:$0xff]  ;;  %v7334_v11 = vand.u32 4294901760, %v364_v16 }
 0x13b   : > { %2608 = vmatpush.msrb.mxu1 %v7218_v56  ;;  %v7294_v39 = vand.u32 4294901760, %v362_v31  ;;  %v361_v41 = vmul.f32 %v6522_v60, %v7018_v59 }
 0x13c   : > { %2430 = vmatmul.f32.gmra.mxu3 %v6902_v34  ;;  %v5760_v0 = vmax.f32 %v5732_v29, 0.0  ;;  %v7287_v30 = vpop.f32.mrf.mxu0  ;;  %2399 = vmatmul.f32.gmra.mxu2 %v6890_v24 }
 0x13d   : > { %2610 = vmatpush.msrb.mxu1 %v7232_v2  ;;  %v7302_v15 = vsub.f32 %v362_v31, %v7294_v39  ;;  %v7304_v55 = vand.u32 4294901760, %v361_v41 }
 0x13e   : > { %v5794_v1 = vmul.f32 %v7078_v9, %v5760_v0  ;;  %v7339_v0 = vld [vmem:[%s6842_s30 + $0x20] sm:$0xff] }
 0x13f   : > { %v1419_v35 = vpop.f32.mrf.mxu3  ;;  %2333 = vmatmul.f32.gmra.mxu0 %v6918_v48  ;;  %v7299_v56 = vpop.f32.mrf.mxu1  ;;  %v2733_v17 = vand.u32 4294901760, %v7302_v15  ;;  %v7310_v59 = vsub.f32 %v361_v41, %v7304_v55  ;;  %v363_v31 = vmul.f32 %v7342_v43, %v7339_v0 }
 0x140   : > { %v1384_v42 = vpop.f32.mrf.mxu2  ;;  %v5842_v12 = vrot.slane %v5794_v1, 4 }
 0x141   : > { %v1420_v14 = vadd.f32 %v1419_v35, %v1384_v42  ;;  %v2734_v57 = vsub.f32 %v7302_v15, %v2733_v17  ;;  %v2739_v58 = vand.u32 4294901760, %v7310_v59  ;;  %v7354_v42 = vand.u32 4294901760, %v363_v31 }
 0x142   : > { %v5843_v2 = vadd.f32 %v5842_v12, %v5794_v1  ;;  %2368 = vmatmul.f32.gmra.mxu1 %v6884_v18  ;;  %v7348_v1 = vsub.f32 %v364_v16, %v7334_v11 }
 0x143   : > { %v2735_v10 = vand.u32 4294901760, %v2734_v57  ;;  %v2740_v32 = vsub.f32 %v7310_v59, %v2739_v58 }
 0x144   : > { %2554 = vmatmul.f32.vlgmr.msra.gmra.mxu3 %v6880_v13  ;;  %v5844_v49 = vrot.slane %v5843_v2, 2  ;;  %v1445_v54 = vpop.f32.mrf.mxu0  ;;  %2515 = vmatmul.f32.vlgmr.msra.gmra.mxu2 %v6905_v38  ;;  %v2923_v57 = vand.u32 4294901760, %v7348_v1 }
 0x145   : > { %2798 = vmatpush.msra.mxu3 %v7294_v39  ;;  %2768 = vmatpush.msra.mxu2 %v7302_v15  ;;  %v1446_v5 = vadd.f32 %v1445_v54, %v1416_v53  ;;  %v2741_v23 = vand.u32 4294901760, %v2740_v32 }
 0x146   : > { %v5845_v62 = vadd.f32 %v5844_v49, %v5843_v2 }
 0x147   : > { %v1535_v27 = vpop.f32.mrf.mxu3  ;;  %2800 = vmatpush.msra.mxu3 %v7304_v55  ;;  %2457 = vmatmul.f32.vlgmr.msra.gmra.mxu0 %v6880_v13  ;;  %v1475_v28 = vpop.f32.mrf.mxu1 }
 0x148   : > { %v1508_v7 = vpop.f32.mrf.mxu2  ;;  %2771 = vmatpush.msra.mxu2 %v7310_v59  ;;  %v5846_v52 = vrot.slane %v5845_v62, 1  ;;  %v1476_v22 = vadd.f32 %v1475_v28, %v1446_v5  ;;  %2697 = vmatpush.msra.mxu0 %v7294_v39 }
 0x14a   : > { %v5847_v53 = vadd.f32 %v5846_v52, %v5845_v62  ;;  %v1509_v29 = vadd.f32 %v1508_v7, %v1476_v22  ;;  %2484 = vmatmul.f32.vlgmr.msra.gmra.mxu1 %v6880_v13  ;;  %2699 = vmatpush.msra.mxu0 %v7304_v55  ;;  %v7365_v62 = vsub.f32 %v363_v31, %v7354_v42 }
 0x14b   : > { %2736 = vmatpush.msra.mxu1 %v2735_v10  ;;  %v2924_v7 = vsub.f32 %v7348_v1, %v2923_v57 }
 0x14c   : > { %2558 = vmatmul.f32.gmra.mxu3 %v6884_v18  ;;  %v7351_v35 = vadd.f32 %v7149_v44, %v5847_v53  ;;  %v1536_v60 = vadd.f32 %v1535_v27, %v1509_v29  ;;  %v1450_v41 = vpop.f32.mrf.mxu0  ;;  %2523 = vmatmul.f32.gmra.mxu2 %v6918_v48  ;;  %v2929_v4 = vand.u32 4294901760, %v7365_v62 }
 0x14d   : > { %v1451_v12 = vadd.f32 %v1450_v41, %v1420_v14  ;;  %2742 = vmatpush.msra.mxu1 %v2741_v23  ;;  %v2925_v32 = vand.u32 4294901760, %v2924_v7 }
 0x14e   : > { %8539 = vst [vmem:[#allocation20_spill] sm:$0xff] %v7351_v35  ;;  %v7360_v2 = vmax.f32 %v6017_v21, %v7351_v35  ;;  %v5733_v49 = vadd.f32 %v7057_v51, %v1536_v60  ;;  %v2930_v16 = vsub.f32 %v7365_v62, %v2929_v4  ;;  %v7586_v35 = vld [vmem:[%s6842_s30 + $0x70] sm:$0xff] }
 0x14f   : > { %v1539_v54 = vpop.f32.mrf.mxu3  ;;  %2461 = vmatmul.f32.gmra.mxu0 %v6884_v18  ;;  %v1481_v5 = vpop.f32.mrf.mxu1 }
 0x150   : > { %v1512_v27 = vpop.f32.mrf.mxu2  ;;  %v5761_v14 = vmax.f32 %v5733_v49, 0.0  ;;  %v1482_v28 = vadd.f32 %v1481_v5, %v1451_v12  ;;  %v2931_v53 = vand.u32 4294901760, %v2930_v16 }
 0x152   : > { %v5795_v21 = vmul.f32 %v7078_v9, %v5761_v14  ;;  %v1513_v10 = vadd.f32 %v1512_v27, %v1482_v28  ;;  %2488 = vmatmul.f32.gmra.mxu1 %v6884_v18 }
 0x154   : > { %2674 = vmatmul.f32.vlgmr.msrb.gmra.mxu3 %v6880_v13  ;;  %v5848_v52 = vrot.slane %v5795_v21, 4  ;;  %v7374_v22 = vadd.f32 %v1539_v54, %v1513_v10  ;;  %v1566_v23 = vpop.f32.mrf.mxu0  ;;  %2647 = vmatmul.f32.vlgmr.msrb.gmra.mxu2 %v6880_v13 }
 0x155   : > { %2926 = vmatpush.msrb.mxu3 %v2925_v32  ;;  %2887 = vmatpush.msrb.mxu2 %v7334_v11 }
 0x156   : > { %8540 = vst [vmem:[#allocation21_spill] sm:$0xff] %v7374_v22  ;;  %v5849_v29 = vadd.f32 %v5848_v52, %v5795_v21 }
 0x157   : > { %v1665_v31 = vpop.f32.mrf.mxu3  ;;  %2932 = vmatpush.msrb.mxu3 %v2931_v53  ;;  %2584 = vmatmul.f32.vlgmr.msrb.gmra.mxu0 %v6887_v20  ;;  %v1605_v60 = vpop.f32.mrf.mxu1 }
 0x158   : > { %v1635_v41 = vpop.f32.mrf.mxu2  ;;  %2889 = vmatpush.msrb.mxu2 %v7354_v42  ;;  %v5850_v12 = vrot.slane %v5849_v29, 2  ;;  %v1606_v49 = vadd.f32 %v1605_v60, %v1566_v23  ;;  %2831 = vmatpush.msrb.mxu0 %v2733_v17 }
 0x15a   : > { %v5851_v54 = vadd.f32 %v5850_v12, %v5849_v29  ;;  %v1636_v5 = vadd.f32 %v1635_v41, %v1606_v49  ;;  %2614 = vmatmul.f32.vlgmr.msrb.gmra.mxu1 %v6893_v26  ;;  %2835 = vmatpush.msrb.mxu0 %v2739_v58 }
 0x15b   : > { %2860 = vmatpush.msrb.mxu1 %v7294_v39 }
 0x15c   : > { %2678 = vmatmul.f32.gmra.mxu3 %v6884_v18  ;;  %v5852_v27 = vrot.slane %v5851_v54, 1  ;;  %v1666_v14 = vadd.f32 %v1665_v31, %v1636_v5  ;;  %v1574_v28 = vpop.f32.mrf.mxu0  ;;  %2651 = vmatmul.f32.gmra.mxu2 %v6884_v18 }
 0x15d   : > { %2862 = vmatpush.msrb.mxu1 %v7304_v55 }
 0x15e   : > { %v5853_v15 = vadd.f32 %v5852_v27, %v5851_v54  ;;  %v7422_v54 = vld [vmem:[%s6842_s30 + $0x40] sm:$0xff] }
 0x15f   : > { %v1671_v17 = vpop.f32.mrf.mxu3  ;;  %2589 = vmatmul.f32.gmra.mxu0 %v6890_v24  ;;  %v1609_v7 = vpop.f32.mrf.mxu1 }
 0x160   : > { %v1640_v21 = vpop.f32.mrf.mxu2  ;;  %v7391_v59 = vadd.f32 %v7149_v44, %v5853_v15  ;;  %v1610_v58 = vadd.f32 %v1609_v7, %v1574_v28 }
 0x162   : > { %8541 = vst [vmem:[#allocation22_spill] sm:$0xff] %v7391_v59  ;;  %v6019_v39 = vmax.f32 %v7360_v2, %v7391_v59  ;;  %v1641_v10 = vadd.f32 %v1640_v21, %v1610_v58  ;;  %2620 = vmatmul.f32.gmra.mxu1 %v6902_v34 }
 0x164   : > { %2804 = vmatmul.f32.vlgmr.msra.gmra.mxu3 %v6893_v26  ;;  %v7397_v32 = vadd.f32 %v1671_v17, %v1641_v10  ;;  %v1698_v55 = vpop.f32.mrf.mxu0  ;;  %2774 = vmatmul.f32.vlgmr.msra.gmra.mxu2 %v6887_v20 }
 0x165   : > { %3050 = vmatpush.msra.mxu3 %v7334_v11  ;;  %3021 = vmatpush.msra.mxu2 %v2923_v57  ;;  %v1699_v16 = vadd.f32 %v1698_v55, %v1666_v14 }
 0x167   : > { %v1795_v52 = vpop.f32.mrf.mxu3  ;;  %3052 = vmatpush.msra.mxu3 %v7354_v42  ;;  %2705 = vmatmul.f32.vlgmr.msra.gmra.mxu0 %v6905_v38  ;;  %v1725_v23 = vpop.f32.mrf.mxu1 }
 0x168   : > { %v1756_v53 = vpop.f32.mrf.mxu2  ;;  %3025 = vmatpush.msra.mxu2 %v2929_v4  ;;  %v1726_v29 = vadd.f32 %v1725_v23, %v1699_v16  ;;  %2958 = vmatpush.msra.mxu0 %v7348_v1  ;;  %v7413_v4 = vld [vmem:[%s6842_s30 + $0x48] sm:$0xff] }
 0x169   : > { %v1796_v31 = vadd.f32 %v1795_v52, %v1756_v53  ;;  %v366_v1 = vmul.f32 %v7413_v4, %v7326_v40 }
 0x16a   : > { %v5734_v60 = vadd.f32 %v7057_v51, %v1726_v29  ;;  %2744 = vmatmul.f32.vlgmr.msra.gmra.mxu1 %v6880_v13  ;;  %2961 = vmatpush.msra.mxu0 %v7365_v62 }
 0x16b   : > { %2988 = vmatpush.msra.mxu1 %v7334_v11  ;;  %v7419_v62 = vand.u32 4294901760, %v366_v1  ;;  %v365_v11 = vmul.f32 %v7422_v54, %v7339_v0 }
 0x16c   : > { %2810 = vmatmul.f32.gmra.mxu3 %v6902_v34  ;;  %v5762_v57 = vmax.f32 %v5734_v60, 0.0  ;;  %v7409_v41 = vpop.f32.mrf.mxu0  ;;  %2779 = vmatmul.f32.gmra.mxu2 %v6890_v24 }
 0x16d   : > { %2990 = vmatpush.msra.mxu1 %v7354_v42  ;;  %v7430_v15 = vsub.f32 %v366_v1, %v7419_v62  ;;  %v7432_v42 = vand.u32 4294901760, %v365_v11 }
 0x16e   : > { %v5796_v12 = vmul.f32 %v7078_v9, %v5762_v57 }
 0x16f   : > { %v1799_v49 = vpop.f32.mrf.mxu3  ;;  %2713 = vmatmul.f32.gmra.mxu0 %v6918_v48  ;;  %v7427_v5 = vpop.f32.mrf.mxu1  ;;  %v8491_v7 = vand.u32 4294901760, %v7430_v15  ;;  %v7438_v21 = vsub.f32 %v365_v11, %v7432_v42 }
 0x170   : > { %v1764_v27 = vpop.f32.mrf.mxu2  ;;  %v5854_v14 = vrot.slane %v5796_v12, 4 }
 0x171   : > { %v1800_v28 = vadd.f32 %v1799_v49, %v1764_v27  ;;  %v3114_v55 = vsub.f32 %v7430_v15, %v8491_v7  ;;  %v8490_v16 = vand.u32 4294901760, %v7438_v21 }
 0x172   : > { %v5855_v17 = vadd.f32 %v5854_v14, %v5796_v12  ;;  %2748 = vmatmul.f32.gmra.mxu1 %v6884_v18  ;;  %v7454_v12 = vld [vmem:[%s6842_s30 + $0x58] sm:$0xff] }
 0x173   : > { %v3115_v57 = vand.u32 4294901760, %v3114_v55  ;;  %v3120_v1 = vsub.f32 %v7438_v21, %v8490_v16 }
 0x174   : > { %2934 = vmatmul.f32.vlgmr.msrb.gmra.mxu3 %v6880_v13  ;;  %v5856_v58 = vrot.slane %v5855_v17, 2  ;;  %v1825_v10 = vpop.f32.mrf.mxu0  ;;  %2895 = vmatmul.f32.vlgmr.msrb.gmra.mxu2 %v6905_v38 }
 0x175   : > { %3178 = vmatpush.msrb.mxu3 %v7419_v62  ;;  %3148 = vmatpush.msrb.mxu2 %v7430_v15  ;;  %v1826_v23 = vadd.f32 %v1825_v10, %v1796_v31  ;;  %v368_v31 = vmul.f32 %v7454_v12, %v7326_v40  ;;  %v3121_v27 = vand.u32 4294901760, %v3120_v1  ;;  %v7464_v10 = vld [vmem:[%s6842_s30 + $0x50] sm:$0xff] }
 0x176   : > { %v5857_v52 = vadd.f32 %v5856_v58, %v5855_v17  ;;  %v367_v55 = vmul.f32 %v7464_v10, %v7339_v0 }
 0x177   : > { %v1915_v53 = vpop.f32.mrf.mxu3  ;;  %3180 = vmatpush.msrb.mxu3 %v7432_v42  ;;  %2837 = vmatmul.f32.vlgmr.msrb.gmra.mxu0 %v6880_v13  ;;  %v1855_v29 = vpop.f32.mrf.mxu1  ;;  %v7459_v14 = vand.u32 4294901760, %v368_v31 }
 0x178   : > { %v1888_v60 = vpop.f32.mrf.mxu2  ;;  %3151 = vmatpush.msrb.mxu2 %v7438_v21  ;;  %v5858_v49 = vrot.slane %v5857_v52, 1  ;;  %v1856_v11 = vadd.f32 %v1855_v29, %v1826_v23  ;;  %3077 = vmatpush.msrb.mxu0 %v7419_v62  ;;  %v7476_v1 = vand.u32 4294901760, %v367_v55 }
 0x179   : > { %v7470_v23 = vsub.f32 %v368_v31, %v7459_v14 }
 0x17a   : > { %v5859_v17 = vadd.f32 %v5858_v49, %v5857_v52  ;;  %v1889_v58 = vadd.f32 %v1888_v60, %v1856_v11  ;;  %2864 = vmatmul.f32.vlgmr.msrb.gmra.mxu1 %v6880_v13  ;;  %3079 = vmatpush.msrb.mxu0 %v7432_v42 }
 0x17b   : > { %3116 = vmatpush.msrb.mxu1 %v3115_v57 }
 0x17c   : > { %2938 = vmatmul.f32.gmra.mxu3 %v6884_v18  ;;  %v7473_v29 = vadd.f32 %v7149_v44, %v5859_v17  ;;  %v1916_v52 = vadd.f32 %v1915_v53, %v1889_v58  ;;  %v1830_v60 = vpop.f32.mrf.mxu0  ;;  %2903 = vmatmul.f32.gmra.mxu2 %v6918_v48  ;;  %v3303_v17 = vand.u32 4294901760, %v7470_v23  ;;  %v7487_v53 = vsub.f32 %v367_v55, %v7476_v1 }
 0x17d   : > { %v1831_v49 = vadd.f32 %v1830_v60, %v1800_v28  ;;  %3122 = vmatpush.msrb.mxu1 %v3121_v27 }
 0x17e   : > { %8542 = vst [vmem:[#allocation23_spill] sm:$0xff] %v7473_v29  ;;  %v7482_v11 = vmax.f32 %v6019_v39, %v7473_v29  ;;  %v5735_v57 = vadd.f32 %v7057_v51, %v1916_v52  ;;  %v3304_v60 = vsub.f32 %v7470_v23, %v3303_v17  ;;  %v3309_v2 = vand.u32 4294901760, %v7487_v53 }
 0x17f   : > { %v1919_v31 = vpop.f32.mrf.mxu3  ;;  %2841 = vmatmul.f32.gmra.mxu0 %v6884_v18  ;;  %v1861_v58 = vpop.f32.mrf.mxu1 }
 0x180   : > { %v1892_v16 = vpop.f32.mrf.mxu2  ;;  %v5763_v28 = vmax.f32 %v5735_v57, 0.0  ;;  %v1862_v27 = vadd.f32 %v1861_v58, %v1831_v49  ;;  %v3305_v52 = vand.u32 4294901760, %v3304_v60  ;;  %v3310_v22 = vsub.f32 %v7487_v53, %v3309_v2 }
 0x182   : > { %v5797_v39 = vmul.f32 %v7078_v9, %v5763_v28  ;;  %v1893_v7 = vadd.f32 %v1892_v16, %v1862_v27  ;;  %2868 = vmatmul.f32.gmra.mxu1 %v6884_v18  ;;  %v3311_v49 = vand.u32 4294901760, %v3310_v22  ;;  %v8545_v22 = vand.u32 4294901760, %v7438_v21 }
 0x184   : > { %3054 = vmatmul.f32.vlgmr.msra.gmra.mxu3 %v6880_v13  ;;  %v5860_v55 = vrot.slane %v5797_v39, 4  ;;  %v7496_v37 = vadd.f32 %v1919_v31, %v1893_v7  ;;  %v1946_v6 = vpop.f32.mrf.mxu0  ;;  %3027 = vmatmul.f32.vlgmr.msra.gmra.mxu2 %v6880_v13  ;;  %v8544_v7 = vand.u32 4294901760, %v7430_v15 }
 0x185   : > { %3306 = vmatpush.msra.mxu3 %v3305_v52  ;;  %3267 = vmatpush.msra.mxu2 %v7459_v14 }
 0x186   : > { %8543 = vst [vmem:[#allocation24_spill] sm:$0xff] %v7496_v37  ;;  %v5861_v57 = vadd.f32 %v5860_v55, %v5797_v39 }
 0x187   : > { %v2045_v58 = vpop.f32.mrf.mxu3  ;;  %3312 = vmatpush.msra.mxu3 %v3311_v49  ;;  %2964 = vmatmul.f32.vlgmr.msra.gmra.mxu0 %v6887_v20  ;;  %v1985_v16 = vpop.f32.mrf.mxu1 }
 0x188   : > { %v2015_v28 = vpop.f32.mrf.mxu2  ;;  %3269 = vmatpush.msra.mxu2 %v7476_v1  ;;  %v5862_v27 = vrot.slane %v5861_v57, 2  ;;  %v1986_v60 = vadd.f32 %v1985_v16, %v1946_v6  ;;  %3211 = vmatpush.msra.mxu0 %v8544_v7 }
 0x18a   : > { %v5863_v31 = vadd.f32 %v5862_v27, %v5861_v57  ;;  %v2016_v37 = vadd.f32 %v2015_v28, %v1986_v60  ;;  %2994 = vmatmul.f32.vlgmr.msra.gmra.mxu1 %v6893_v26  ;;  %3215 = vmatpush.msra.mxu0 %v8545_v22 }
 0x18b   : > { %3240 = vmatpush.msra.mxu1 %v7419_v62  ;;  %v7576_v62 = vld [vmem:[%s6842_s30 + $0x78] sm:$0xff] }
 0x18c   : > { %3058 = vmatmul.f32.gmra.mxu3 %v6884_v18  ;;  %v5864_v39 = vrot.slane %v5863_v31, 1  ;;  %v2046_v52 = vadd.f32 %v2045_v58, %v2016_v37  ;;  %v1954_v55 = vpop.f32.mrf.mxu0  ;;  %3031 = vmatmul.f32.gmra.mxu2 %v6884_v18 }
 0x18d   : > { %3242 = vmatpush.msra.mxu1 %v7432_v42 }
 0x18e   : > { %v5865_v6 = vadd.f32 %v5864_v39, %v5863_v31 }
 0x18f   : > { %v2051_v15 = vpop.f32.mrf.mxu3  ;;  %2969 = vmatmul.f32.gmra.mxu0 %v6890_v24  ;;  %v1989_v49 = vpop.f32.mrf.mxu1 }
 0x190   : > { %v2020_v57 = vpop.f32.mrf.mxu2  ;;  %v7513_v21 = vadd.f32 %v7149_v44, %v5865_v6  ;;  %v1990_v16 = vadd.f32 %v1989_v49, %v1954_v55 }
 0x192   : > { %8546 = vst [vmem:[#allocation25_spill] sm:$0xff] %v7513_v21  ;;  %v2021_v28 = vadd.f32 %v2020_v57, %v1990_v16  ;;  %3000 = vmatmul.f32.gmra.mxu1 %v6902_v34 }
 0x194   : > { %3184 = vmatmul.f32.vlgmr.msrb.gmra.mxu3 %v6893_v26  ;;  %v7519_v37 = vadd.f32 %v2051_v15, %v2021_v28  ;;  %v2078_v42 = vpop.f32.mrf.mxu0  ;;  %3154 = vmatmul.f32.vlgmr.msrb.gmra.mxu2 %v6887_v20  ;;  %v7544_v15 = vld [vmem:[%s6842_s30 + $0x60] sm:$0xff] }
 0x195   : > { %3430 = vmatpush.msrb.mxu3 %v7459_v14  ;;  %3401 = vmatpush.msrb.mxu2 %v3303_v17  ;;  %v2079_v58 = vadd.f32 %v2078_v42, %v2046_v52 }
 0x197   : > { %v2175_v27 = vpop.f32.mrf.mxu3  ;;  %3432 = vmatpush.msrb.mxu3 %v7476_v1  ;;  %3085 = vmatmul.f32.vlgmr.msrb.gmra.mxu0 %v6905_v38  ;;  %v2105_v60 = vpop.f32.mrf.mxu1 }
 0x198   : > { %v2136_v7 = vpop.f32.mrf.mxu2  ;;  %3405 = vmatpush.msrb.mxu2 %v3309_v2  ;;  %v2106_v31 = vadd.f32 %v2105_v60, %v2079_v58  ;;  %3338 = vmatpush.msrb.mxu0 %v7470_v23  ;;  %v7535_v2 = vld [vmem:[%s6842_s30 + $0x68] sm:$0xff] }
 0x199   : > { %v2176_v22 = vadd.f32 %v2175_v27, %v2136_v7  ;;  %v370_v23 = vmul.f32 %v7535_v2, %v7326_v40 }
 0x19a   : > { %v5736_v39 = vadd.f32 %v7057_v51, %v2106_v31  ;;  %3124 = vmatmul.f32.vlgmr.msrb.gmra.mxu1 %v6880_v13  ;;  %3341 = vmatpush.msrb.mxu0 %v7487_v53 }
 0x19b   : > { %3368 = vmatpush.msrb.mxu1 %v7459_v14  ;;  %v7541_v53 = vand.u32 4294901760, %v370_v23  ;;  %v369_v14 = vmul.f32 %v7544_v15, %v7339_v0 }
 0x19c   : > { %3190 = vmatmul.f32.gmra.mxu3 %v6902_v34  ;;  %v5764_v17 = vmax.f32 %v5736_v39, 0.0  ;;  %v7531_v52 = vpop.f32.mrf.mxu0  ;;  %3159 = vmatmul.f32.gmra.mxu2 %v6890_v24 }
 0x19d   : > { %3370 = vmatpush.msrb.mxu1 %v7476_v1  ;;  %v7552_v42 = vsub.f32 %v370_v23, %v7541_v53  ;;  %v7554_v1 = vand.u32 4294901760, %v369_v14 }
 0x19e   : > { %v5798_v55 = vmul.f32 %v7078_v9, %v5764_v17 }
 0x19f   : > { %v2179_v6 = vpop.f32.mrf.mxu3  ;;  %3093 = vmatmul.f32.gmra.mxu0 %v6918_v48  ;;  %v7549_v49 = vpop.f32.mrf.mxu1  ;;  %v8492_v27 = vand.u32 4294901760, %v7552_v42  ;;  %v7560_v60 = vsub.f32 %v369_v14, %v7554_v1 }
 0x1a0   : > { %v2144_v57 = vpop.f32.mrf.mxu2  ;;  %v5866_v16 = vrot.slane %v5798_v55, 4 }
 0x1a1   : > { %v2180_v28 = vadd.f32 %v2179_v6, %v2144_v57  ;;  %v3494_v39 = vsub.f32 %v7552_v42, %v8492_v27  ;;  %v8496_v17 = vand.u32 4294901760, %v7560_v60 }
 0x1a2   : > { %v5867_v58 = vadd.f32 %v5866_v16, %v5798_v55  ;;  %3128 = vmatmul.f32.gmra.mxu1 %v6884_v18 }
 0x1a3   : > { %v3495_v16 = vand.u32 4294901760, %v3494_v39  ;;  %v3500_v27 = vsub.f32 %v7560_v60, %v8496_v17  ;;  %v371_v17 = vmul.f32 %v7586_v35, %v7339_v0  ;;  %v8548_v0 = vmax.f32 %v7482_v11, %v7513_v21 }
 0x1a4   : > { %3314 = vmatmul.f32.vlgmr.msra.gmra.mxu3 %v6880_v13  ;;  %v5868_v7 = vrot.slane %v5867_v58, 2  ;;  %v2205_v31 = vpop.f32.mrf.mxu0  ;;  %3275 = vmatmul.f32.vlgmr.msra.gmra.mxu2 %v6905_v38 }
 0x1a5   : > { %3558 = vmatpush.msra.mxu3 %v7541_v53  ;;  %3528 = vmatpush.msra.mxu2 %v7552_v42  ;;  %v2206_v55 = vadd.f32 %v2205_v31, %v2176_v22  ;;  %v372_v22 = vmul.f32 %v7576_v62, %v7326_v40  ;;  %v3501_v31 = vand.u32 4294901760, %v3500_v27 }
 0x1a6   : > { %v5869_v23 = vadd.f32 %v5868_v7, %v5867_v58 }
 0x1a7   : > { %v2295_v6 = vpop.f32.mrf.mxu3  ;;  %3560 = vmatpush.msra.mxu3 %v7554_v1  ;;  %3217 = vmatmul.f32.vlgmr.msra.gmra.mxu0 %v6880_v13  ;;  %v2235_v14 = vpop.f32.mrf.mxu1  ;;  %v7581_v29 = vand.u32 4294901760, %v372_v22 }
 0x1a8   : > { %v2268_v57 = vpop.f32.mrf.mxu2  ;;  %3531 = vmatpush.msra.mxu2 %v7560_v60  ;;  %v5870_v58 = vrot.slane %v5869_v23, 1  ;;  %v2236_v7 = vadd.f32 %v2235_v14, %v2206_v55  ;;  %3457 = vmatpush.msra.mxu0 %v7541_v53  ;;  %v7598_v14 = vand.u32 4294901760, %v371_v17 }
 0x1a9   : > { %v7592_v40 = vsub.f32 %v372_v22, %v7581_v29 }
 0x1aa   : > { %v5871_v59 = vadd.f32 %v5870_v58, %v5869_v23  ;;  %v2269_v39 = vadd.f32 %v2268_v57, %v2236_v7  ;;  %3244 = vmatmul.f32.vlgmr.msra.gmra.mxu1 %v6880_v13  ;;  %3459 = vmatpush.msra.mxu0 %v7554_v1 }
 0x1ab   : > { %3496 = vmatpush.msra.mxu1 %v3495_v16 }
 0x1ac   : > { %3318 = vmatmul.f32.gmra.mxu3 %v6884_v18  ;;  %v7595_v27 = vadd.f32 %v7149_v44, %v5871_v59  ;;  %v2296_v23 = vadd.f32 %v2295_v6, %v2269_v39  ;;  %v2210_v55 = vpop.f32.mrf.mxu0  ;;  %3283 = vmatmul.f32.gmra.mxu2 %v6918_v48  ;;  %v3683_v59 = vand.u32 4294901760, %v7592_v40  ;;  %v7609_v6 = vsub.f32 %v371_v17, %v7598_v14 }
 0x1ad   : > { %v2211_v57 = vadd.f32 %v2210_v55, %v2180_v28  ;;  %3502 = vmatpush.msra.mxu1 %v3501_v31 }
 0x1ae   : > { %8547 = vst [vmem:[#allocation26_spill] sm:$0xff] %v7595_v27  ;;  %v7604_v58 = vmax.f32 %v8548_v0, %v7595_v27  ;;  %v5737_v16 = vadd.f32 %v7057_v51, %v2296_v23  ;;  %v3684_v55 = vsub.f32 %v7592_v40, %v3683_v59  ;;  %v3689_v11 = vand.u32 4294901760, %v7609_v6 }
 0x1af   : > { %v2299_v22 = vpop.f32.mrf.mxu3  ;;  %3221 = vmatmul.f32.gmra.mxu0 %v6884_v18  ;;  %v2241_v7 = vpop.f32.mrf.mxu1 }
 0x1b0   : > { %v2272_v39 = vpop.f32.mrf.mxu2  ;;  %v5765_v28 = vmax.f32 %v5737_v16, 0.0  ;;  %v2242_v31 = vadd.f32 %v2241_v7, %v2211_v57  ;;  %v3685_v23 = vand.u32 4294901760, %v3684_v55  ;;  %v3690_v21 = vsub.f32 %v7609_v6, %v3689_v11 }
 0x1b2   : > { %v5799_v0 = vmul.f32 %v7078_v9, %v5765_v28  ;;  %v2273_v27 = vadd.f32 %v2272_v39, %v2242_v31  ;;  %3248 = vmatmul.f32.gmra.mxu1 %v6884_v18  ;;  %v3691_v57 = vand.u32 4294901760, %v3690_v21  ;;  %v8551_v21 = vand.u32 4294901760, %v7560_v60 }
 0x1b4   : > { %3434 = vmatmul.f32.vlgmr.msrb.gmra.mxu3 %v6880_v13  ;;  %v5872_v17 = vrot.slane %v5799_v0, 4  ;;  %v7618_v25 = vadd.f32 %v2299_v22, %v2273_v27  ;;  %v2326_v36 = vpop.f32.mrf.mxu0  ;;  %3407 = vmatmul.f32.vlgmr.msrb.gmra.mxu2 %v6880_v13  ;;  %v8550_v27 = vand.u32 4294901760, %v7552_v42 }
 0x1b5   : > { %3686 = vmatpush.msrb.mxu3 %v3685_v23  ;;  %3647 = vmatpush.msrb.mxu2 %v7581_v29 }
 0x1b6   : > { %8549 = vst [vmem:[#allocation27_spill] sm:$0xff] %v7618_v25  ;;  %v5873_v16 = vadd.f32 %v5872_v17, %v5799_v0 }
 0x1b7   : > { %v2425_v7 = vpop.f32.mrf.mxu3  ;;  %3692 = vmatpush.msrb.mxu3 %v3691_v57  ;;  %3344 = vmatmul.f32.vlgmr.msrb.gmra.mxu0 %v6887_v20  ;;  %v2365_v39 = vpop.f32.mrf.mxu1 }
 0x1b8   : > { %v2395_v28 = vpop.f32.mrf.mxu2  ;;  %3649 = vmatpush.msrb.mxu2 %v7598_v14  ;;  %v5874_v31 = vrot.slane %v5873_v16, 2  ;;  %v2366_v55 = vadd.f32 %v2365_v39, %v2326_v36  ;;  %3591 = vmatpush.msrb.mxu0 %v8550_v27 }
 0x1ba   : > { %v5875_v22 = vadd.f32 %v5874_v31, %v5873_v16  ;;  %v2396_v25 = vadd.f32 %v2395_v28, %v2366_v55  ;;  %3374 = vmatmul.f32.vlgmr.msrb.gmra.mxu1 %v6893_v26  ;;  %3595 = vmatpush.msrb.mxu0 %v8551_v21 }
 0x1bb   : > { %3620 = vmatpush.msrb.mxu1 %v7541_v53 }
 0x1bc   : > { %3438 = vmatmul.f32.gmra.mxu3 %v6884_v18  ;;  %v5876_v0 = vrot.slane %v5875_v22, 1  ;;  %v2426_v23 = vadd.f32 %v2425_v7, %v2396_v25  ;;  %v2334_v17 = vpop.f32.mrf.mxu0  ;;  %3411 = vmatmul.f32.gmra.mxu2 %v6884_v18 }
 0x1bd   : > { %3622 = vmatpush.msrb.mxu1 %v7554_v1 }
 0x1be   : > { %v5877_v36 = vadd.f32 %v5876_v0, %v5875_v22 }
 0x1bf   : > { %v2431_v42 = vpop.f32.mrf.mxu3  ;;  %3349 = vmatmul.f32.gmra.mxu0 %v6890_v24  ;;  %v2369_v57 = vpop.f32.mrf.mxu1 }
 0x1c0   : > { %v2400_v16 = vpop.f32.mrf.mxu2  ;;  %v7635_v60 = vadd.f32 %v7149_v44, %v5877_v36  ;;  %v2370_v39 = vadd.f32 %v2369_v57, %v2334_v17 }
 0x1c2   : > { %8552 = vst [vmem:[#allocation28_spill] sm:$0xff] %v7635_v60  ;;  %v6023_v53 = vmax.f32 %v7604_v58, %v7635_v60  ;;  %v2401_v28 = vadd.f32 %v2400_v16, %v2370_v39  ;;  %3380 = vmatmul.f32.gmra.mxu1 %v6902_v34 }
 0x1c4   : > { %3564 = vmatmul.f32.vlgmr.msra.gmra.mxu3 %v6893_v26  ;;  %v7641_v25 = vadd.f32 %v2431_v42, %v2401_v28  ;;  %v2458_v1 = vpop.f32.mrf.mxu0  ;;  %3534 = vmatmul.f32.vlgmr.msra.gmra.mxu2 %v6887_v20 }
 0x1c5   : > { %3810 = vmatpush.msra.mxu3 %v7581_v29  ;;  %3781 = vmatpush.msra.mxu2 %v3683_v59  ;;  %v2459_v7 = vadd.f32 %v2458_v1, %v2426_v23 }
 0x1c7   : > { %v2555_v31 = vpop.f32.mrf.mxu3  ;;  %3812 = vmatpush.msra.mxu3 %v7598_v14  ;;  %3465 = vmatmul.f32.vlgmr.msra.gmra.mxu0 %v6905_v38  ;;  %v2485_v55 = vpop.f32.mrf.mxu1 }
 0x1c8   : > { %v2516_v27 = vpop.f32.mrf.mxu2  ;;  %3785 = vmatpush.msra.mxu2 %v3689_v11  ;;  %v2486_v22 = vadd.f32 %v2485_v55, %v2459_v7  ;;  %3718 = vmatpush.msra.mxu0 %v7592_v40  ;;  %v374_v11 = vmul.f32 %v7413_v4, %v7329_v19 }
 0x1c9   : > { %v2556_v21 = vadd.f32 %v2555_v31, %v2516_v27 }
 0x1ca   : > { %v5738_v0 = vadd.f32 %v7057_v51, %v2486_v22  ;;  %3504 = vmatmul.f32.vlgmr.msra.gmra.mxu1 %v6880_v13  ;;  %3721 = vmatpush.msra.mxu0 %v7609_v6  ;;  %v7660_v36 = vand.u32 4294901760, %v374_v11  ;;  %v373_v6 = vmul.f32 %v7422_v54, %v7342_v43 }
 0x1cb   : > { %3748 = vmatpush.msra.mxu1 %v7581_v29 }
 0x1cc   : > { %3570 = vmatmul.f32.gmra.mxu3 %v6902_v34  ;;  %v5766_v59 = vmax.f32 %v5738_v0, 0.0  ;;  %v7653_v23 = vpop.f32.mrf.mxu0  ;;  %3539 = vmatmul.f32.gmra.mxu2 %v6890_v24  ;;  %v7668_v39 = vsub.f32 %v374_v11, %v7660_v36  ;;  %v7670_v4 = vand.u32 4294901760, %v373_v6 }
 0x1cd   : > { %3750 = vmatpush.msra.mxu1 %v7598_v14 }
 0x1ce   : > { %v5800_v40 = vmul.f32 %v7078_v9, %v5766_v59  ;;  %v8502_v28 = vand.u32 4294901760, %v7668_v39  ;;  %v7676_v54 = vsub.f32 %v373_v6, %v7670_v4  ;;  %v376_v6 = vmul.f32 %v7454_v12, %v7329_v19 }
 0x1cf   : > { %v2559_v17 = vpop.f32.mrf.mxu3  ;;  %3473 = vmatmul.f32.gmra.mxu0 %v6918_v48  ;;  %v7665_v29 = vpop.f32.mrf.mxu1 }
 0x1d0   : > { %8553 = vst [vmem:[#allocation29_spill] sm:$0xff] %v7665_v29  ;;  %v2524_v42 = vpop.f32.mrf.mxu2  ;;  %v5878_v57 = vrot.slane %v5800_v40, 4  ;;  %v3874_v31 = vsub.f32 %v7668_v39, %v8502_v28  ;;  %v8501_v55 = vand.u32 4294901760, %v7676_v54 }
 0x1d1   : > { %v2560_v16 = vadd.f32 %v2559_v17, %v2524_v42 }
 0x1d2   : > { %v5879_v14 = vadd.f32 %v5878_v57, %v5800_v40  ;;  %3508 = vmatmul.f32.gmra.mxu1 %v6884_v18  ;;  %v3875_v40 = vand.u32 4294901760, %v3874_v31  ;;  %v3880_v17 = vsub.f32 %v7676_v54, %v8501_v55  ;;  %v375_v31 = vmul.f32 %v7464_v10, %v7342_v43 }
 0x1d4   : > { %3694 = vmatmul.f32.vlgmr.msrb.gmra.mxu3 %v6880_v13  ;;  %v5880_v1 = vrot.slane %v5879_v14, 2  ;;  %v2585_v7 = vpop.f32.mrf.mxu0  ;;  %3655 = vmatmul.f32.vlgmr.msrb.gmra.mxu2 %v6905_v38 }
 0x1d5   : > { %3938 = vmatpush.msrb.mxu3 %v7660_v36  ;;  %3908 = vmatpush.msrb.mxu2 %v7668_v39  ;;  %v2586_v22 = vadd.f32 %v2585_v7, %v2556_v21  ;;  %v3881_v21 = vand.u32 4294901760, %v3880_v17 }
 0x1d6   : > { %v5881_v27 = vadd.f32 %v5880_v1, %v5879_v14  ;;  %v7694_v14 = vand.u32 4294901760, %v376_v6 }
 0x1d7   : > { %v2675_v0 = vpop.f32.mrf.mxu3  ;;  %3940 = vmatpush.msrb.mxu3 %v7670_v4  ;;  %3597 = vmatmul.f32.vlgmr.msrb.gmra.mxu0 %v6880_v13  ;;  %v2615_v59 = vpop.f32.mrf.mxu1 }
 0x1d8   : > { %v2648_v11 = vpop.f32.mrf.mxu2  ;;  %3911 = vmatpush.msrb.mxu2 %v7676_v54  ;;  %v5882_v42 = vrot.slane %v5881_v27, 1  ;;  %v2616_v57 = vadd.f32 %v2615_v59, %v2586_v22  ;;  %3837 = vmatpush.msrb.mxu0 %v7660_v36  ;;  %v7702_v55 = vsub.f32 %v376_v6, %v7694_v14 }
 0x1da   : > { %v5883_v1 = vadd.f32 %v5882_v42, %v5881_v27  ;;  %v2649_v7 = vadd.f32 %v2648_v11, %v2616_v57  ;;  %3624 = vmatmul.f32.vlgmr.msrb.gmra.mxu1 %v6880_v13  ;;  %3839 = vmatpush.msrb.mxu0 %v7670_v4  ;;  %v7708_v27 = vand.u32 4294901760, %v375_v31  ;;  %v4063_v57 = vand.u32 4294901760, %v7702_v55 }
 0x1db   : > { %3876 = vmatpush.msrb.mxu1 %v3875_v40 }
 0x1dc   : > { %3698 = vmatmul.f32.gmra.mxu3 %v6884_v18  ;;  %v7705_v22 = vadd.f32 %v7149_v44, %v5883_v1  ;;  %v2676_v59 = vadd.f32 %v2675_v0, %v2649_v7  ;;  %v2590_v17 = vpop.f32.mrf.mxu0  ;;  %3663 = vmatmul.f32.gmra.mxu2 %v6918_v48  ;;  %v7719_v0 = vsub.f32 %v375_v31, %v7708_v27 }
 0x1dd   : > { %v2591_v11 = vadd.f32 %v2590_v17, %v2560_v16  ;;  %3882 = vmatpush.msrb.mxu1 %v3881_v21  ;;  %v4064_v17 = vsub.f32 %v7702_v55, %v4063_v57 }
 0x1de   : > { %8554 = vst [vmem:[#allocation30_spill] sm:$0xff] %v7705_v22  ;;  %v7714_v42 = vmax.f32 %v6023_v53, %v7705_v22  ;;  %v5739_v40 = vadd.f32 %v7057_v51, %v2676_v59  ;;  %v4069_v58 = vand.u32 4294901760, %v7719_v0 }
 0x1df   : > { %v2679_v6 = vpop.f32.mrf.mxu3  ;;  %3601 = vmatmul.f32.gmra.mxu0 %v6884_v18  ;;  %v2621_v1 = vpop.f32.mrf.mxu1  ;;  %v4065_v59 = vand.u32 4294901760, %v4064_v17 }
 0x1e0   : > { %v2652_v7 = vpop.f32.mrf.mxu2  ;;  %v5767_v16 = vmax.f32 %v5739_v40, 0.0  ;;  %v2622_v21 = vadd.f32 %v2621_v1, %v2591_v11  ;;  %v4070_v22 = vsub.f32 %v7719_v0, %v4069_v58 }
 0x1e2   : > { %v5801_v53 = vmul.f32 %v7078_v9, %v5767_v16  ;;  %v2653_v28 = vadd.f32 %v2652_v7, %v2622_v21  ;;  %3628 = vmatmul.f32.gmra.mxu1 %v6884_v18  ;;  %v4071_v11 = vand.u32 4294901760, %v4070_v22  ;;  %v8557_v22 = vand.u32 4294901760, %v7676_v54 }
 0x1e4   : > { %3814 = vmatmul.f32.vlgmr.msra.gmra.mxu3 %v6880_v13  ;;  %v5884_v31 = vrot.slane %v5801_v53, 4  ;;  %v7728_v60 = vadd.f32 %v2679_v6, %v2653_v28  ;;  %v2706_v3 = vpop.f32.mrf.mxu0  ;;  %3787 = vmatmul.f32.vlgmr.msra.gmra.mxu2 %v6880_v13  ;;  %v8556_v28 = vand.u32 4294901760, %v7668_v39 }
 0x1e5   : > { %4066 = vmatpush.msra.mxu3 %v4065_v59  ;;  %4027 = vmatpush.msra.mxu2 %v7694_v14 }
 0x1e6   : > { %8555 = vst [vmem:[#allocation31_spill] sm:$0xff] %v7728_v60  ;;  %v5885_v40 = vadd.f32 %v5884_v31, %v5801_v53 }
 0x1e7   : > { %v2805_v1 = vpop.f32.mrf.mxu3  ;;  %4072 = vmatpush.msra.mxu3 %v4071_v11  ;;  %3724 = vmatmul.f32.vlgmr.msra.gmra.mxu0 %v6887_v20  ;;  %v2745_v7 = vpop.f32.mrf.mxu1 }
 0x1e8   : > { %v2775_v16 = vpop.f32.mrf.mxu2  ;;  %4029 = vmatpush.msra.mxu2 %v7708_v27  ;;  %v5886_v21 = vrot.slane %v5885_v40, 2  ;;  %v2746_v17 = vadd.f32 %v2745_v7, %v2706_v3  ;;  %3971 = vmatpush.msra.mxu0 %v8556_v28 }
 0x1ea   : > { %v5887_v6 = vadd.f32 %v5886_v21, %v5885_v40  ;;  %v2776_v60 = vadd.f32 %v2775_v16, %v2746_v17  ;;  %3754 = vmatmul.f32.vlgmr.msra.gmra.mxu1 %v6893_v26  ;;  %3975 = vmatpush.msra.mxu0 %v8557_v22 }
 0x1eb   : > { %4000 = vmatpush.msra.mxu1 %v7660_v36 }
 0x1ec   : > { %3818 = vmatmul.f32.gmra.mxu3 %v6884_v18  ;;  %v5888_v53 = vrot.slane %v5887_v6, 1  ;;  %v2806_v59 = vadd.f32 %v2805_v1, %v2776_v60  ;;  %v2714_v31 = vpop.f32.mrf.mxu0  ;;  %3791 = vmatmul.f32.gmra.mxu2 %v6884_v18 }
 0x1ed   : > { %4002 = vmatpush.msra.mxu1 %v7670_v4 }
 0x1ee   : > { %v5889_v3 = vadd.f32 %v5888_v53, %v5887_v6 }
 0x1ef   : > { %v2811_v39 = vpop.f32.mrf.mxu3  ;;  %3729 = vmatmul.f32.gmra.mxu0 %v6890_v24  ;;  %v2749_v11 = vpop.f32.mrf.mxu1 }
 0x1f0   : > { %v2780_v40 = vpop.f32.mrf.mxu2  ;;  %v7745_v54 = vadd.f32 %v7149_v44, %v5889_v3  ;;  %v2750_v7 = vadd.f32 %v2749_v11, %v2714_v31 }
 0x1f2   : > { %8558 = vst [vmem:[#allocation32_spill] sm:$0xff] %v7745_v54  ;;  %v2781_v16 = vadd.f32 %v2780_v40, %v2750_v7  ;;  %3760 = vmatmul.f32.gmra.mxu1 %v6902_v34 }
 0x1f4   : > { %3944 = vmatmul.f32.vlgmr.msrb.gmra.mxu3 %v6893_v26  ;;  %v7751_v60 = vadd.f32 %v2811_v39, %v2781_v16  ;;  %v2838_v4 = vpop.f32.mrf.mxu0  ;;  %3914 = vmatmul.f32.vlgmr.msrb.gmra.mxu2 %v6887_v20 }
 0x1f5   : > { %4190 = vmatpush.msrb.mxu3 %v7694_v14  ;;  %4161 = vmatpush.msrb.mxu2 %v4063_v57  ;;  %v2839_v1 = vadd.f32 %v2838_v4, %v2806_v59 }
 0x1f7   : > { %v2935_v21 = vpop.f32.mrf.mxu3  ;;  %4192 = vmatpush.msrb.mxu3 %v7708_v27  ;;  %3845 = vmatmul.f32.vlgmr.msrb.gmra.mxu0 %v6905_v38  ;;  %v2865_v17 = vpop.f32.mrf.mxu1 }
 0x1f8   : > { %v2896_v28 = vpop.f32.mrf.mxu2  ;;  %4165 = vmatpush.msrb.mxu2 %v4069_v58  ;;  %v2866_v6 = vadd.f32 %v2865_v17, %v2839_v1  ;;  %4098 = vmatpush.msrb.mxu0 %v7702_v55  ;;  %v378_v58 = vmul.f32 %v7535_v2, %v7329_v19 }
 0x1f9   : > { %v2936_v22 = vadd.f32 %v2935_v21, %v2896_v28 }
 0x1fa   : > { %v5740_v53 = vadd.f32 %v7057_v51, %v2866_v6  ;;  %3884 = vmatmul.f32.vlgmr.msrb.gmra.mxu1 %v6880_v13  ;;  %4101 = vmatpush.msrb.mxu0 %v7719_v0  ;;  %v7770_v3 = vand.u32 4294901760, %v378_v58  ;;  %v377_v0 = vmul.f32 %v7544_v15, %v7342_v43 }
 0x1fb   : > { %4128 = vmatpush.msrb.mxu1 %v7694_v14 }
 0x1fc   : > { %3950 = vmatmul.f32.gmra.mxu3 %v6902_v34  ;;  %v5768_v57 = vmax.f32 %v5740_v53, 0.0  ;;  %v7763_v59 = vpop.f32.mrf.mxu0  ;;  %3919 = vmatmul.f32.gmra.mxu2 %v6890_v24  ;;  %v7778_v7 = vsub.f32 %v378_v58, %v7770_v3  ;;  %v7780_v19 = vand.u32 4294901760, %v377_v0 }
 0x1fd   : > { %4130 = vmatpush.msrb.mxu1 %v7708_v27 }
 0x1fe   : > { %v5802_v55 = vmul.f32 %v7078_v9, %v5768_v57  ;;  %v8506_v16 = vand.u32 4294901760, %v7778_v7  ;;  %v7786_v43 = vsub.f32 %v377_v0, %v7780_v19  ;;  %v6535_v0 = vld [vmem:[%s6842_s30 + $0x38] sm:$0xff] }
 0x1ff   : > { %v2939_v31 = vpop.f32.mrf.mxu3  ;;  %3853 = vmatmul.f32.gmra.mxu0 %v6918_v48  ;;  %v7775_v14 = vpop.f32.mrf.mxu1 }
 0x200   : > { %8559 = vst [vmem:[#allocation33_spill] sm:$0xff] %v7775_v14  ;;  %v2904_v39 = vpop.f32.mrf.mxu2  ;;  %v5890_v11 = vrot.slane %v5802_v55, 4  ;;  %v4254_v21 = vsub.f32 %v7778_v7, %v8506_v16  ;;  %v8507_v17 = vand.u32 4294901760, %v7786_v43 }
 0x201   : > { %v2940_v40 = vadd.f32 %v2939_v31, %v2904_v39  ;;  %v380_v39 = vmul.f32 %v6535_v0, %v7576_v62 }
 0x202   : > { %v5891_v27 = vadd.f32 %v5890_v11, %v5802_v55  ;;  %3888 = vmatmul.f32.gmra.mxu1 %v6884_v18  ;;  %v4255_v55 = vand.u32 4294901760, %v4254_v21  ;;  %v4260_v31 = vsub.f32 %v7786_v43, %v8507_v17  ;;  %v6536_v21 = vld [vmem:[%s6842_s30 + $0x30] sm:$0xff] }
 0x203   : > { %v379_v36 = vmul.f32 %v6536_v21, %v7586_v35 }
 0x204   : > { %4074 = vmatmul.f32.vlgmr.msra.gmra.mxu3 %v6880_v13  ;;  %v5892_v4 = vrot.slane %v5891_v27, 2  ;;  %v2965_v1 = vpop.f32.mrf.mxu0  ;;  %4035 = vmatmul.f32.vlgmr.msra.gmra.mxu2 %v6905_v38 }
 0x205   : > { %4318 = vmatpush.msra.mxu3 %v7770_v3  ;;  %4288 = vmatpush.msra.mxu2 %v7778_v7  ;;  %v2966_v6 = vadd.f32 %v2965_v1, %v2936_v22 }
 0x206   : > { %v5893_v28 = vadd.f32 %v5892_v4, %v5891_v27  ;;  %v4261_v27 = vand.u32 4294901760, %v4260_v31  ;;  %v7804_v4 = vand.u32 4294901760, %v380_v39 }
 0x207   : > { %v3055_v53 = vpop.f32.mrf.mxu3  ;;  %4320 = vmatpush.msra.mxu3 %v7780_v19  ;;  %3977 = vmatmul.f32.vlgmr.msra.gmra.mxu0 %v6880_v13  ;;  %v2995_v57 = vpop.f32.mrf.mxu1 }
 0x208   : > { %v3028_v58 = vpop.f32.mrf.mxu2  ;;  %4291 = vmatpush.msra.mxu2 %v7786_v43  ;;  %v5894_v11 = vrot.slane %v5893_v28, 1  ;;  %v2996_v22 = vadd.f32 %v2995_v57, %v2966_v6  ;;  %4217 = vmatpush.msra.mxu0 %v7770_v3  ;;  %v7812_v0 = vsub.f32 %v380_v39, %v7804_v4 }
 0x20a   : > { %v5895_v1 = vadd.f32 %v5894_v11, %v5893_v28  ;;  %v3029_v16 = vadd.f32 %v3028_v58, %v2996_v22  ;;  %4004 = vmatmul.f32.vlgmr.msra.gmra.mxu1 %v6880_v13  ;;  %4219 = vmatpush.msra.mxu0 %v7780_v19  ;;  %v7818_v28 = vand.u32 4294901760, %v379_v36  ;;  %v8561_v11 = vmax.f32 %v7714_v42, %v7745_v54 }
 0x20b   : > { %4256 = vmatpush.msra.mxu1 %v4255_v55 }
 0x20c   : > { %4078 = vmatmul.f32.gmra.mxu3 %v6884_v18  ;;  %v7815_v6 = vadd.f32 %v7149_v44, %v5895_v1  ;;  %v3056_v57 = vadd.f32 %v3055_v53, %v3029_v16  ;;  %v2970_v31 = vpop.f32.mrf.mxu0  ;;  %4043 = vmatmul.f32.gmra.mxu2 %v6918_v48  ;;  %v4443_v1 = vand.u32 4294901760, %v7812_v0  ;;  %v7829_v16 = vsub.f32 %v379_v36, %v7818_v28 }
 0x20d   : > { %v2971_v58 = vadd.f32 %v2970_v31, %v2940_v40  ;;  %4262 = vmatpush.msra.mxu1 %v4261_v27 }
 0x20e   : > { %8560 = vst [vmem:[#allocation34_spill] sm:$0xff] %v7815_v6  ;;  %v7824_v22 = vmax.f32 %v8561_v11, %v7815_v6  ;;  %v5741_v55 = vadd.f32 %v7057_v51, %v3056_v57  ;;  %v4444_v31 = vsub.f32 %v7812_v0, %v4443_v1  ;;  %v4449_v42 = vand.u32 4294901760, %v7829_v16 }
 0x20f   : > { %v3059_v39 = vpop.f32.mrf.mxu3  ;;  %3981 = vmatmul.f32.gmra.mxu0 %v6884_v18  ;;  %v3001_v53 = vpop.f32.mrf.mxu1 }
 0x210   : > { %v3032_v21 = vpop.f32.mrf.mxu2  ;;  %v5769_v40 = vmax.f32 %v5741_v55, 0.0  ;;  %v3002_v27 = vadd.f32 %v3001_v53, %v2971_v58  ;;  %v4445_v57 = vand.u32 4294901760, %v4444_v31  ;;  %v4450_v6 = vsub.f32 %v7829_v16, %v4449_v42 }
 0x212   : > { %v5803_v11 = vmul.f32 %v7078_v9, %v5769_v40  ;;  %v3033_v17 = vadd.f32 %v3032_v21, %v3002_v27  ;;  %4008 = vmatmul.f32.gmra.mxu1 %v6884_v18  ;;  %v4451_v58 = vand.u32 4294901760, %v4450_v6  ;;  %v8564_v6 = vand.u32 4294901760, %v7786_v43 }
 0x214   : > { %4194 = vmatmul.f32.vlgmr.msrb.gmra.mxu3 %v6880_v13  ;;  %v5896_v36 = vrot.slane %v5803_v11, 4  ;;  %v7838_v54 = vadd.f32 %v3059_v39, %v3033_v17  ;;  %v3086_v47 = vpop.f32.mrf.mxu0  ;;  %4167 = vmatmul.f32.vlgmr.msrb.gmra.mxu2 %v6880_v13  ;;  %v8563_v17 = vand.u32 4294901760, %v7778_v7 }
 0x215   : > { %4446 = vmatpush.msrb.mxu3 %v4445_v57  ;;  %4407 = vmatpush.msrb.mxu2 %v7804_v4 }
 0x216   : > { %8562 = vst [vmem:[#allocation35_spill] sm:$0xff] %v7838_v54  ;;  %v5897_v55 = vadd.f32 %v5896_v36, %v5803_v11 }
 0x217   : > { %v3185_v53 = vpop.f32.mrf.mxu3  ;;  %4452 = vmatpush.msrb.mxu3 %v4451_v58  ;;  %4104 = vmatmul.f32.vlgmr.msrb.gmra.mxu0 %v6887_v20  ;;  %v3125_v21 = vpop.f32.mrf.mxu1 }
 0x218   : > { %v3155_v40 = vpop.f32.mrf.mxu2  ;;  %4409 = vmatpush.msrb.mxu2 %v7818_v28  ;;  %v5898_v27 = vrot.slane %v5897_v55, 2  ;;  %v3126_v31 = vadd.f32 %v3125_v21, %v3086_v47  ;;  %4351 = vmatpush.msrb.mxu0 %v8563_v17 }
 0x21a   : > { %v5899_v39 = vadd.f32 %v5898_v27, %v5897_v55  ;;  %v3156_v54 = vadd.f32 %v3155_v40, %v3126_v31  ;;  %4134 = vmatmul.f32.vlgmr.msrb.gmra.mxu1 %v6893_v26  ;;  %4355 = vmatpush.msrb.mxu0 %v8564_v6 }
 0x21b   : > { %4380 = vmatpush.msrb.mxu1 %v7770_v3 }
 0x21c   : > { %4198 = vmatmul.f32.gmra.mxu3 %v6884_v18  ;;  %v5900_v11 = vrot.slane %v5899_v39, 1  ;;  %v3186_v57 = vadd.f32 %v3185_v53, %v3156_v54  ;;  %v3094_v36 = vpop.f32.mrf.mxu0  ;;  %4171 = vmatmul.f32.gmra.mxu2 %v6884_v18 }
 0x21d   : > { %4382 = vmatpush.msrb.mxu1 %v7780_v19 }
 0x21e   : > { %v5901_v47 = vadd.f32 %v5900_v11, %v5899_v39 }
 0x21f   : > { %v3191_v7 = vpop.f32.mrf.mxu3  ;;  %4109 = vmatmul.f32.gmra.mxu0 %v6890_v24  ;;  %v3129_v58 = vpop.f32.mrf.mxu1 }
 0x220   : > { %v3160_v55 = vpop.f32.mrf.mxu2  ;;  %v7855_v43 = vadd.f32 %v7149_v44, %v5901_v47  ;;  %v3130_v21 = vadd.f32 %v3129_v58, %v3094_v36 }
 0x222   : > { %8565 = vst [vmem:[#allocation36_spill] sm:$0xff] %v7855_v43  ;;  %v3161_v40 = vadd.f32 %v3160_v55, %v3130_v21  ;;  %4140 = vmatmul.f32.gmra.mxu1 %v6902_v34 }
 0x224   : > { %4324 = vmatmul.f32.vlgmr.msra.gmra.mxu3 %v6893_v26  ;;  %v7861_v54 = vadd.f32 %v3191_v7, %v3161_v40  ;;  %v3218_v19 = vpop.f32.mrf.mxu0  ;;  %4294 = vmatmul.f32.vlgmr.msra.gmra.mxu2 %v6887_v20  ;;  %v7886_v7 = vld [vmem:[%s6842_s30 + $0x40] sm:$0xff] }
 0x225   : > { %4570 = vmatpush.msra.mxu3 %v7804_v4  ;;  %4541 = vmatpush.msra.mxu2 %v4443_v1  ;;  %v3219_v53 = vadd.f32 %v3218_v19, %v3186_v57 }
 0x227   : > { %v3315_v27 = vpop.f32.mrf.mxu3  ;;  %4572 = vmatpush.msra.mxu3 %v7818_v28  ;;  %4225 = vmatmul.f32.vlgmr.msra.gmra.mxu0 %v6905_v38  ;;  %v3245_v31 = vpop.f32.mrf.mxu1 }
 0x228   : > { %v3276_v17 = vpop.f32.mrf.mxu2  ;;  %4545 = vmatpush.msra.mxu2 %v4449_v42  ;;  %v3246_v39 = vadd.f32 %v3245_v31, %v3219_v53  ;;  %4478 = vmatpush.msra.mxu0 %v7812_v0  ;;  %v7877_v42 = vld [vmem:[%s6842_s30 + $0x48] sm:$0xff] }
 0x229   : > { %v3316_v6 = vadd.f32 %v3315_v27, %v3276_v17  ;;  %v382_v0 = vmul.f32 %v7877_v42, %v7454_v12 }
 0x22a   : > { %v5742_v11 = vadd.f32 %v7057_v51, %v3246_v39  ;;  %4264 = vmatmul.f32.vlgmr.msra.gmra.mxu1 %v6880_v13  ;;  %4481 = vmatpush.msra.mxu0 %v7829_v16 }
 0x22b   : > { %4508 = vmatpush.msra.mxu1 %v7804_v4  ;;  %v7883_v16 = vand.u32 4294901760, %v382_v0  ;;  %v381_v4 = vmul.f32 %v7886_v7, %v7464_v10 }
 0x22c   : > { %4330 = vmatmul.f32.gmra.mxu3 %v6902_v34  ;;  %v5770_v1 = vmax.f32 %v5742_v11, 0.0  ;;  %v7873_v57 = vpop.f32.mrf.mxu0  ;;  %4299 = vmatmul.f32.gmra.mxu2 %v6890_v24 }
 0x22d   : > { %4510 = vmatpush.msra.mxu1 %v7818_v28  ;;  %v7894_v12 = vsub.f32 %v382_v0, %v7883_v16  ;;  %v7896_v28 = vand.u32 4294901760, %v381_v4 }
 0x22e   : > { %v5804_v36 = vmul.f32 %v7078_v9, %v5770_v1 }
 0x22f   : > { %v3319_v47 = vpop.f32.mrf.mxu3  ;;  %4233 = vmatmul.f32.gmra.mxu0 %v6918_v48  ;;  %v7891_v58 = vpop.f32.mrf.mxu1  ;;  %v8511_v53 = vand.u32 4294901760, %v7894_v12  ;;  %v7902_v10 = vsub.f32 %v381_v4, %v7896_v28 }
 0x230   : > { %8566 = vst [vmem:[#allocation37_spill] sm:$0xff] %v7891_v58  ;;  %v3284_v55 = vpop.f32.mrf.mxu2  ;;  %v5902_v21 = vrot.slane %v5804_v36, 4 }
 0x231   : > { %v3320_v40 = vadd.f32 %v3319_v47, %v3284_v55  ;;  %v4634_v17 = vsub.f32 %v7894_v12, %v8511_v53  ;;  %v8512_v39 = vand.u32 4294901760, %v7902_v10 }
 0x232   : > { %v5903_v19 = vadd.f32 %v5902_v21, %v5804_v36  ;;  %4268 = vmatmul.f32.gmra.mxu1 %v6884_v18  ;;  %v384_v21 = vmul.f32 %v7877_v42, %v7535_v2 }
 0x233   : > { %v4635_v4 = vand.u32 4294901760, %v4634_v17  ;;  %v4640_v55 = vsub.f32 %v7902_v10, %v8512_v39  ;;  %v383_v17 = vmul.f32 %v7886_v7, %v7544_v15  ;;  %v8568_v15 = vmax.f32 %v7824_v22, %v7855_v43 }
 0x234   : > { %4454 = vmatmul.f32.vlgmr.msrb.gmra.mxu3 %v6880_v13  ;;  %v5904_v27 = vrot.slane %v5903_v19, 2  ;;  %v3345_v31 = vpop.f32.mrf.mxu0  ;;  %4415 = vmatmul.f32.vlgmr.msrb.gmra.mxu2 %v6905_v38 }
 0x235   : > { %4698 = vmatpush.msrb.mxu3 %v7883_v16  ;;  %4668 = vmatpush.msrb.mxu2 %v7894_v12  ;;  %v3346_v1 = vadd.f32 %v3345_v31, %v3316_v6  ;;  %v4641_v6 = vand.u32 4294901760, %v4640_v55 }
 0x236   : > { %v5905_v11 = vadd.f32 %v5904_v27, %v5903_v19  ;;  %v7920_v27 = vand.u32 4294901760, %v384_v21 }
 0x237   : > { %v3435_v0 = vpop.f32.mrf.mxu3  ;;  %4700 = vmatpush.msrb.mxu3 %v7896_v28  ;;  %4357 = vmatmul.f32.vlgmr.msrb.gmra.mxu0 %v6880_v13  ;;  %v3375_v36 = vpop.f32.mrf.mxu1 }
 0x238   : > { %v3408_v47 = vpop.f32.mrf.mxu2  ;;  %4671 = vmatpush.msrb.mxu2 %v7902_v10  ;;  %v5906_v53 = vrot.slane %v5905_v11, 1  ;;  %v3376_v19 = vadd.f32 %v3375_v36, %v3346_v1  ;;  %4597 = vmatpush.msrb.mxu0 %v7883_v16  ;;  %v7928_v2 = vsub.f32 %v384_v21, %v7920_v27 }
 0x23a   : > { %v5907_v31 = vadd.f32 %v5906_v53, %v5905_v11  ;;  %v3409_v3 = vadd.f32 %v3408_v47, %v3376_v19  ;;  %4384 = vmatmul.f32.vlgmr.msrb.gmra.mxu1 %v6880_v13  ;;  %4599 = vmatpush.msrb.mxu0 %v7896_v28  ;;  %v7934_v53 = vand.u32 4294901760, %v383_v17  ;;  %v4823_v19 = vand.u32 4294901760, %v7928_v2 }
 0x23b   : > { %4636 = vmatpush.msrb.mxu1 %v4635_v4 }
 0x23c   : > { %4458 = vmatmul.f32.gmra.mxu3 %v6884_v18  ;;  %v7931_v1 = vadd.f32 %v7149_v44, %v5907_v31  ;;  %v3436_v36 = vadd.f32 %v3435_v0, %v3409_v3  ;;  %v3350_v55 = vpop.f32.mrf.mxu0  ;;  %4423 = vmatmul.f32.gmra.mxu2 %v6918_v48  ;;  %v7945_v3 = vsub.f32 %v383_v17, %v7934_v53 }
 0x23d   : > { %v3351_v11 = vadd.f32 %v3350_v55, %v3320_v40  ;;  %4642 = vmatpush.msrb.mxu1 %v4641_v6  ;;  %v4824_v55 = vsub.f32 %v7928_v2, %v4823_v19 }
 0x23e   : > { %8567 = vst [vmem:[#allocation38_spill] sm:$0xff] %v7931_v1  ;;  %v7940_v47 = vmax.f32 %v8568_v15, %v7931_v1  ;;  %v5743_v4 = vadd.f32 %v7057_v51, %v3436_v36  ;;  %v4829_v22 = vand.u32 4294901760, %v7945_v3 }
 0x23f   : > { %v3439_v21 = vpop.f32.mrf.mxu3  ;;  %4361 = vmatmul.f32.gmra.mxu0 %v6884_v18  ;;  %v3381_v0 = vpop.f32.mrf.mxu1  ;;  %v4825_v36 = vand.u32 4294901760, %v4824_v55 }
 0x240   : > { %v3412_v31 = vpop.f32.mrf.mxu2  ;;  %v5771_v40 = vmax.f32 %v5743_v4, 0.0  ;;  %v3382_v6 = vadd.f32 %v3381_v0, %v3351_v11  ;;  %v4830_v1 = vsub.f32 %v7945_v3, %v4829_v22 }
 0x242   : > { %v5805_v15 = vmul.f32 %v7078_v9, %v5771_v40  ;;  %v3413_v39 = vadd.f32 %v3412_v31, %v3382_v6  ;;  %4388 = vmatmul.f32.gmra.mxu1 %v6884_v18  ;;  %v4831_v11 = vand.u32 4294901760, %v4830_v1  ;;  %v8571_v1 = vand.u32 4294901760, %v7902_v10 }
 0x244   : > { %4574 = vmatmul.f32.vlgmr.msra.gmra.mxu3 %v6880_v13  ;;  %v5908_v17 = vrot.slane %v5805_v15, 4  ;;  %v7954_v43 = vadd.f32 %v3439_v21, %v3413_v39  ;;  %v3466_v58 = vpop.f32.mrf.mxu0  ;;  %4547 = vmatmul.f32.vlgmr.msra.gmra.mxu2 %v6880_v13  ;;  %v8570_v39 = vand.u32 4294901760, %v7894_v12 }
 0x245   : > { %4826 = vmatpush.msra.mxu3 %v4825_v36  ;;  %4787 = vmatpush.msra.mxu2 %v7920_v27 }
 0x246   : > { %8569 = vst [vmem:[#allocation39_spill] sm:$0xff] %v7954_v43  ;;  %v5909_v4 = vadd.f32 %v5908_v17, %v5805_v15 }
 0x247   : > { %v3565_v0 = vpop.f32.mrf.mxu3  ;;  %4832 = vmatpush.msra.mxu3 %v4831_v11  ;;  %4484 = vmatmul.f32.vlgmr.msra.gmra.mxu0 %v6887_v20  ;;  %v3505_v31 = vpop.f32.mrf.mxu1 }
 0x248   : > { %v3535_v40 = vpop.f32.mrf.mxu2  ;;  %4789 = vmatpush.msra.mxu2 %v7934_v53  ;;  %v5910_v6 = vrot.slane %v5909_v4, 2  ;;  %v3506_v55 = vadd.f32 %v3505_v31, %v3466_v58  ;;  %4731 = vmatpush.msra.mxu0 %v8570_v39 }
 0x24a   : > { %v5911_v21 = vadd.f32 %v5910_v6, %v5909_v4  ;;  %v3536_v43 = vadd.f32 %v3535_v40, %v3506_v55  ;;  %4514 = vmatmul.f32.vlgmr.msra.gmra.mxu1 %v6893_v26  ;;  %4735 = vmatpush.msra.mxu0 %v8571_v1 }
 0x24b   : > { %4760 = vmatpush.msra.mxu1 %v7883_v16 }
 0x24c   : > { %4578 = vmatmul.f32.gmra.mxu3 %v6884_v18  ;;  %v5912_v15 = vrot.slane %v5911_v21, 1  ;;  %v3566_v36 = vadd.f32 %v3565_v0, %v3536_v43  ;;  %v3474_v17 = vpop.f32.mrf.mxu0  ;;  %4551 = vmatmul.f32.gmra.mxu2 %v6884_v18 }
 0x24d   : > { %4762 = vmatpush.msra.mxu1 %v7896_v28 }
 0x24e   : > { %v5913_v58 = vadd.f32 %v5912_v15, %v5911_v21 }
 0x24f   : > { %v3571_v12 = vpop.f32.mrf.mxu3  ;;  %4489 = vmatmul.f32.gmra.mxu0 %v6890_v24  ;;  %v3509_v11 = vpop.f32.mrf.mxu1 }
 0x250   : > { %v3540_v4 = vpop.f32.mrf.mxu2  ;;  %v7971_v10 = vadd.f32 %v7149_v44, %v5913_v58  ;;  %v3510_v31 = vadd.f32 %v3509_v11, %v3474_v17 }
 0x252   : > { %8572 = vst [vmem:[#allocation40_spill] sm:$0xff] %v7971_v10  ;;  %v6029_v16 = vmax.f32 %v7940_v47, %v7971_v10  ;;  %v3541_v40 = vadd.f32 %v3540_v4, %v3510_v31  ;;  %4520 = vmatmul.f32.gmra.mxu1 %v6902_v34 }
 0x254   : > { %4704 = vmatmul.f32.vlgmr.msrb.gmra.mxu3 %v6893_v26  ;;  %v7977_v43 = vadd.f32 %v3571_v12, %v3541_v40  ;;  %v3598_v28 = vpop.f32.mrf.mxu0  ;;  %4674 = vmatmul.f32.vlgmr.msrb.gmra.mxu2 %v6887_v20 }
 0x255   : > { %4950 = vmatpush.msrb.mxu3 %v7920_v27  ;;  %4921 = vmatpush.msrb.mxu2 %v4823_v19  ;;  %v3599_v0 = vadd.f32 %v3598_v28, %v3566_v36 }
 0x257   : > { %v3695_v6 = vpop.f32.mrf.mxu3  ;;  %4952 = vmatpush.msrb.mxu3 %v7934_v53  ;;  %4605 = vmatmul.f32.vlgmr.msrb.gmra.mxu0 %v6905_v38  ;;  %v3625_v55 = vpop.f32.mrf.mxu1 }
 0x258   : > { %v3656_v39 = vpop.f32.mrf.mxu2  ;;  %4925 = vmatpush.msrb.mxu2 %v4829_v22  ;;  %v3626_v21 = vadd.f32 %v3625_v55, %v3599_v0  ;;  %4858 = vmatpush.msrb.mxu0 %v7928_v2  ;;  %v386_v22 = vmul.f32 %v7877_v42, %v7576_v62 }
 0x259   : > { %v3696_v1 = vadd.f32 %v3695_v6, %v3656_v39 }
 0x25a   : > { %v5744_v15 = vadd.f32 %v7057_v51, %v3626_v21  ;;  %4644 = vmatmul.f32.vlgmr.msrb.gmra.mxu1 %v6880_v13  ;;  %4861 = vmatpush.msrb.mxu0 %v7945_v3  ;;  %v7996_v58 = vand.u32 4294901760, %v386_v22  ;;  %v385_v3 = vmul.f32 %v7886_v7, %v7586_v35 }
 0x25b   : > { %4888 = vmatpush.msrb.mxu1 %v7920_v27 }
 0x25c   : > { %4710 = vmatmul.f32.gmra.mxu3 %v6902_v34  ;;  %v5772_v19 = vmax.f32 %v5744_v15, 0.0  ;;  %v7989_v36 = vpop.f32.mrf.mxu0  ;;  %4679 = vmatmul.f32.gmra.mxu2 %v6890_v24  ;;  %v8004_v31 = vsub.f32 %v386_v22, %v7996_v58  ;;  %v8006_v62 = vand.u32 4294901760, %v385_v3 }
 0x25d   : > { %4890 = vmatpush.msrb.mxu1 %v7934_v53 }
 0x25e   : > { %v5806_v2 = vmul.f32 %v7078_v9, %v5772_v19  ;;  %v8516_v53 = vand.u32 4294901760, %v8004_v31  ;;  %v8012_v35 = vsub.f32 %v385_v3, %v8006_v62 }
 0x25f   : > { %v3699_v17 = vpop.f32.mrf.mxu3  ;;  %4613 = vmatmul.f32.gmra.mxu0 %v6918_v48  ;;  %v8001_v27 = vpop.f32.mrf.mxu1 }
 0x260   : > { %8573 = vst [vmem:[#allocation41_spill] sm:$0xff] %v8001_v27  ;;  %v3664_v12 = vpop.f32.mrf.mxu2  ;;  %v5914_v11 = vrot.slane %v5806_v2, 4  ;;  %v5014_v28 = vsub.f32 %v8004_v31, %v8516_v53  ;;  %v8515_v0 = vand.u32 4294901760, %v8012_v35 }
 0x261   : > { %v3700_v4 = vadd.f32 %v3699_v17, %v3664_v12  ;;  %v8031_v17 = vld [vmem:[%s6842_s30 + $0x68] sm:$0xff] }
 0x262   : > { %v5915_v42 = vadd.f32 %v5914_v11, %v5806_v2  ;;  %4648 = vmatmul.f32.gmra.mxu1 %v6884_v18  ;;  %v5015_v19 = vand.u32 4294901760, %v5014_v28  ;;  %v5020_v22 = vsub.f32 %v8012_v35, %v8515_v0  ;;  %v8028_v2 = vld [vmem:[%s6842_s30 + $0x58] sm:$0xff]  ;;  %v8041_v28 = vld [vmem:[%s6842_s30 + $0x50] sm:$0xff]  ;;  %v8044_v0 = vld [vmem:[%s6842_s30 + $0x60] sm:$0xff] }
 0x263   : > { %v387_v53 = vmul.f32 %v8044_v0, %v8041_v28 }
 0x264   : > { %4834 = vmatmul.f32.vlgmr.msra.gmra.mxu3 %v6880_v13  ;;  %v5916_v7 = vrot.slane %v5915_v42, 2  ;;  %v3725_v40 = vpop.f32.mrf.mxu0  ;;  %4795 = vmatmul.f32.vlgmr.msra.gmra.mxu2 %v6905_v38  ;;  %v5021_v11 = vand.u32 4294901760, %v5020_v22 }
 0x265   : > { %5078 = vmatpush.msra.mxu3 %v7996_v58  ;;  %5048 = vmatpush.msra.mxu2 %v8004_v31  ;;  %v3726_v55 = vadd.f32 %v3725_v40, %v3696_v1  ;;  %v388_v1 = vmul.f32 %v8031_v17, %v8028_v2  ;;  %v8056_v22 = vand.u32 4294901760, %v387_v53 }
 0x266   : > { %v5917_v6 = vadd.f32 %v5916_v7, %v5915_v42 }
 0x267   : > { %v3815_v39 = vpop.f32.mrf.mxu3  ;;  %5080 = vmatpush.msra.mxu3 %v8006_v62  ;;  %4737 = vmatmul.f32.vlgmr.msra.gmra.mxu0 %v6880_v13  ;;  %v3755_v21 = vpop.f32.mrf.mxu1  ;;  %v8036_v42 = vand.u32 4294901760, %v388_v1 }
 0x268   : > { %v3788_v15 = vpop.f32.mrf.mxu2  ;;  %5051 = vmatpush.msra.mxu2 %v8012_v35  ;;  %v5918_v3 = vrot.slane %v5917_v6, 1  ;;  %v3756_v12 = vadd.f32 %v3755_v21, %v3726_v55  ;;  %4977 = vmatpush.msra.mxu0 %v7996_v58 }
 0x269   : > { %v8050_v55 = vsub.f32 %v388_v1, %v8036_v42 }
 0x26a   : > { %v5919_v7 = vadd.f32 %v5918_v3, %v5917_v6  ;;  %v3789_v40 = vadd.f32 %v3788_v15, %v3756_v12  ;;  %4764 = vmatmul.f32.vlgmr.msra.gmra.mxu1 %v6880_v13  ;;  %4979 = vmatpush.msra.mxu0 %v8006_v62 }
 0x26b   : > { %5016 = vmatpush.msra.mxu1 %v5015_v19 }
 0x26c   : > { %4838 = vmatmul.f32.gmra.mxu3 %v6884_v18  ;;  %v8053_v6 = vadd.f32 %v7149_v44, %v5919_v7  ;;  %v3816_v21 = vadd.f32 %v3815_v39, %v3789_v40  ;;  %v3730_v15 = vpop.f32.mrf.mxu0  ;;  %4803 = vmatmul.f32.gmra.mxu2 %v6918_v48  ;;  %v5203_v7 = vand.u32 4294901760, %v8050_v55  ;;  %v8067_v39 = vsub.f32 %v387_v53, %v8056_v22 }
 0x26d   : > { %v3731_v3 = vadd.f32 %v3730_v15, %v3700_v4  ;;  %5022 = vmatpush.msra.mxu1 %v5021_v11 }
 0x26e   : > { %8574 = vst [vmem:[#allocation42_spill] sm:$0xff] %v8053_v6  ;;  %v8062_v12 = vmax.f32 %v6029_v16, %v8053_v6  ;;  %v5745_v19 = vadd.f32 %v7057_v51, %v3816_v21  ;;  %v5204_v15 = vsub.f32 %v8050_v55, %v5203_v7  ;;  %v5209_v47 = vand.u32 4294901760, %v8067_v39 }
 0x26f   : > { %v3819_v1 = vpop.f32.mrf.mxu3  ;;  %4741 = vmatmul.f32.gmra.mxu0 %v6884_v18  ;;  %v3761_v40 = vpop.f32.mrf.mxu1 }
 0x270   : > { %v3792_v27 = vpop.f32.mrf.mxu2  ;;  %v5773_v4 = vmax.f32 %v5745_v19, 0.0  ;;  %v3762_v11 = vadd.f32 %v3761_v40, %v3731_v3  ;;  %v5205_v21 = vand.u32 4294901760, %v5204_v15  ;;  %v5210_v10 = vsub.f32 %v8067_v39, %v5209_v47 }
 0x272   : > { %v5807_v16 = vmul.f32 %v7078_v9, %v5773_v4  ;;  %v3793_v6 = vadd.f32 %v3792_v27, %v3762_v11  ;;  %4768 = vmatmul.f32.gmra.mxu1 %v6884_v18  ;;  %v5211_v3 = vand.u32 4294901760, %v5210_v10  ;;  %v8577_v10 = vand.u32 4294901760, %v8012_v35 }
 0x274   : > { %4954 = vmatmul.f32.vlgmr.msrb.gmra.mxu3 %v6880_v13  ;;  %v5920_v53 = vrot.slane %v5807_v16, 4  ;;  %v8076_v14 = vadd.f32 %v3819_v1, %v3793_v6  ;;  %v3846_v29 = vpop.f32.mrf.mxu0  ;;  %4927 = vmatmul.f32.vlgmr.msrb.gmra.mxu2 %v6880_v13  ;;  %v8576_v6 = vand.u32 4294901760, %v8004_v31 }
 0x275   : > { %5206 = vmatpush.msrb.mxu3 %v5205_v21  ;;  %5167 = vmatpush.msrb.mxu2 %v8036_v42 }
 0x276   : > { %8575 = vst [vmem:[#allocation43_spill] sm:$0xff] %v8076_v14  ;;  %v5921_v19 = vadd.f32 %v5920_v53, %v5807_v16 }
 0x277   : > { %v3945_v40 = vpop.f32.mrf.mxu3  ;;  %5212 = vmatpush.msrb.mxu3 %v5211_v3  ;;  %4864 = vmatmul.f32.vlgmr.msrb.gmra.mxu0 %v6887_v20  ;;  %v3885_v27 = vpop.f32.mrf.mxu1 }
 0x278   : > { %v3915_v4 = vpop.f32.mrf.mxu2  ;;  %5169 = vmatpush.msrb.mxu2 %v8056_v22  ;;  %v5922_v11 = vrot.slane %v5921_v19, 2  ;;  %v3886_v15 = vadd.f32 %v3885_v27, %v3846_v29  ;;  %5111 = vmatpush.msrb.mxu0 %v8576_v6 }
 0x27a   : > { %v5923_v1 = vadd.f32 %v5922_v11, %v5921_v19  ;;  %v3916_v14 = vadd.f32 %v3915_v4, %v3886_v15  ;;  %4894 = vmatmul.f32.vlgmr.msrb.gmra.mxu1 %v6893_v26  ;;  %5115 = vmatpush.msrb.mxu0 %v8577_v10 }
 0x27b   : > { %5140 = vmatpush.msrb.mxu1 %v7996_v58 }
 0x27c   : > { %4958 = vmatmul.f32.gmra.mxu3 %v6884_v18  ;;  %v5924_v16 = vrot.slane %v5923_v1, 1  ;;  %v3946_v21 = vadd.f32 %v3945_v40, %v3916_v14  ;;  %v3854_v53 = vpop.f32.mrf.mxu0  ;;  %4931 = vmatmul.f32.gmra.mxu2 %v6884_v18 }
 0x27d   : > { %5142 = vmatpush.msrb.mxu1 %v8006_v62 }
 0x27e   : > { %v5925_v29 = vadd.f32 %v5924_v16, %v5923_v1 }
 0x27f   : > { %v3951_v31 = vpop.f32.mrf.mxu3  ;;  %4869 = vmatmul.f32.gmra.mxu0 %v6890_v24  ;;  %v3889_v3 = vpop.f32.mrf.mxu1 }
 0x280   : > { %v3920_v19 = vpop.f32.mrf.mxu2  ;;  %v8093_v35 = vadd.f32 %v7149_v44, %v5925_v29  ;;  %v3890_v27 = vadd.f32 %v3889_v3, %v3854_v53 }
 0x282   : > { %v3921_v4 = vadd.f32 %v3920_v19, %v3890_v27  ;;  %4900 = vmatmul.f32.gmra.mxu1 %v6902_v34 }
 0x284   : > { %5084 = vmatmul.f32.vlgmr.msra.gmra.mxu3 %v6893_v26  ;;  %v8099_v14 = vadd.f32 %v3951_v31, %v3921_v4  ;;  %v3978_v62 = vpop.f32.mrf.mxu0  ;;  %5054 = vmatmul.f32.vlgmr.msra.gmra.mxu2 %v6887_v20 }
 0x285   : > { %5330 = vmatpush.msra.mxu3 %v8036_v42  ;;  %5301 = vmatpush.msra.mxu2 %v5203_v7  ;;  %v3979_v40 = vadd.f32 %v3978_v62, %v3946_v21 }
 0x287   : > { %v4075_v11 = vpop.f32.mrf.mxu3  ;;  %5332 = vmatpush.msra.mxu3 %v8056_v22  ;;  %4985 = vmatmul.f32.vlgmr.msra.gmra.mxu0 %v6905_v38  ;;  %v4005_v15 = vpop.f32.mrf.mxu1 }
 0x288   : > { %v4036_v6 = vpop.f32.mrf.mxu2  ;;  %5305 = vmatpush.msra.mxu2 %v5209_v47  ;;  %v4006_v1 = vadd.f32 %v4005_v15, %v3979_v40  ;;  %5238 = vmatpush.msra.mxu0 %v8050_v55  ;;  %v6543_v47 = vld [vmem:[%s6842_s30 + $0x78] sm:$0xff] }
 0x289   : > { %v4076_v10 = vadd.f32 %v4075_v11, %v4036_v6  ;;  %v390_v53 = vmul.f32 %v6543_v47, %v8028_v2 }
 0x28a   : > { %v5746_v16 = vadd.f32 %v7057_v51, %v4006_v1  ;;  %5024 = vmatmul.f32.vlgmr.msra.gmra.mxu1 %v6880_v13  ;;  %5241 = vmatpush.msra.mxu0 %v8067_v39  ;;  %v6544_v39 = vld [vmem:[%s6842_s30 + $0x70] sm:$0xff]  ;;  %s6266_s30 = scalar_lea.hbm %s8487_s6, %s6758_s25  ;;  %s6258_s25 = scalar_lea.sflag [#allocation4], %s6838_s7 }
 0x28b   : > { %5268 = vmatpush.msra.mxu1 %v8036_v42  ;;  %v8118_v31 = vand.u32 4294901760, %v390_v53  ;;  %v389_v3 = vmul.f32 %v6544_v39, %v8041_v28  ;;  %s6270_s8 = sshll.u32 %s6266_s30, 4  ;;  %s6271_s8 = int_to_ptr.hbm [resolvable:$true] %s6270_s8 }
 0x28c   : > { %5090 = vmatmul.f32.gmra.mxu3 %v6902_v34  ;;  %v5774_v7 = vmax.f32 %v5746_v16, 0.0  ;;  %v8111_v21 = vpop.f32.mrf.mxu0  ;;  %5059 = vmatmul.f32.gmra.mxu2 %v6890_v24  ;;  %s6634_s13 = sshra.s32 %s6271_s8, 4  ;;  %s6635_s13 = int_to_ptr.hbm [resolvable:$true] %s6634_s13 }
 0x28d   : > { %5270 = vmatpush.msra.mxu1 %v8056_v22  ;;  %v8126_v62 = vsub.f32 %v390_v53, %v8118_v31  ;;  %v8128_v2 = vand.u32 4294901760, %v389_v3  ;;  %s6636_s16 = scalar_lea.hbm %s6635_s13, 1  ;;  %p6641_p9 = scmp.lt.s32.totalorder %s6635_s13, %s8487_s6 }
 0x28e   : > { %v5808_v55 = vmul.f32 %v7078_v9, %v5774_v7  ;;  %p6637_p4 = scmp.ne.s32.totalorder %s6635_s13, %s6636_s16  ;;  %p6642_p2 = scmp.lt.s32.totalorder %s6640_s9, %s6636_s16 }
 0x28f   : > { %v4079_v29 = vpop.f32.mrf.mxu3  ;;  %4993 = vmatmul.f32.gmra.mxu0 %v6918_v48  ;;  %v8123_v42 = vpop.f32.mrf.mxu1  ;;  %v8519_v40 = vand.u32 4294901760, %v8126_v62  ;;  %v8134_v28 = vsub.f32 %v389_v3, %v8128_v2 }
 0x290   : > { %v4044_v19 = vpop.f32.mrf.mxu2  ;;  %v5926_v27 = vrot.slane %v5808_v55, 4  ;;  %p6638_p8 = pnand %p6637_p4, %p6809_p5  ;;  %p6643_p10 = por %p6642_p2, %p6641_p9 }
 0x291   : > { %v4080_v4 = vadd.f32 %v4079_v29, %v4044_v19  ;;  %v5394_v6 = vsub.f32 %v8126_v62, %v8519_v40  ;;  %v8520_v1 = vand.u32 4294901760, %v8134_v28 }
 0x292   : > { %v5927_v22 = vadd.f32 %v5926_v27, %v5808_v55  ;;  %5028 = vmatmul.f32.gmra.mxu1 %v6884_v18  ;;  %v392_v27 = vmul.f32 %v6543_v47, %v8031_v17  ;;  %p6639_p11 = pneg %p6638_p8 }
 0x293   : > { %v5395_v3 = vand.u32 4294901760, %v5394_v6  ;;  %v5400_v19 = vsub.f32 %v8134_v28, %v8520_v1  ;;  %v391_v6 = vmul.f32 %v6544_v39, %v8044_v0  ;;  %v8579_v0 = vmax.f32 %v8062_v12, %v8093_v35 }
 0x294   : > { %5214 = vmatmul.f32.vlgmr.msrb.gmra.mxu3 %v6880_v13  ;;  %v5928_v11 = vrot.slane %v5927_v22, 2  ;;  %v4105_v15 = vpop.f32.mrf.mxu0  ;;  %5175 = vmatmul.f32.vlgmr.msrb.gmra.mxu2 %v6905_v38  ;;  %p6644_p12 = pnand %p6643_p10, %p6639_p11 }
 0x295   : > { %5458 = vmatpush.msrb.mxu3 %v8118_v31  ;;  %5428 = vmatpush.msrb.mxu2 %v8126_v62  ;;  %v4106_v7 = vadd.f32 %v4105_v15, %v4076_v10  ;;  %v5401_v10 = vand.u32 4294901760, %v5400_v19 }
 0x296   : > { %v5929_v16 = vadd.f32 %v5928_v11, %v5927_v22  ;;  %v8151_v22 = vand.u32 4294901760, %v392_v27 }
 0x297   : > { %v4195_v53 = vpop.f32.mrf.mxu3  ;;  %5460 = vmatpush.msrb.mxu3 %v8128_v2  ;;  %5117 = vmatmul.f32.vlgmr.msrb.gmra.mxu0 %v6880_v13  ;;  %v4135_v55 = vpop.f32.mrf.mxu1 }
 0x298   : > { %v4168_v29 = vpop.f32.mrf.mxu2  ;;  %5431 = vmatpush.msrb.mxu2 %v8134_v28  ;;  %v5930_v40 = vrot.slane %v5929_v16, 1  ;;  %v4136_v58 = vadd.f32 %v4135_v55, %v4106_v7  ;;  %5357 = vmatpush.msrb.mxu0 %v8118_v31  ;;  %v8158_v17 = vsub.f32 %v392_v27, %v8151_v22 }
 0x29a   : > { %v5931_v11 = vadd.f32 %v5930_v40, %v5929_v16  ;;  %v4169_v15 = vadd.f32 %v4168_v29, %v4136_v58  ;;  %5144 = vmatmul.f32.vlgmr.msrb.gmra.mxu1 %v6880_v13  ;;  %5359 = vmatpush.msrb.mxu0 %v8128_v2  ;;  %v8164_v58 = vand.u32 4294901760, %v391_v6 }
 0x29b   : > { %5396 = vmatpush.msrb.mxu1 %v5395_v3  ;;  %v5583_v3 = vand.u32 4294901760, %v8158_v17 }
 0x29c   : > { %5218 = vmatmul.f32.gmra.mxu3 %v6884_v18  ;;  %v8161_v47 = vadd.f32 %v7149_v44, %v5931_v11  ;;  %v4196_v7 = vadd.f32 %v4195_v53, %v4169_v15  ;;  %v4110_v55 = vpop.f32.mrf.mxu0  ;;  %5183 = vmatmul.f32.gmra.mxu2 %v6918_v48  ;;  %v8175_v53 = vsub.f32 %v391_v6, %v8164_v58 }
 0x29d   : > { %v4111_v40 = vadd.f32 %v4110_v55, %v4080_v4  ;;  %5402 = vmatpush.msrb.mxu1 %v5401_v10  ;;  %v5584_v11 = vsub.f32 %v8158_v17, %v5583_v3 }
 0x29e   : > { %8578 = vst [vmem:[#allocation44_spill] sm:$0xff] %v8161_v47  ;;  %v8170_v39 = vmax.f32 %v8579_v0, %v8161_v47  ;;  %v5747_v16 = vadd.f32 %v7057_v51, %v4196_v7  ;;  %v5589_v12 = vand.u32 4294901760, %v8175_v53 }
 0x29f   : > { %v4199_v29 = vpop.f32.mrf.mxu3  ;;  %5121 = vmatmul.f32.gmra.mxu0 %v6884_v18  ;;  %v4141_v19 = vpop.f32.mrf.mxu1  ;;  %v5585_v7 = vand.u32 4294901760, %v5584_v11 }
 0x2a0   : > { %v4172_v27 = vpop.f32.mrf.mxu2  ;;  %v5775_v4 = vmax.f32 %v5747_v16, 0.0  ;;  %v4142_v10 = vadd.f32 %v4141_v19, %v4111_v40  ;;  %v5590_v0 = vsub.f32 %v8175_v53, %v5589_v12 }
 0x2a2   : > { %v5809_v15 = vmul.f32 %v7078_v9, %v5775_v4  ;;  %v4173_v55 = vadd.f32 %v4172_v27, %v4142_v10  ;;  %5148 = vmatmul.f32.gmra.mxu1 %v6884_v18  ;;  %v5591_v40 = vand.u32 4294901760, %v5590_v0 }
 0x2a4   : > { %5334 = vmatmul.f32.vlgmr.msra.gmra.mxu3 %v6880_v13  ;;  %v5932_v6 = vrot.slane %v5809_v15, 4  ;;  %v8184_v1 = vadd.f32 %v4199_v29, %v4173_v55  ;;  %v4226_v47 = vpop.f32.mrf.mxu0  ;;  %5307 = vmatmul.f32.vlgmr.msra.gmra.mxu2 %v6880_v13  ;;  %v8581_v29 = vand.u32 4294901760, %v8126_v62 }
 0x2a5   : > { %5586 = vmatpush.msra.mxu3 %v5585_v7  ;;  %5547 = vmatpush.msra.mxu2 %v8151_v22  ;;  %v8582_v7 = vand.u32 4294901760, %v8134_v28 }
 0x2a6   : > { %8580 = vst [vmem:[#allocation45_spill] sm:$0xff] %v8184_v1  ;;  %v5933_v16 = vadd.f32 %v5932_v6, %v5809_v15 }
 0x2a7   : > { %v4325_v19 = vpop.f32.mrf.mxu3  ;;  %5592 = vmatpush.msra.mxu3 %v5591_v40  ;;  %5244 = vmatmul.f32.vlgmr.msra.gmra.mxu0 %v6887_v20  ;;  %v4265_v27 = vpop.f32.mrf.mxu1 }
 0x2a8   : > { %v4295_v4 = vpop.f32.mrf.mxu2  ;;  %5549 = vmatpush.msra.mxu2 %v8164_v58  ;;  %v5934_v10 = vrot.slane %v5933_v16, 2  ;;  %v4266_v11 = vadd.f32 %v4265_v27, %v4226_v47  ;;  %5491 = vmatpush.msra.mxu0 %v8581_v29 }
 0x2aa   : > { %v5935_v55 = vadd.f32 %v5934_v10, %v5933_v16  ;;  %v4296_v1 = vadd.f32 %v4295_v4, %v4266_v11  ;;  %5274 = vmatmul.f32.vlgmr.msra.gmra.mxu1 %v6893_v26  ;;  %5495 = vmatpush.msra.mxu0 %v8582_v7 }
 0x2ab   : > { %5520 = vmatpush.msra.mxu1 %v8118_v31 }
 0x2ac   : > { %5338 = vmatmul.f32.gmra.mxu3 %v6884_v18  ;;  %v5936_v15 = vrot.slane %v5935_v55, 1  ;;  %v4326_v0 = vadd.f32 %v4325_v19, %v4296_v1  ;;  %v4234_v6 = vpop.f32.mrf.mxu0  ;;  %5311 = vmatmul.f32.gmra.mxu2 %v6884_v18 }
 0x2ad   : > { %5522 = vmatpush.msra.mxu1 %v8128_v2 }
 0x2ae   : > { %v5937_v62 = vadd.f32 %v5936_v15, %v5935_v55 }
 0x2af   : > { %v4331_v47 = vpop.f32.mrf.mxu3  ;;  %5249 = vmatmul.f32.gmra.mxu0 %v6890_v24  ;;  %v4269_v40 = vpop.f32.mrf.mxu1 }
 0x2b0   : > { %v4300_v16 = vpop.f32.mrf.mxu2  ;;  %v8201_v28 = vadd.f32 %v7149_v44, %v5937_v62  ;;  %v4270_v27 = vadd.f32 %v4269_v40, %v4234_v6 }
 0x2b2   : > { %v6033_v31 = vmax.f32 %v8170_v39, %v8201_v28  ;;  %v4301_v4 = vadd.f32 %v4300_v16, %v4270_v27  ;;  %5280 = vmatmul.f32.gmra.mxu1 %v6902_v34 }
 0x2b4   : > { %5464 = vmatmul.f32.vlgmr.msrb.gmra.mxu3 %v6893_v26  ;;  %v4332_v1 = vadd.f32 %v4331_v47, %v4301_v4  ;;  %v4358_v2 = vpop.f32.mrf.mxu0  ;;  %5434 = vmatmul.f32.vlgmr.msrb.gmra.mxu2 %v6887_v20 }
 0x2b5   : > { %5710 = vmatpush.msrb.mxu3 %v8151_v22  ;;  %v4359_v19 = vadd.f32 %v4358_v2, %v4326_v0  ;;  %5681 = vmatpush.msrb.mxu2 %v5583_v3 }
 0x2b7   : > { %v4455_v10 = vpop.f32.mrf.mxu3  ;;  %5712 = vmatpush.msrb.mxu3 %v8164_v58  ;;  %5365 = vmatmul.f32.vlgmr.msrb.gmra.mxu0 %v6905_v38  ;;  %v4385_v11 = vpop.f32.mrf.mxu1 }
 0x2b8   : > { %v4416_v39 = vpop.f32.mrf.mxu2  ;;  %5685 = vmatpush.msrb.mxu2 %v5589_v12  ;;  %v4386_v29 = vadd.f32 %v4385_v11, %v4359_v19  ;;  %5618 = vmatpush.msrb.mxu0 %v8158_v17 }
 0x2b9   : > { %v4456_v55 = vadd.f32 %v4455_v10, %v4416_v39 }
 0x2ba   : > { %v5748_v7 = vadd.f32 %v7057_v51, %v4386_v29  ;;  %5404 = vmatmul.f32.vlgmr.msrb.gmra.mxu1 %v6880_v13  ;;  %5621 = vmatpush.msrb.mxu0 %v8175_v53 }
 0x2bb   : > { %5648 = vmatpush.msrb.mxu1 %v8151_v22 }
 0x2bc   : > { %5470 = vmatmul.f32.gmra.mxu3 %v6902_v34  ;;  %v5776_v3 = vmax.f32 %v5748_v7, 0.0  ;;  %v4362_v15 = vpop.f32.mrf.mxu0  ;;  %5439 = vmatmul.f32.gmra.mxu2 %v6890_v24 }
 0x2bd   : > { %v4363_v0 = vadd.f32 %v4362_v15, %v4332_v1  ;;  %5650 = vmatpush.msrb.mxu1 %v8164_v58 }
 0x2be   : > { %v5810_v12 = vmul.f32 %v7078_v9, %v5776_v3 }
 0x2bf   : > { %v4459_v17 = vpop.f32.mrf.mxu3  ;;  %5373 = vmatmul.f32.gmra.mxu0 %v6918_v48  ;;  %v4389_v6 = vpop.f32.mrf.mxu1 }
 0x2c0   : > { %v4424_v62 = vpop.f32.mrf.mxu2  ;;  %v5938_v47 = vrot.slane %v5810_v12, 4  ;;  %v8221_v53 = vadd.f32 %v4389_v6, %v4363_v0 }
 0x2c1   : > { %v4460_v40 = vadd.f32 %v4459_v17, %v4424_v62 }
 0x2c2   : > { %8583 = vst [vmem:[#allocation46_spill] sm:$0xff] %v8221_v53  ;;  %v5939_v16 = vadd.f32 %v5938_v47, %v5810_v12  ;;  %5408 = vmatmul.f32.gmra.mxu1 %v6884_v18 }
 0x2c4   : > { %5594 = vmatmul.f32.vlgmr.msra.gmra.mxu3 %v6880_v13  ;;  %v5940_v22 = vrot.slane %v5939_v16, 2  ;;  %v4485_v27 = vpop.f32.mrf.mxu0  ;;  %5555 = vmatmul.f32.vlgmr.msra.gmra.mxu2 %v6905_v38 }
 0x2c5   : > { %v4486_v58 = vadd.f32 %v4485_v27, %v4456_v55 }
 0x2c6   : > { %v5941_v4 = vadd.f32 %v5940_v22, %v5939_v16 }
 0x2c7   : > { %v4575_v1 = vpop.f32.mrf.mxu3  ;;  %5497 = vmatmul.f32.vlgmr.msra.gmra.mxu0 %v6880_v13  ;;  %v4515_v2 = vpop.f32.mrf.mxu1 }
 0x2c8   : > { %v4548_v19 = vpop.f32.mrf.mxu2  ;;  %v5942_v10 = vrot.slane %v5941_v4, 1  ;;  %v4516_v11 = vadd.f32 %v4515_v2, %v4486_v58 }
 0x2ca   : > { %v5943_v39 = vadd.f32 %v5942_v10, %v5941_v4  ;;  %v4549_v29 = vadd.f32 %v4548_v19, %v4516_v11  ;;  %5524 = vmatmul.f32.vlgmr.msra.gmra.mxu1 %v6880_v13 }
 0x2cc   : > { %5598 = vmatmul.f32.gmra.mxu3 %v6884_v18  ;;  %v8230_v7 = vadd.f32 %v7149_v44, %v5943_v39  ;;  %v4576_v3 = vadd.f32 %v4575_v1, %v4549_v29  ;;  %v4490_v38 = vpop.f32.mrf.mxu0  ;;  %5563 = vmatmul.f32.gmra.mxu2 %v6918_v48 }
 0x2cd   : > { %v4491_v55 = vadd.f32 %v4490_v38, %v4460_v40 }
 0x2ce   : > { %v8234_v15 = vmax.f32 %v6033_v31, %v8230_v7  ;;  %v5749_v0 = vadd.f32 %v7057_v51, %v4576_v3 }
 0x2cf   : > { %v4579_v12 = vpop.f32.mrf.mxu3  ;;  %5501 = vmatmul.f32.gmra.mxu0 %v6884_v18  ;;  %v4521_v17 = vpop.f32.mrf.mxu1 }
 0x2d0   : > { %v4552_v6 = vpop.f32.mrf.mxu2  ;;  %v5777_v62 = vmax.f32 %v5749_v0, 0.0  ;;  %v4522_v47 = vadd.f32 %v4521_v17, %v4491_v55 }
 0x2d2   : > { %v5811_v16 = vmul.f32 %v7078_v9, %v5777_v62  ;;  %v4553_v22 = vadd.f32 %v4552_v6, %v4522_v47  ;;  %5528 = vmatmul.f32.gmra.mxu1 %v6884_v18 }
 0x2d4   : > { %5714 = vmatmul.f32.vlgmr.msrb.gmra.mxu3 %v6880_v13  ;;  %v5944_v48 = vrot.slane %v5811_v16, 4  ;;  %v8241_v40 = vadd.f32 %v4579_v12, %v4553_v22  ;;  %v4606_v31 = vpop.f32.mrf.mxu0  ;;  %5687 = vmatmul.f32.vlgmr.msrb.gmra.mxu2 %v6880_v13 }
 0x2d6   : > { %8584 = vst [vmem:[#allocation47_spill] sm:$0xff] %v8241_v40  ;;  %v5945_v27 = vadd.f32 %v5944_v48, %v5811_v16 }
 0x2d7   : > { %v4705_v58 = vpop.f32.mrf.mxu3  ;;  %5624 = vmatmul.f32.vlgmr.msrb.gmra.mxu0 %v6887_v20  ;;  %v4645_v4 = vpop.f32.mrf.mxu1 }
 0x2d8   : > { %v4675_v1 = vpop.f32.mrf.mxu2  ;;  %v5946_v2 = vrot.slane %v5945_v27, 2  ;;  %v4646_v19 = vadd.f32 %v4645_v4, %v4606_v31 }
 0x2da   : > { %v5947_v10 = vadd.f32 %v5946_v2, %v5945_v27  ;;  %v4676_v11 = vadd.f32 %v4675_v1, %v4646_v19  ;;  %5654 = vmatmul.f32.vlgmr.msrb.gmra.mxu1 %v6893_v26 }
 0x2dc   : > { %5718 = vmatmul.f32.gmra.mxu3 %v6884_v18  ;;  %v5948_v39 = vrot.slane %v5947_v10, 1  ;;  %v4706_v29 = vadd.f32 %v4705_v58, %v4676_v11  ;;  %v4614_v3 = vpop.f32.mrf.mxu0  ;;  %5691 = vmatmul.f32.gmra.mxu2 %v6884_v18 }
 0x2de   : > { %v5949_v13 = vadd.f32 %v5948_v39, %v5947_v10 }
 0x2df   : > { %v4711_v38 = vpop.f32.mrf.mxu3  ;;  %5629 = vmatmul.f32.gmra.mxu0 %v6890_v24  ;;  %v4649_v20 = vpop.f32.mrf.mxu1 }
 0x2e0   : > { %v4680_v55 = vpop.f32.mrf.mxu2  ;;  %v8250_v0 = vadd.f32 %v7149_v44, %v5949_v13  ;;  %v4650_v12 = vadd.f32 %v4649_v20, %v4614_v3 }
 0x2e2   : > { %v6035_v26 = vmax.f32 %v8234_v15, %v8250_v0  ;;  %v4681_v17 = vadd.f32 %v4680_v55, %v4650_v12  ;;  %5660 = vmatmul.f32.gmra.mxu1 %v6902_v34 }
 0x2e4   : > { %v4712_v6 = vadd.f32 %v4711_v38, %v4681_v17  ;;  %v4738_v62 = vpop.f32.mrf.mxu0 }
 0x2e5   : > { %v4739_v47 = vadd.f32 %v4738_v62, %v4706_v29 }
 0x2e7   : > { %v4835_v18 = vpop.f32.mrf.mxu3  ;;  %v4765_v16 = vpop.f32.mrf.mxu1 }
 0x2e8   : > { %v4796_v22 = vpop.f32.mrf.mxu2  ;;  %v4766_v48 = vadd.f32 %v4765_v16, %v4739_v47 }
 0x2e9   : > { %v4836_v24 = vadd.f32 %v4835_v18, %v4796_v22 }
 0x2ea   : > { %v5750_v31 = vadd.f32 %v7057_v51, %v4766_v48 }
 0x2ec   : > { %v5778_v27 = vmax.f32 %v5750_v31, 0.0  ;;  %v4742_v58 = vpop.f32.mrf.mxu0 }
 0x2ed   : > { %v4743_v4 = vadd.f32 %v4742_v58, %v4712_v6 }
 0x2ee   : > { %v5812_v1 = vmul.f32 %v7078_v9, %v5778_v27 }
 0x2ef   : > { %v4839_v2 = vpop.f32.mrf.mxu3  ;;  %v4769_v15 = vpop.f32.mrf.mxu1 }
 0x2f0   : > { %v4804_v19 = vpop.f32.mrf.mxu2  ;;  %v5950_v10 = vrot.slane %v5812_v1, 4  ;;  %v8257_v34 = vadd.f32 %v4769_v15, %v4743_v4 }
 0x2f1   : > { %v4840_v11 = vadd.f32 %v4839_v2, %v4804_v19 }
 0x2f2   : > { %8585 = vst [vmem:[#allocation48_spill] sm:$0xff] %v8257_v34  ;;  %v5951_v39 = vadd.f32 %v5950_v10, %v5812_v1 }
 0x2f4   : > { %v5952_v29 = vrot.slane %v5951_v39, 2  ;;  %v4865_v3 = vpop.f32.mrf.mxu0 }
 0x2f5   : > { %v4866_v13 = vadd.f32 %v4865_v3, %v4836_v24 }
 0x2f6   : > { %v5953_v38 = vadd.f32 %v5952_v29, %v5951_v39 }
 0x2f7   : > { %v4955_v20 = vpop.f32.mrf.mxu3  ;;  %v4895_v55 = vpop.f32.mrf.mxu1 }
 0x2f8   : > { %v4928_v12 = vpop.f32.mrf.mxu2  ;;  %v5954_v17 = vrot.slane %v5953_v38, 1  ;;  %v4896_v62 = vadd.f32 %v4895_v55, %v4866_v13 }
 0x2fa   : > { %v5955_v6 = vadd.f32 %v5954_v17, %v5953_v38  ;;  %v4929_v47 = vadd.f32 %v4928_v12, %v4896_v62 }
 0x2fc   : > { %v8260_v18 = vadd.f32 %v7149_v44, %v5955_v6  ;;  %v4956_v16 = vadd.f32 %v4955_v20, %v4929_v47  ;;  %v4870_v22 = vpop.f32.mrf.mxu0 }
 0x2fd   : > { %v4871_v48 = vadd.f32 %v4870_v22, %v4840_v11 }
 0x2fe   : > { %v6036_v31 = vmax.f32 %v6035_v26, %v8260_v18  ;;  %v5751_v27 = vadd.f32 %v7057_v51, %v4956_v16 }
 0x2ff   : > { %v4959_v58 = vpop.f32.mrf.mxu3  ;;  %v4901_v24 = vpop.f32.mrf.mxu1 }
 0x300   : > { %v4932_v4 = vpop.f32.mrf.mxu2  ;;  %v5779_v1 = vmax.f32 %v5751_v27, 0.0  ;;  %v4902_v2 = vadd.f32 %v4901_v24, %v4871_v48 }
 0x302   : > { %v5813_v15 = vmul.f32 %v7078_v9, %v5779_v1  ;;  %v4933_v19 = vadd.f32 %v4932_v4, %v4902_v2 }
 0x304   : > { %v5956_v10 = vrot.slane %v5813_v15, 4  ;;  %v8265_v39 = vadd.f32 %v4959_v58, %v4933_v19  ;;  %v4986_v29 = vpop.f32.mrf.mxu0 }
 0x306   : > { %8586 = vst [vmem:[#allocation49_spill] sm:$0xff] %v8265_v39  ;;  %v5957_v3 = vadd.f32 %v5956_v10, %v5813_v15 }
 0x307   : > { %v5085_v13 = vpop.f32.mrf.mxu3  ;;  %v5025_v38 = vpop.f32.mrf.mxu1 }
 0x308   : > { %v5055_v11 = vpop.f32.mrf.mxu2  ;;  %v5958_v20 = vrot.slane %v5957_v3, 2  ;;  %v5026_v26 = vadd.f32 %v5025_v38, %v4986_v29 }
 0x30a   : > { %v5959_v55 = vadd.f32 %v5958_v20, %v5957_v3  ;;  %v5056_v12 = vadd.f32 %v5055_v11, %v5026_v26 }
 0x30c   : > { %v5960_v17 = vrot.slane %v5959_v55, 1  ;;  %v5086_v62 = vadd.f32 %v5085_v13, %v5056_v12  ;;  %v4994_v6 = vpop.f32.mrf.mxu0 }
 0x30e   : > { %v5961_v47 = vadd.f32 %v5960_v17, %v5959_v55 }
 0x30f   : > { %v5091_v16 = vpop.f32.mrf.mxu3  ;;  %v5029_v22 = vpop.f32.mrf.mxu1 }
 0x310   : > { %v5060_v48 = vpop.f32.mrf.mxu2  ;;  %v8268_v27 = vadd.f32 %v7149_v44, %v5961_v47  ;;  %v5030_v58 = vadd.f32 %v5029_v22, %v4994_v6 }
 0x312   : > { %8587 = vst [vmem:[#allocation50_spill] sm:$0xff] %v8268_v27  ;;  %v6037_v24 = vmax.f32 %v6036_v31, %v8268_v27  ;;  %v5061_v4 = vadd.f32 %v5060_v48, %v5030_v58 }
 0x314   : > { %v5092_v1 = vadd.f32 %v5091_v16, %v5061_v4  ;;  %v5118_v2 = vpop.f32.mrf.mxu0 }
 0x315   : > { %v5119_v15 = vadd.f32 %v5118_v2, %v5086_v62 }
 0x317   : > { %v5215_v19 = vpop.f32.mrf.mxu3  ;;  %v5145_v10 = vpop.f32.mrf.mxu1 }
 0x318   : > { %v5176_v29 = vpop.f32.mrf.mxu2  ;;  %v5146_v3 = vadd.f32 %v5145_v10, %v5119_v15 }
 0x31a   : > { %v5752_v13 = vadd.f32 %v7057_v51, %v5146_v3 }
 0x31c   : > { %v5780_v38 = vmax.f32 %v5752_v13, 0.0  ;;  %v5122_v11 = vpop.f32.mrf.mxu0 }
 0x31d   : > { %v5123_v20 = vadd.f32 %v5122_v11, %v5092_v1 }
 0x31e   : > { %v5814_v26 = vmul.f32 %v7078_v9, %v5780_v38 }
 0x31f   : > { %v5219_v55 = vpop.f32.mrf.mxu3  ;;  %v5149_v12 = vpop.f32.mrf.mxu1 }
 0x320   : > { %v5184_v17 = vpop.f32.mrf.mxu2  ;;  %v5962_v6 = vrot.slane %v5814_v26, 4  ;;  %v8273_v31 = vadd.f32 %v5149_v12, %v5123_v20 }
 0x321   : > { %v5220_v47 = vadd.f32 %v5219_v55, %v5184_v17 }
 0x322   : > { %8588 = vst [vmem:[#allocation51_spill] sm:$0xff] %v8273_v31  ;;  %v5963_v16 = vadd.f32 %v5962_v6, %v5814_v26 }
 0x324   : > { %v5964_v62 = vrot.slane %v5963_v16, 2  ;;  %v5245_v22 = vpop.f32.mrf.mxu0 }
 0x326   : > { %v5965_v48 = vadd.f32 %v5964_v62, %v5963_v16  ;;  %v5216_v16 = vadd.f32 %v5215_v19, %v5176_v29 }
 0x327   : > { %v5335_v58 = vpop.f32.mrf.mxu3  ;;  %v5275_v4 = vpop.f32.mrf.mxu1 }
 0x328   : > { %v5308_v2 = vpop.f32.mrf.mxu2  ;;  %v5966_v15 = vrot.slane %v5965_v48, 1 }
 0x32a   : > { %v5967_v10 = vadd.f32 %v5966_v15, %v5965_v48  ;;  %v5246_v15 = vadd.f32 %v5245_v22, %v5216_v16 }
 0x32c   : > { %v8276_v1 = vadd.f32 %v7149_v44, %v5967_v10  ;;  %v5250_v3 = vpop.f32.mrf.mxu0  ;;  %v5276_v10 = vadd.f32 %v5275_v4, %v5246_v15 }
 0x32d   : > { %v5251_v13 = vadd.f32 %v5250_v3, %v5220_v47 }
 0x32e   : > { %8589 = vst [vmem:[#allocation52_spill] sm:$0xff] %v8276_v1  ;;  %v8279_v38 = vmax.f32 %v6037_v24, %v8276_v1  ;;  %v5309_v47 = vadd.f32 %v5308_v2, %v5276_v10 }
 0x32f   : > { %v5339_v11 = vpop.f32.mrf.mxu3  ;;  %v5281_v20 = vpop.f32.mrf.mxu1 }
 0x330   : > { %v5312_v55 = vpop.f32.mrf.mxu2  ;;  %v5282_v26 = vadd.f32 %v5281_v20, %v5251_v13  ;;  %v5336_v27 = vadd.f32 %v5335_v58, %v5309_v47 }
 0x332   : > { %v5313_v12 = vadd.f32 %v5312_v55, %v5282_v26  ;;  %v5753_v19 = vadd.f32 %v7057_v51, %v5336_v27 }
 0x334   : > { %v8281_v17 = vadd.f32 %v5339_v11, %v5313_v12  ;;  %v5366_v6 = vpop.f32.mrf.mxu0 }
 0x337   : > { %v5465_v62 = vpop.f32.mrf.mxu3  ;;  %v5405_v31 = vpop.f32.mrf.mxu1 }
 0x338   : > { %v5435_v48 = vpop.f32.mrf.mxu2  ;;  %v5406_v39 = vadd.f32 %v5405_v31, %v5366_v6  ;;  %v5781_v31 = vmax.f32 %v5753_v19, 0.0 }
 0x33a   : > { %v5436_v53 = vadd.f32 %v5435_v48, %v5406_v39 }
 0x33c   : > { %v5374_v34 = vpop.f32.mrf.mxu0  ;;  %v5466_v20 = vadd.f32 %v5465_v62, %v5436_v53 }
 0x33f   : > { %v5471_v3 = vpop.f32.mrf.mxu3  ;;  %v5409_v24 = vpop.f32.mrf.mxu1 }
 0x340   : > { %v5440_v40 = vpop.f32.mrf.mxu2  ;;  %v5410_v1 = vadd.f32 %v5409_v24, %v5374_v34  ;;  %v5815_v34 = vmul.f32 %v7078_v9, %v5781_v31 }
 0x342   : > { %v5441_v13 = vadd.f32 %v5440_v40, %v5410_v1  ;;  %v5968_v62 = vrot.slane %v5815_v34, 4 }
 0x344   : > { %v5472_v11 = vadd.f32 %v5471_v3, %v5441_v13  ;;  %v5498_v55 = vpop.f32.mrf.mxu0  ;;  %v5969_v3 = vadd.f32 %v5968_v62, %v5815_v34 }
 0x345   : > { %v5499_v29 = vadd.f32 %v5498_v55, %v5466_v20 }
 0x347   : > { %v5595_v26 = vpop.f32.mrf.mxu3  ;;  %v5525_v12 = vpop.f32.mrf.mxu1 }
 0x348   : > { %v5556_v22 = vpop.f32.mrf.mxu2  ;;  %v5526_v4 = vadd.f32 %v5525_v12, %v5499_v29  ;;  %v5970_v29 = vrot.slane %v5969_v3, 2 }
 0x349   : > { %v5596_v10 = vadd.f32 %v5595_v26, %v5556_v22 }
 0x34a   : > { %v5754_v2 = vadd.f32 %v7057_v51, %v5526_v4 }
 0x34c   : > { %v5782_v6 = vmax.f32 %v5754_v2, 0.0  ;;  %v5502_v16 = vpop.f32.mrf.mxu0  ;;  %v5971_v2 = vadd.f32 %v5970_v29, %v5969_v3  ;;  %v8596_v29 = vld [vmem:[#allocation17_spill] sm:$0xff] }
 0x34d   : > { %v5503_v15 = vadd.f32 %v5502_v16, %v5472_v11 }
 0x34e   : > { %v5816_v58 = vmul.f32 %v7078_v9, %v5782_v6 }
 0x34f   : > { %v5599_v39 = vpop.f32.mrf.mxu3  ;;  %v5529_v40 = vpop.f32.mrf.mxu1 }
 0x350   : > { %v5564_v53 = vpop.f32.mrf.mxu2  ;;  %v8287_v1 = vadd.f32 %v5529_v40, %v5503_v15  ;;  %v5974_v48 = vrot.slane %v5816_v58, 4 }
 0x351   : > { %v5600_v27 = vadd.f32 %v5599_v39, %v5564_v53  ;;  %v5972_v39 = vrot.slane %v5971_v2, 1 }
 0x352   : > { %v5975_v55 = vadd.f32 %v5974_v48, %v5816_v58 }
 0x353   : > { %v5973_v40 = vadd.f32 %v5972_v39, %v5971_v2  ;;  %v8598_v2 = vld [vmem:[#allocation20_spill] sm:$0xff]  ;;  %v8601_v39 = vld [vmem:[#allocation25_spill] sm:$0xff] }
 0x354   : > { %v5625_v47 = vpop.f32.mrf.mxu0  ;;  %v5976_v4 = vrot.slane %v5975_v55, 2 }
 0x355   : > { %v5626_v24 = vadd.f32 %v5625_v47, %v5596_v10  ;;  %v8292_v48 = vadd.f32 %v7149_v44, %v5973_v40  ;;  %v563_v47 = vadd.f32 %v7065_v61, %v7053_v46  ;;  %v1703_v61 = vadd.f32 %v7409_v41, %v7397_v32 }
 0x356   : > { %v5977_v16 = vadd.f32 %v5976_v4, %v5975_v55  ;;  %v3223_v32 = vadd.f32 %v7873_v57, %v7861_v54  ;;  %v3603_v41 = vadd.f32 %v7989_v36, %v7977_v43  ;;  %v8593_v57 = vld [vmem:[#allocation41_spill] sm:$0xff]  ;;  %v8597_v4 = vld [vmem:[#allocation19_spill] sm:$0xff] }
 0x357   : > { %v5655_v13 = vpop.f32.mrf.mxu1  ;;  %v5715_v19 = vpop.f32.mrf.mxu3 }
 0x358   : > { %v5688_v20 = vpop.f32.mrf.mxu2  ;;  %v5656_v11 = vadd.f32 %v5655_v13, %v5626_v24  ;;  %v5978_v22 = vrot.slane %v5977_v16, 1  ;;  %v1323_v24 = vadd.f32 %v7287_v30, %v7275_v63  ;;  %v8304_v13 = vadd.f32 %v7076_v8, %v563_v47 }
 0x359   : > { %v2463_v8 = vadd.f32 %v7653_v23, %v7641_v25  ;;  %v8590_v25 = vld [vmem:[#allocation29_spill] sm:$0xff]  ;;  %v8351_v43 = vadd.f32 %v8593_v57, %v3603_v41  ;;  %v8607_v41 = vld [vmem:[#allocation36_spill] sm:$0xff] }
 0x35a   : > { %v5689_v12 = vadd.f32 %v5688_v20, %v5656_v11  ;;  %v5979_v62 = vadd.f32 %v5978_v22, %v5977_v16  ;;  %v6039_v20 = vmax.f32 %v8279_v38, %v8292_v48  ;;  %v8312_v46 = vadd.f32 %v7299_v56, %v1323_v24  ;;  %v8595_v38 = vld [vmem:[#allocation16_spill] sm:$0xff] }
 0x35b   : > { %v8327_v56 = vadd.f32 %v7427_v5, %v1703_v61  ;;  %v8339_v23 = vadd.f32 %v8590_v25, %v2463_v8  ;;  %v8608_v25 = vld [vmem:[#allocation38_spill] sm:$0xff] }
 0x35c   : > { %v5716_v31 = vadd.f32 %v5715_v19, %v5689_v12  ;;  %v5630_v30 = vpop.f32.mrf.mxu0 }
 0x35e   : > { %v5755_v6 = vadd.f32 %v7057_v51, %v5716_v31  ;;  %v8297_v51 = vadd.f32 %v7149_v44, %v5979_v62 }
 0x360   : > { %v5783_v15 = vmax.f32 %v5755_v6, 0.0  ;;  %v6040_v63 = vmax.f32 %v6039_v20, %v8297_v51 }
 0x362   : > { %v5817_v26 = vmul.f32 %v7078_v9, %v5783_v15  ;;  %v943_v9 = vadd.f32 %v7177_v50, %v7163_v45  ;;  %v2083_v45 = vadd.f32 %v7531_v52, %v7519_v37  ;;  %v2843_v50 = vadd.f32 %v7763_v59, %v7751_v60  ;;  %v8592_v59 = vld [vmem:[#allocation37_spill] sm:$0xff] }
 0x363   : > { %v3983_v37 = vadd.f32 %v8111_v21, %v8099_v14  ;;  %v8348_v54 = vadd.f32 %v8592_v59, %v3223_v32  ;;  %v8594_v14 = vld [vmem:[#allocation15_spill] sm:$0xff] }
 0x364   : > { %v5980_v34 = vrot.slane %v5817_v26, 4  ;;  %v8309_v11 = vadd.f32 %v7189_v33, %v943_v9  ;;  %v8336_v52 = vadd.f32 %v7549_v49, %v2083_v45  ;;  %v8356_v49 = vadd.f32 %v5630_v30, %v5600_v27  ;;  %v8600_v27 = vld [vmem:[#allocation23_spill] sm:$0xff]  ;;  %v8604_v45 = vld [vmem:[#allocation30_spill] sm:$0xff] }
 0x365   : > { %v8354_v36 = vadd.f32 %v8123_v42, %v3983_v37  ;;  %v8599_v42 = vld [vmem:[#allocation22_spill] sm:$0xff] }
 0x366   : > { %v5981_v53 = vadd.f32 %v5980_v34, %v5817_v26  ;;  %v8606_v30 = vld [vmem:[#allocation34_spill] sm:$0xff] }
 0x368   : > { %v5982_v58 = vrot.slane %v5981_v53, 2 }
 0x36a   : > { %v5983_v10 = vadd.f32 %v5982_v58, %v5981_v53  ;;  %v8602_v53 = vld [vmem:[#allocation26_spill] sm:$0xff] }
 0x36c   : > { %v5984_v3 = vrot.slane %v5983_v10, 1 }
 0x36e   : > { %v5985_v55 = vadd.f32 %v5984_v3, %v5983_v10  ;;  %v8603_v3 = vld [vmem:[#allocation28_spill] sm:$0xff] }
 0x370   : > { %v8324_v33 = vadd.f32 %v7149_v44, %v5985_v55  ;;  %v8591_v44 = vld [vmem:[#allocation33_spill] sm:$0xff] }
 0x371   : > { %v8342_v60 = vadd.f32 %v8591_v44, %v2843_v50  ;;  %v8605_v50 = vld [vmem:[#allocation32_spill] sm:$0xff] }
 0x372   : > { %v8345_v5 = vmax.f32 %v6040_v63, %v8324_v33 }
 0x374   : > { %v6042_v21 = vsub.f32 %v8594_v14, %v8345_v5  ;;  %v6048_v19 = vsub.f32 %v8595_v38, %v8345_v5  ;;  %v6054_v12 = vsub.f32 %v8596_v29, %v8345_v5  ;;  %v6060_v31 = vsub.f32 %v8597_v4, %v8345_v5  ;;  %v8609_v14 = vld [vmem:[#allocation40_spill] sm:$0xff]  ;;  %v8610_v4 = vld [vmem:[#allocation42_spill] sm:$0xff] }
 0x375   : > { %v6066_v6 = vsub.f32 %v8598_v2, %v8345_v5  ;;  %v6072_v16 = vsub.f32 %v8599_v42, %v8345_v5  ;;  %v6078_v15 = vsub.f32 %v8600_v27, %v8345_v5  ;;  %v6084_v26 = vsub.f32 %v8601_v39, %v8345_v5  ;;  %v8611_v42 = vld [vmem:[#allocation44_spill] sm:$0xff] }
 0x376   : > { %v6043_v22 = vmul.f32 1.442695, %v6042_v21  ;;  %v6049_v34 = vmul.f32 1.442695, %v6048_v19  ;;  %v6055_v40 = vmul.f32 1.442695, %v6054_v12  ;;  %v6090_v62 = vsub.f32 %v8602_v53, %v8345_v5 }
 0x377   : > { %v6061_v58 = vmul.f32 1.442695, %v6060_v31  ;;  %v6067_v10 = vmul.f32 1.442695, %v6066_v6  ;;  %v6073_v47 = vmul.f32 1.442695, %v6072_v16  ;;  %v6096_v9 = vsub.f32 %v8603_v3, %v8345_v5 }
 0x378   : > { %6459 = vpow2.f32 %v6043_v22  ;;  %v6079_v24 = vmul.f32 1.442695, %v6078_v15  ;;  %v6085_v20 = vmul.f32 1.442695, %v6084_v26  ;;  %v6091_v55 = vmul.f32 1.442695, %v6090_v62 }
 0x379   : > { %6461 = vpow2.f32 %v6049_v34  ;;  %v6097_v61 = vmul.f32 1.442695, %v6096_v9  ;;  %v6102_v8 = vsub.f32 %v8604_v45, %v8345_v5  ;;  %v6108_v63 = vsub.f32 %v8605_v50, %v8345_v5  ;;  %v8613_v45 = vld [vmem:[#allocation18_spill] sm:$0xff] }
 0x37a   : > { %6463 = vpow2.f32 %v6055_v40  ;;  %v6114_v32 = vsub.f32 %v8606_v30, %v8345_v5  ;;  %v6120_v37 = vsub.f32 %v8607_v41, %v8345_v5  ;;  %v6126_v44 = vsub.f32 %v8608_v25, %v8345_v5  ;;  %v8614_v30 = vld [vmem:[#allocation21_spill] sm:$0xff] }
 0x37b   : > { %6465 = vpow2.f32 %v6061_v58  ;;  %v6103_v59 = vmul.f32 1.442695, %v6102_v8  ;;  %v6109_v57 = vmul.f32 1.442695, %v6108_v63  ;;  %v6132_v21 = vsub.f32 %v8609_v14, %v8345_v5  ;;  %v8615_v14 = vld [vmem:[#allocation24_spill] sm:$0xff] }
 0x37c   : > { %6467 = vpow2.f32 %v6067_v10  ;;  %v6115_v38 = vmul.f32 1.442695, %v6114_v32  ;;  %v6121_v19 = vmul.f32 1.442695, %v6120_v37  ;;  %v6127_v29 = vmul.f32 1.442695, %v6126_v44 }
 0x37d   : > { %6469 = vpow2.f32 %v6073_v47  ;;  %v6133_v12 = vmul.f32 1.442695, %v6132_v21  ;;  %v6138_v31 = vsub.f32 %v8610_v4, %v8345_v5  ;;  %v6144_v2 = vsub.f32 %v8093_v35, %v8345_v5  ;;  %v8612_v35 = vld [vmem:[#allocation14_spill] sm:$0xff] }
 0x37e   : > { %v6460_v6 = vpop.eup %6459  ;;  %6471 = vpow2.f32 %v6079_v24  ;;  %v6150_v16 = vsub.f32 %v8611_v42, %v8345_v5  ;;  %v6156_v27 = vsub.f32 %v8201_v28, %v8345_v5  ;;  %v6162_v15 = vsub.f32 %v8230_v7, %v8345_v5  ;;  %v8616_v4 = vld [vmem:[#allocation50_spill] sm:$0xff]  ;;  %v8618_v42 = vld [vmem:[#allocation27_spill] sm:$0xff] }
 0x37f   : > { %v6462_v39 = vpop.eup %6461  ;;  %v6046_v26 = vmul.f32 %v6460_v6, %v8304_v13  ;;  %6473 = vpow2.f32 %v6085_v20  ;;  %v6139_v22 = vmul.f32 1.442695, %v6138_v31  ;;  %v6145_v34 = vmul.f32 1.442695, %v6144_v2 }
 0x380   : > { %v6464_v40 = vpop.eup %6463  ;;  %v6051_v53 = vadd.f32 %v6462_v39, %v6460_v6  ;;  %v6052_v62 = vmul.f32 %v6462_v39, %v8612_v35  ;;  %6475 = vpow2.f32 %v6091_v55  ;;  %v6151_v58 = vmul.f32 1.442695, %v6150_v16 }
 0x381   : > { %v6466_v10 = vpop.eup %6465  ;;  %v6058_v47 = vmul.f32 %v6464_v40, %v8309_v11  ;;  %6477 = vpow2.f32 %v6097_v61  ;;  %v6157_v28 = vmul.f32 1.442695, %v6156_v27  ;;  %v6163_v3 = vmul.f32 1.442695, %v6162_v15 }
 0x382   : > { %v6468_v9 = vpop.eup %6467  ;;  %v6053_v7 = vadd.f32 %v6052_v62, %v6046_v26  ;;  %v6057_v24 = vadd.f32 %v6464_v40, %v6051_v53  ;;  %v6064_v13 = vmul.f32 %v6466_v10, %v8613_v45  ;;  %6479 = vpow2.f32 %v6103_v59  ;;  %v8619_v40 = vld [vmem:[#allocation31_spill] sm:$0xff] }
 0x383   : > { %v6470_v20 = vpop.eup %6469  ;;  %v6070_v8 = vmul.f32 %v6468_v9, %v8312_v46  ;;  %6481 = vpow2.f32 %v6109_v57  ;;  %v6168_v55 = vsub.f32 %v8250_v0, %v8345_v5  ;;  %v6174_v50 = vsub.f32 %v8260_v18, %v8345_v5 }
 0x384   : > { %v6472_v11 = vpop.eup %6471  ;;  %v6059_v61 = vadd.f32 %v6058_v47, %v6053_v7  ;;  %v6063_v63 = vadd.f32 %v6466_v10, %v6057_v24  ;;  %v6076_v32 = vmul.f32 %v6470_v20, %v8614_v30  ;;  %6483 = vpow2.f32 %v6115_v38  ;;  %v8617_v38 = vld [vmem:[#allocation52_spill] sm:$0xff]  ;;  %v8620_v7 = vld [vmem:[#allocation35_spill] sm:$0xff] }
 0x385   : > { %v6474_v41 = vpop.eup %6473  ;;  %v6082_v37 = vmul.f32 %v6472_v11, %v8327_v56  ;;  %6485 = vpow2.f32 %v6121_v19  ;;  %v6169_v25 = vmul.f32 1.442695, %v6168_v55  ;;  %v6175_v44 = vmul.f32 1.442695, %v6174_v50  ;;  %v8622_v30 = vld [vmem:[#allocation43_spill] sm:$0xff] }
 0x386   : > { %v6476_v46 = vpop.eup %6475  ;;  %v6065_v59 = vadd.f32 %v6064_v13, %v6059_v61  ;;  %v6069_v57 = vadd.f32 %v6468_v9, %v6063_v63  ;;  %v6088_v0 = vmul.f32 %v6474_v41, %v8615_v14  ;;  %6487 = vpow2.f32 %v6127_v29 }
 0x387   : > { %v6478_v21 = vpop.eup %6477  ;;  %v6094_v18 = vmul.f32 %v6476_v46, %v8336_v52  ;;  %6489 = vpow2.f32 %v6133_v12  ;;  %v6180_v31 = vsub.f32 %v8616_v4, %v8345_v5  ;;  %v6186_v2 = vsub.f32 %v8617_v38, %v8345_v5 }
 0x388   : > { %v6480_v56 = vpop.eup %6479  ;;  %v6071_v19 = vadd.f32 %v6070_v8, %v6065_v59  ;;  %v6075_v6 = vadd.f32 %v6470_v20, %v6069_v57  ;;  %v6100_v16 = vmul.f32 %v6478_v21, %v8618_v42  ;;  %6491 = vpow2.f32 %v6139_v22 }
 0x389   : > { %v6482_v27 = vpop.eup %6481  ;;  %v6106_v15 = vmul.f32 %v6480_v56, %v8339_v23  ;;  %6493 = vpow2.f32 %v6145_v34  ;;  %v6181_v29 = vmul.f32 1.442695, %v6180_v31  ;;  %v6187_v39 = vmul.f32 1.442695, %v6186_v2  ;;  %v5661_v34 = vpop.f32.mrf.mxu1  ;;  %v8625_v31 = vld [vmem:[#allocation47_spill] sm:$0xff] }
 0x38a   : > { %v6484_v52 = vpop.eup %6483  ;;  %v6077_v12 = vadd.f32 %v6076_v32, %v6071_v19  ;;  %v6081_v26 = vadd.f32 %v6472_v11, %v6075_v6  ;;  %v6112_v53 = vmul.f32 %v6482_v27, %v8619_v40  ;;  %6495 = vpow2.f32 %v6151_v58  ;;  %v8626_v19 = vld [vmem:[#allocation48_spill] sm:$0xff] }
 0x38b   : > { %v6486_v35 = vpop.eup %6485  ;;  %v6118_v62 = vmul.f32 %v6484_v52, %v8342_v60  ;;  %6497 = vpow2.f32 %v6157_v28  ;;  %v6192_v10 = vsub.f32 %v8292_v48, %v8345_v5  ;;  %v6198_v22 = vsub.f32 %v8297_v51, %v8345_v5  ;;  %v8621_v48 = vld [vmem:[#allocation39_spill] sm:$0xff] }
 0x38c   : > { %v6488_v23 = vpop.eup %6487  ;;  %v6083_v47 = vadd.f32 %v6082_v37, %v6077_v12  ;;  %v6087_v9 = vadd.f32 %v6474_v41, %v6081_v26  ;;  %v6124_v24 = vmul.f32 %v6486_v35, %v8620_v7  ;;  %6499 = vpow2.f32 %v6163_v3  ;;  %v5692_v37 = vpop.f32.mrf.mxu2  ;;  %v8628_v26 = vld [vmem:[#allocation51_spill] sm:$0xff] }
 0x38d   : > { %v6490_v45 = vpop.eup %6489  ;;  %v6130_v58 = vmul.f32 %v6488_v23, %v8348_v54  ;;  %6501 = vpow2.f32 %v6169_v25  ;;  %v6193_v13 = vmul.f32 1.442695, %v6192_v10  ;;  %v6199_v60 = vmul.f32 1.442695, %v6198_v22 }
 0x38e   : > { %v6492_v28 = vpop.eup %6491  ;;  %v6089_v20 = vadd.f32 %v6088_v0, %v6083_v47  ;;  %v6093_v8 = vadd.f32 %v6476_v46, %v6087_v9  ;;  %v6136_v55 = vmul.f32 %v6490_v45, %v8621_v48  ;;  %6503 = vpow2.f32 %v6175_v44 }
 0x38f   : > { %v6494_v51 = vpop.eup %6493  ;;  %v5662_v50 = vadd.f32 %v5661_v34, %v8356_v49  ;;  %v6142_v11 = vmul.f32 %v6492_v28, %v8351_v43  ;;  %6505 = vpow2.f32 %v6181_v29  ;;  %v6204_v3 = vsub.f32 %v8324_v33, %v8345_v5  ;;  %v8623_v43 = vld [vmem:[#allocation45_spill] sm:$0xff]  ;;  %v8624_v33 = vld [vmem:[#allocation46_spill] sm:$0xff] }
 0x390   : > { %v6496_v61 = vpop.eup %6495  ;;  %v6095_v54 = vadd.f32 %v6094_v18, %v6089_v20  ;;  %v6099_v63 = vadd.f32 %v6478_v21, %v6093_v8  ;;  %v6148_v32 = vmul.f32 %v6494_v51, %v8622_v30  ;;  %6507 = vpow2.f32 %v6187_v39  ;;  %v8627_v29 = vld [vmem:[#allocation49_spill] sm:$0xff] }
 0x391   : > { %v6498_v41 = vpop.eup %6497  ;;  %v6154_v25 = vmul.f32 %v6496_v61, %v8354_v36  ;;  %6509 = vpow2.f32 %v6193_v13  ;;  %v6205_v44 = vmul.f32 1.442695, %v6204_v3  ;;  %v5693_v21 = vadd.f32 %v5692_v37, %v5662_v50  ;;  %v5719_v36 = vpop.f32.mrf.mxu3 }
 0x392   : > { %v6500_v46 = vpop.eup %6499  ;;  %v6101_v49 = vadd.f32 %v6100_v16, %v6095_v54  ;;  %v6105_v59 = vadd.f32 %v6480_v56, %v6099_v63  ;;  %v6160_v57 = vmul.f32 %v6498_v41, %v8623_v43  ;;  %6511 = vpow2.f32 %v6199_v60 }
 0x393   : > { %v6502_v14 = vpop.eup %6501  ;;  %v6166_v5 = vmul.f32 %v6500_v46, %v8624_v33  ;;  %6513 = vpow2.f32 %v6205_v44  ;;  %v5720_v22 = vadd.f32 %v5719_v36, %v5693_v21 }
 0x394   : > { %v6504_v0 = vpop.eup %6503  ;;  %v6107_v18 = vadd.f32 %v6106_v15, %v6101_v49  ;;  %v6111_v4 = vadd.f32 %v6482_v27, %v6105_v59  ;;  %v6172_v38 = vmul.f32 %v6502_v14, %v8625_v31 }
 0x395   : > { %v6506_v2 = vpop.eup %6505  ;;  %v6178_v6 = vmul.f32 %v6504_v0, %v8626_v19 }
 0x396   : > { %v6508_v42 = vpop.eup %6507  ;;  %v6113_v16 = vadd.f32 %v6112_v53, %v6107_v18  ;;  %v6117_v56 = vadd.f32 %v6484_v52, %v6111_v4  ;;  %v6184_v39 = vmul.f32 %v6506_v2, %v8627_v29 }
 0x397   : > { %v6510_v12 = vpop.eup %6509  ;;  %v6190_v40 = vmul.f32 %v6508_v42, %v8628_v26 }
 0x398   : > { %v6512_v10 = vpop.eup %6511  ;;  %v6119_v15 = vadd.f32 %v6118_v62, %v6113_v16  ;;  %v6123_v27 = vadd.f32 %v6486_v35, %v6117_v56  ;;  %v6196_v34 = vmul.f32 %v6510_v12, %v8281_v17 }
 0x399   : > { %v6514_v47 = vpop.eup %6513  ;;  %v6202_v9 = vmul.f32 %v6512_v10, %v8287_v1 }
 0x39a   : > { %v6125_v7 = vadd.f32 %v6124_v24, %v6119_v15  ;;  %v6129_v13 = vadd.f32 %v6488_v23, %v6123_v27  ;;  %v6208_v53 = vmul.f32 %v6514_v47, %v5720_v22 }
 0x39c   : > { %v6131_v52 = vadd.f32 %v6130_v58, %v6125_v7  ;;  %v6135_v60 = vadd.f32 %v6490_v45, %v6129_v13 }
 0x39e   : > { %v6137_v20 = vadd.f32 %v6136_v55, %v6131_v52  ;;  %v6141_v8 = vadd.f32 %v6492_v28, %v6135_v60  ;;  %v6227_v28 = vld [vmem:[%s317_s11] sm:$0xff] }
 0x3a0   : > { %v6143_v48 = vadd.f32 %v6142_v11, %v6137_v20  ;;  %v6147_v50 = vadd.f32 %v6494_v51, %v6141_v8  ;;  %v6228_v11 = vrot.slane %v6227_v28, 4 }
 0x3a2   : > { %v6149_v3 = vadd.f32 %v6148_v32, %v6143_v48  ;;  %v6153_v54 = vadd.f32 %v6496_v61, %v6147_v50 }
 0x3a4   : > { %v6155_v62 = vadd.f32 %v6154_v25, %v6149_v3  ;;  %v6159_v35 = vadd.f32 %v6498_v41, %v6153_v54  ;;  %v6229_v25 = vadd.f32 %v6228_v11, %v6227_v28 }
 0x3a6   : > { %v6161_v17 = vadd.f32 %v6160_v57, %v6155_v62  ;;  %v6165_v63 = vadd.f32 %v6500_v46, %v6159_v35  ;;  %v6230_v59 = vrot.slane %v6229_v25, 2 }
 0x3a8   : > { %v6167_v30 = vadd.f32 %v6166_v5, %v6161_v17  ;;  %v6171_v1 = vadd.f32 %v6502_v14, %v6165_v63  ;;  %v6231_v43 = vadd.f32 %v6230_v59, %v6229_v25 }
 0x3aa   : > { %v6173_v23 = vadd.f32 %v6172_v38, %v6167_v30  ;;  %v6177_v24 = vadd.f32 %v6504_v0, %v6171_v1  ;;  %v6232_v5 = vrot.slane %v6231_v43, 1 }
 0x3ac   : > { %v6179_v45 = vadd.f32 %v6178_v6, %v6173_v23  ;;  %v6183_v58 = vadd.f32 %v6506_v2, %v6177_v24  ;;  %v6233_v31 = vadd.f32 %v6232_v5, %v6231_v43  ;;  %v6234_v2 = vstv %s6383_s29 }
 0x3ad   : > { %v6225_v6 = vstv %s6382_s12 }
 0x3ae   : > { %v6185_v55 = vadd.f32 %v6184_v39, %v6179_v45  ;;  %v6189_v51 = vadd.f32 %v6508_v42, %v6183_v58  ;;  %v6235_v16 = vadd.f32 %v6234_v2, %v6233_v31 }
 0x3b0   : > { %v6191_v61 = vadd.f32 %v6190_v40, %v6185_v55  ;;  %v6195_v32 = vadd.f32 %v6510_v12, %v6189_v51 }
 0x3b2   : > { %v6197_v41 = vadd.f32 %v6196_v34, %v6191_v61  ;;  %v6201_v37 = vadd.f32 %v6512_v10, %v6195_v32 }
 0x3b4   : > { %v6203_v44 = vadd.f32 %v6202_v9, %v6197_v41  ;;  %v6207_v46 = vadd.f32 %v6514_v47, %v6201_v37 }
 0x3b6   : > { %v6209_v49 = vadd.f32 %v6208_v53, %v6203_v44  ;;  %6515 = vrcp.f32 %v6207_v46  ;;  %v6221_v0 = vand.u32 2147483648, %v6207_v46  ;;  %v6219_v18 = vand.u32 2147483647, %v6207_v46 }
 0x3b7   : > { %vm6215_vm2 = vweird.f32 %v6207_v46 }
 0x3b8   : > { %v6222_v38 = vor.u32 1.1754944e-38, %v6221_v0  ;;  %vm6220_vm4 = vcmp.eq.f32.partialorder %v6219_v18, 8.507059e+37 }
 0x3bc   : > { %v6516_v57 = vpop.eup %6515 }
 0x3bd   : > { %v6211_v14 = vmul.f32 %v6516_v57, %v6207_v46  ;;  %vm6216_vm1 = vweird.f32 %v6516_v57 }
 0x3be   : > { %vm6217_vm3 = vmor %vm6215_vm2, %vm6216_vm1 }
 0x3bf   : > { %v6212_v33 = vsub.f32 1.0, %v6211_v14 }
 0x3c1   : > { %v6213_v21 = vmul.f32 %v6516_v57, %v6212_v33 }
 0x3c3   : > { %v6214_v4 = vadd.f32 %v6516_v57, %v6213_v21 }
 0x3c5   : > { %v6218_v36 = vsel %vm6217_vm3, %v6516_v57, %v6214_v4 }
 0x3c6   : > { %v6223_v19 = vsel %vm6220_vm4, %v6222_v38, %v6218_v36 }
 0x3c7   : > { %v6224_v42 = vmul.f32 %v6223_v19, %v6209_v49 }
 0x3c9   : > { %v6226_v56 = vadd.f32 %v6225_v6, %v6224_v42 }
 0x3cb   : > { %v6236_v29 = vadd.f32 %v6235_v16, %v6226_v56 }
 0x3cd   : > { %v6384_v39 = vmul.f32 -1.442695, %v6236_v29 }
 0x3cf   : > { %6517 = vpow2.f32 %v6384_v39 }
 0x3d5   : > { %v6518_v12 = vpop.eup %6517 }
 0x3d6   : > { %v6240_v26 = vadd.f32 1.0, %v6518_v12 }
 0x3d8   : > { %6519 = vrcp.f32 %v6240_v26  ;;  %v6252_v15 = vand.u32 2147483648, %v6240_v26  ;;  %v6250_v34 = vand.u32 2147483647, %v6240_v26  ;;  %vm6246_vm6 = vweird.f32 %v6240_v26 }
 0x3da   : > { %v6253_v9 = vor.u32 1.1754944e-38, %v6252_v15  ;;  %vm6251_vm8 = vcmp.eq.f32.partialorder %v6250_v34, 8.507059e+37 }
 0x3de   : > { %v6520_v40 = vpop.eup %6519 }
 0x3df   : > { %v6242_v10 = vmul.f32 %v6520_v40, %v6240_v26  ;;  %vm6247_vm5 = vweird.f32 %v6520_v40 }
 0x3e0   : > { %vm6248_vm7 = vmor %vm6246_vm6, %vm6247_vm5 }
 0x3e1   : > { %v6243_v22 = vsub.f32 1.0, %v6242_v10 }
 0x3e3   : > { %v6244_v27 = vmul.f32 %v6520_v40, %v6243_v22 }
 0x3e5   : > { %v6245_v47 = vadd.f32 %v6520_v40, %v6244_v27 }
 0x3e7   : > { %v6249_v7 = vsel %vm6248_vm7, %v6520_v40, %v6245_v47 }
 0x3e8   : > { %v6254_v13 = vsel %vm6251_vm8, %v6253_v9, %v6249_v7 }
 0x3e9   : > { %6256 = vst [vmem:[%s313_s2] sm:$0x1] %v6254_v13 }
 0x3ea   : > { %6647 = shalt.err (!%p6644_p12)
}
 0x3eb   : > { %6397 = dma.vmem_to_hbm [thread:$0]  (%p6809_p5), %s6269_s27, 16, %s6271_s8, %s6258_s25  }
 0x3ec PF: > { %s6282_s7 = sand.u32 1, %s6682_s21   ;;  %p8629_p13 = scmp.ge.s32.totalorder %s6694_s24, 2 }
 0x3ed   : > { %s6283_s29 = scalar_lea.sflag [#allocation4], %s6282_s7 }
 0x3ee   : > { %p6411_p0 = pnand %p8629_p13, %p6772_p6 }
 0x3f0   : > { %p6412_p3 = pneg %p6411_p0 }
 0x3f2   : > { %6677 = dma.done.wait (%p6412_p3), %s6283_s29, 16  }
 0x3f3   : > { %6679 = vsyncadd (%p6412_p3), %s6283_s29, 4294967280  ;;  %p21_p7 = scmp.ge.s32.totalorder %s6796_s17, 4   ;;  %s8630_s21 = smov %s6686_s22 }
 0x3f4   : > { %s8631_s22 = smov %s6690_s23  ;;  %s8632_s23 = smov %s6805_s20 }
 0x3f5   : > { %s8633_s24 = smov %s6796_s17  ;;  %23 = sbr.rel (!%p21_p7) target bundleno = 9 (0x9), region = 101 }
 0x3fa   :  { %6288 = vsyncpa [#allocation3], 1 }
 0x3fb   :  { %6290 = vsyncpa [#allocation3 + $0x1], 1 }
 0x3fc   :  { %6291 = vsyncpa [#allocation7], 1 }
 0x3fd   :  { %6292 = vsyncpa [#allocation4], 1 }
 0x3fe   :  { %6294 = vsyncpa [#allocation4 + $0x1], 1 }
 0x3ff   :  { %6295 = vsyncpa [#allocation5], 1 }
 0x400   :  { %6297 = vsyncpa [#allocation5 + $0x1], 1 }

</bundles_post_ra>
